<compile_context>
chip_gen: v7x
topology: tpu7x:2x2x1
jax: 0.10.0
libtpu: 0.0.40
codegen_flags: <defaults>
</compile_context>

<pallas_src>
import functools

import jax
import jax.numpy as jnp
from jax import lax
from jax.experimental import pallas as pl
from jax.experimental.pallas import tpu as pltpu


def _round_up(x, m):
    return (x + m - 1) // m * m


# ----------------------------- Pallas kernel --------------------------------

def _fused_block2d_kernel(x_hbm, w1_ref, b1_ref, w2_ref, b2_ref, msk_ref,
                          o_ref, xin, mid, sem, *, Wp, Cp, NR, M1, M2, THW):
    """One (batch, row-block) step of the fused ResNet basic block.

    Flattened-row layout: position m of a slab indexes (row, col) = (m // Wp,
    m % Wp) of a (rows, Wp, Cp) image tile stored as (rows*Wp, Cp).

    x_hbm : (B, (H+4)*Wp, Cp) bf16 HBM ref (pl.ANY) — zero-padded activation
            (2 halo rows top/bottom, 1 halo col left/right, channels -> Cp).
    w1_ref: (3, 3*Cp, Cp) bf16 — conv1 weight, BN1 scale folded, kx taps in K.
    b1_ref: (1, Cp) f32 — folded BN1 bias.           (w2_ref/b2_ref: conv2/BN2)
    msk_ref: (1, M1, 1) f32 — conv1 row/col validity mask for this h-block.
    o_ref : (1, THW, Cp) f32 — TH output rows, full padded width.
    xin   : VMEM (2, NR, Cp) bf16 — double-buffered activation window.
    mid   : VMEM (M1+2, Cp) bf16 — conv1 output (+zero padding) for conv2.
    sem   : DMA semaphores (2,).
    """
    b = pl.program_id(0)
    hb = pl.program_id(1)
    n_hb = pl.num_programs(1)
    slot = hb % 2

    def window(block):
        return x_hbm.at[b, pl.ds(block * THW, NR)]

    # Fetch this step's activation window.  The first block of each image
    # fetches synchronously; later blocks were prefetched by the previous step.
    @pl.when(hb == 0)
    def _():
        pltpu.make_async_copy(window(0), xin.at[0], sem.at[0]).start()

    pltpu.make_async_copy(window(hb), xin.at[slot], sem.at[slot]).wait()

    @pl.when(hb + 1 < n_hb)
    def _():
        nxt = 1 - slot
        pltpu.make_async_copy(window(hb + 1), xin.at[nxt], sem.at[nxt]).start()

    xwin = xin[slot]                                       # (NR, Cp) bf16

    def conv3x3(src, w_ref, m):
        """3x3 conv over flattened rows: 3 MXU matmuls with K = 3*Cp."""
        acc = jnp.zeros((m, Cp), jnp.float32)
        for dy in range(3):
            base = dy * Wp
            slab = jnp.concatenate(
                [src[base + dx:base + dx + m, :] for dx in range(3)], axis=-1)
            acc = acc + jnp.dot(slab, w_ref[dy],
                                preferred_element_type=jnp.float32)
        return acc

    # conv1 + BN1 + ReLU for the TH+2 conv1 rows that conv2 needs.  The mask
    # zeroes the out-of-image rows (conv2's zero padding) and the wrap-around
    # columns, which also supplies conv2's column padding inside `mid`.
    y1 = jnp.maximum(conv3x3(xwin, w1_ref, M1) + b1_ref[...], 0.0) * msk_ref[0]
    zrow = jnp.zeros((1, Cp), mid.dtype)
    mid[0:1, :] = zrow
    mid[1:1 + M1, :] = y1.astype(mid.dtype)
    mid[1 + M1:2 + M1, :] = zrow

    # conv2 + BN2 + residual + ReLU.  The identity is the original activation at
    # the output positions, re-read from the bf16 window already in VMEM and
    # accumulated in f32.
    iden = xwin[2 * Wp + 1:2 * Wp + 1 + M2, :].astype(jnp.float32)
    y2 = conv3x3(mid, w2_ref, M2) + b2_ref[...] + iden
    o_ref[0, 0:M2, :] = jnp.maximum(y2, 0.0).astype(o_ref.dtype)
    o_ref[0, M2:M2 + 2, :] = jnp.zeros((2, Cp), o_ref.dtype)   # discarded cols


# ------------------------------- JAX glue ------------------------------------

def _fold_bn(gamma, beta, mean, var, eps):
    scale = gamma / jnp.sqrt(var + eps)
    return scale, beta - mean * scale


def _fold_weight(w_oihw, scale, cp):
    """PyTorch (O,I,3,3) conv weight * per-O BN scale -> (3, 3*Cp, Cp) bf16,
    with the kx tap merged into the matmul K dimension and channels padded."""
    o, i = w_oihw.shape[0], w_oihw.shape[1]
    w = w_oihw * scale[:, None, None, None]
    w = jnp.transpose(w, (2, 3, 1, 0))                        # (ky, kx, I, O)
    w = jnp.pad(w, ((0, 0), (0, 0), (0, cp - i), (0, cp - o)))
    return w.reshape(3, 3 * cp, cp).astype(jnp.bfloat16)


def block2d_forward(x_nchw, params, eps=1e-5, row_block=8):
    """Forward pass of Block2d (stride=1, downsample=None), NCHW in/out."""
    w1, g1, be1, m1, v1, w2, g2, be2, m2, v2 = params
    B, C, H, W = x_nchw.shape
    cout = w1.shape[0]
    assert C == cout, "residual path requires in_channels == out_channels"

    Cp = _round_up(max(C, 128), 128)          # lane-dense channel padding
    Wp = W + 2

    # TH output rows per grid step (must divide H; block rows multiple of 8).
    TH = None
    for cand in range(min(row_block, H), 0, -1):
        if H % cand == 0 and (cand * Wp) % 8 == 0:
            TH = cand
            break
    if TH is None:
        TH = H                                # one block: full-extent out dim
    nH = H // TH
    THW = TH * Wp
    NR = (TH + 4) * Wp                        # activation rows DMA'd per step
    M1 = (TH + 2) * Wp - 2                    # conv1 positions per step
    M2 = TH * Wp - 2                          # conv2 positions per step

    # Fold inference-mode BN into the conv weights / biases.
    s1, b1 = _fold_bn(g1, be1, m1, v1, eps)
    s2, b2 = _fold_bn(g2, be2, m2, v2, eps)
    w1m = _fold_weight(w1, s1, Cp)
    w2m = _fold_weight(w2, s2, Cp)
    b1v = jnp.pad(b1, (0, Cp - cout)).reshape(1, Cp).astype(jnp.float32)
    b2v = jnp.pad(b2, (0, Cp - cout)).reshape(1, Cp).astype(jnp.float32)

    # Activation prep (one fused XLA pass): NCHW->NHWC, 2-row/1-col zero halo,
    # channel pad to Cp, bf16 cast, flatten rows.
    xh = jnp.transpose(x_nchw, (0, 2, 3, 1))
    xh = jnp.pad(xh, ((0, 0), (2, 2), (1, 1), (0, Cp - C)))
    x_flat = xh.astype(jnp.bfloat16).reshape(B, (H + 4) * Wp, Cp)

    # conv1 validity mask per h-block: position m <-> local row m//Wp, col m%Wp;
    # valid iff col < W and the global conv1 row hb*TH - 1 + row is inside [0, H).
    pos = jnp.arange(M1)
    r = pos // Wp
    c = pos % Wp
    g = jnp.arange(nH)[:, None] * TH - 1 + r[None, :]
    mask = ((c[None, :] < W) & (g >= 0) & (g < H)).astype(jnp.float32)
    mask = mask.reshape(nH, M1, 1)

    kernel = functools.partial(_fused_block2d_kernel, Wp=Wp, Cp=Cp, NR=NR,
                               M1=M1, M2=M2, THW=THW)

    flops = 2 * B * nH * (M1 + M2) * (3 * Cp) * Cp
    bytes_accessed = (B * (H + 4) * Wp * Cp * 2      # activation (read ~once)
                      + 2 * 3 * 3 * Cp * Cp * 2      # both folded weights
                      + B * H * Wp * Cp * 4)         # output

    out_flat = pl.pallas_call(
        kernel,
        out_shape=jax.ShapeDtypeStruct((B, H * Wp, Cp), jnp.float32),
        grid=(B, nH),
        in_specs=[
            pl.BlockSpec(memory_space=pl.ANY),                      # activation (HBM)
            pl.BlockSpec((3, 3 * Cp, Cp), lambda b, h: (0, 0, 0)),  # w1 (fetched once)
            pl.BlockSpec((1, Cp), lambda b, h: (0, 0)),             # b1
            pl.BlockSpec((3, 3 * Cp, Cp), lambda b, h: (0, 0, 0)),  # w2
            pl.BlockSpec((1, Cp), lambda b, h: (0, 0)),             # b2
            pl.BlockSpec((1, M1, 1), lambda b, h: (h, 0, 0)),       # conv1 mask
        ],
        out_specs=pl.BlockSpec((1, THW, Cp), lambda b, h: (b, h, 0)),
        scratch_shapes=[
            pltpu.VMEM((2, NR, Cp), jnp.bfloat16),        # double-buffered window
            pltpu.VMEM((M1 + 2, Cp), jnp.bfloat16),       # conv1->conv2 intermediate
            pltpu.SemaphoreType.DMA((2,)),
        ],
        compiler_params=pltpu.CompilerParams(
            dimension_semantics=("parallel", "arbitrary")),
        cost_estimate=pl.CostEstimate(flops=flops, transcendentals=0,
                                      bytes_accessed=bytes_accessed),
    )(x_flat, w1m, b1v, w2m, b2v, mask)

    out = out_flat.reshape(B, H, Wp, Cp)[:, :, :W, :cout]
    return jnp.transpose(out, (0, 3, 1, 2))               # back to NCHW


# --------------------------- references (self-test) --------------------------

def _reference_f32(x, params, eps=1e-5):
    w1, g1, be1, m1, v1, w2, g2, be2, m2, v2 = params

    def conv(x, w):
        return lax.conv_general_dilated(
            x, w, (1, 1), ((1, 1), (1, 1)),
            dimension_numbers=("NCHW", "OIHW", "NCHW"))

    def bn(x, g, b, m, v):
        sh = (1, -1, 1, 1)
        return ((x - m.reshape(sh)) / jnp.sqrt(v.reshape(sh) + eps)
                * g.reshape(sh) + b.reshape(sh))

    h = jax.nn.relu(bn(conv(x, w1), g1, be1, m1, v1))
    return jax.nn.relu(bn(conv(h, w2), g2, be2, m2, v2) + x)


def _reference_matched(x, params, eps=1e-5):
    """Same numerics as the kernel: folded bf16 weights, bf16 activations,
    f32 accumulation, bf16 identity added in f32."""
    w1, g1, be1, m1, v1, w2, g2, be2, m2, v2 = params
    s1, b1 = _fold_bn(g1, be1, m1, v1, eps)
    s2, b2 = _fold_bn(g2, be2, m2, v2, eps)

    def conv(x_bf16, w_bf16):
        return lax.conv_general_dilated(
            x_bf16, w_bf16, (1, 1), ((1, 1), (1, 1)),
            dimension_numbers=("NCHW", "OIHW", "NCHW"),
            preferred_element_type=jnp.float32)

    xb = x.astype(jnp.bfloat16)
    w1f = (w1 * s1[:, None, None, None]).astype(jnp.bfloat16)
    w2f = (w2 * s2[:, None, None, None]).astype(jnp.bfloat16)
    h = jax.nn.relu(conv(xb, w1f) + b1.reshape(1, -1, 1, 1))
    y = conv(h.astype(jnp.bfloat16), w2f) + b2.reshape(1, -1, 1, 1)
    return jax.nn.relu(y + xb.astype(jnp.float32))


# ----------------------------------- main ------------------------------------

if __name__ == "__main__":
    B, C, H, W = 2, 4, 16, 16
    cout = C  # downsample=None, stride=1 => residual needs matching channels

    key = jax.random.PRNGKey(0)
    ks = jax.random.split(key, 12)

    x = jax.random.normal(ks[0], (B, C, H, W), jnp.float32)
    w1 = 0.1 * jax.random.normal(ks[1], (cout, C, 3, 3), jnp.float32)
    w2 = 0.1 * jax.random.normal(ks[2], (cout, cout, 3, 3), jnp.float32)
    g1 = jax.random.uniform(ks[3], (cout,), jnp.float32, 0.5, 1.5)
    be1 = 0.1 * jax.random.normal(ks[4], (cout,), jnp.float32)
    m1 = 0.1 * jax.random.normal(ks[5], (cout,), jnp.float32)
    v1 = jax.random.uniform(ks[6], (cout,), jnp.float32, 0.5, 1.5)
    g2 = jax.random.uniform(ks[7], (cout,), jnp.float32, 0.5, 1.5)
    be2 = 0.1 * jax.random.normal(ks[8], (cout,), jnp.float32)
    m2 = 0.1 * jax.random.normal(ks[9], (cout,), jnp.float32)
    v2 = jax.random.uniform(ks[10], (cout,), jnp.float32, 0.5, 1.5)

    params = (w1, g1, be1, m1, v1, w2, g2, be2, m2, v2)

    fwd = jax.jit(block2d_forward)
    out = jax.block_until_ready(fwd(x, params))
    assert out.shape == (B, C, H, W)

    ref_m = _reference_matched(x, params)   # identical bf16/f32 numerics
    ref_f = _reference_f32(x, params)       # pure f32 reference (sanity)
    err_m = float(jnp.max(jnp.abs(out - ref_m)))
    err_f = float(jnp.max(jnp.abs(out - ref_f)))
    assert err_m < 5e-3, f"bf16-matched reference max abs err {err_m}"
    assert err_f < 1e-1, f"f32 reference max abs err {err_f}"
    print("KERNEL_OK")
</pallas_src>

<mosaic_0001>
module attributes {stable_mosaic.version = 11 : i64} {
  func.func @_fused_block2d_kernel(%arg0: i32, %arg1: i32, %arg2: memref<2x360x128xbf16, #tpu.memory_space<any>>, %arg3: memref<3x384x128xbf16, #tpu.memory_space<vmem>>, %arg4: memref<1x128xf32, #tpu.memory_space<vmem>>, %arg5: memref<3x384x128xbf16, #tpu.memory_space<vmem>>, %arg6: memref<1x128xf32, #tpu.memory_space<vmem>>, %arg7: memref<1x178x1xf32, #tpu.memory_space<vmem>>, %arg8: memref<1x144x128xf32, #tpu.memory_space<vmem>>, %arg9: memref<2x216x128xbf16, #tpu.memory_space<vmem>>, %arg10: memref<180x128xbf16, #tpu.memory_space<vmem>>, %arg11: memref<2x!tpu.dma_semaphore, #tpu.memory_space<semaphore_mem>>) attributes {dimension_semantics = [#tpu.dimension_semantics<parallel>, #tpu.dimension_semantics<arbitrary>], iteration_bounds = array<i64: 2, 2>, scalar_prefetch = 0 : i64, scratch_operands = 3 : i64, tpu.core_type = #tpu.core_type<tc>, window_params = [{}, {pipeline_mode = #tpu.pipeline_mode<synchronous>, transform_indices = @transform_1, window_bounds = array<i64: 3, 384, 128>}, {pipeline_mode = #tpu.pipeline_mode<synchronous>, transform_indices = @transform_2, window_bounds = array<i64: 1, 128>}, {pipeline_mode = #tpu.pipeline_mode<synchronous>, transform_indices = @transform_3, window_bounds = array<i64: 3, 384, 128>}, {pipeline_mode = #tpu.pipeline_mode<synchronous>, transform_indices = @transform_4, window_bounds = array<i64: 1, 128>}, {transform_indices = @transform_5, window_bounds = array<i64: 1, 178, 1>}, {transform_indices = @transform_6, window_bounds = array<i64: 1, 144, 128>}]} {
    %c2_i32 = arith.constant 2 : i32
    %c0_i32 = arith.constant 0 : i32
    %0 = arith.cmpi eq, %c2_i32, %c0_i32 : i32
    %c1_i32 = arith.constant 1 : i32
    %1 = arith.select %0, %c1_i32, %c2_i32 : i32
    %2 = arith.remsi %arg1, %1 : i32
    %c0_i32_0 = arith.constant 0 : i32
    %3 = arith.cmpi ne, %2, %c0_i32_0 : i32
    %c0_i32_1 = arith.constant 0 : i32
    %4 = arith.cmpi slt, %2, %c0_i32_1 : i32
    %c0_i32_2 = arith.constant 0 : i32
    %5 = arith.cmpi slt, %1, %c0_i32_2 : i32
    %6 = arith.xori %4, %5 : i1
    %7 = arith.andi %6, %3 : i1
    %8 = arith.addi %2, %1 : i32
    %9 = arith.select %7, %8, %2 : i32
    %c0_i32_3 = arith.constant 0 : i32
    %10 = arith.cmpi eq, %arg1, %c0_i32_3 : i32
    %11 = arith.extui %10 : i1 to i32
    %c0_i32_4 = arith.constant 0 : i32
    %12 = arith.cmpi ne, %11, %c0_i32_4 : i32
    scf.if %12 {
      %c0_i32_68 = arith.constant 0 : i32
      %c0_i32_69 = arith.constant 0 : i32
      %c0_i32_70 = arith.constant 0 : i32
      %c0_i32_71 = arith.constant 0 : i32
      %106 = tpu.memref_slice %arg2[%arg0, %c0_i32_70, %c0_i32_71] : memref<2x360x128xbf16, #tpu.memory_space<any>> -> memref<1x216x128xbf16, #tpu.memory_space<any>>
      %107 = tpu.memref_squeeze %106 : memref<1x216x128xbf16, #tpu.memory_space<any>> -> memref<216x128xbf16, #tpu.memory_space<any>>
      %c0_i32_72 = arith.constant 0 : i32
      %c0_i32_73 = arith.constant 0 : i32
      %108 = tpu.memref_slice %arg9[%c0_i32_68, %c0_i32_72, %c0_i32_73] : memref<2x216x128xbf16, #tpu.memory_space<vmem>> -> memref<1x216x128xbf16, #tpu.memory_space<vmem>>
      %109 = tpu.memref_squeeze %108 : memref<1x216x128xbf16, #tpu.memory_space<vmem>> -> memref<216x128xbf16, #tpu.memory_space<vmem>>
      %110 = tpu.memref_slice %arg11[%c0_i32_69] : memref<2x!tpu.dma_semaphore, #tpu.memory_space<semaphore_mem>> -> memref<1x!tpu.dma_semaphore, #tpu.memory_space<semaphore_mem>>
      %111 = tpu.memref_squeeze %110 : memref<1x!tpu.dma_semaphore, #tpu.memory_space<semaphore_mem>> -> memref<!tpu.dma_semaphore, #tpu.memory_space<semaphore_mem>>
      tpu.enqueue_dma source(%107 : memref<216x128xbf16, #tpu.memory_space<any>>) target(%109 : memref<216x128xbf16, #tpu.memory_space<vmem>>) target_semaphore(%111 : memref<!tpu.dma_semaphore, #tpu.memory_space<semaphore_mem>>)
    } else {
    }
    %c144_i32 = arith.constant 144 : i32
    %13 = arith.muli %arg1, %c144_i32 : i32
    %c0_i32_5 = arith.constant 0 : i32
    %14 = tpu.memref_slice %arg2[%arg0, %13, %c0_i32_5] : memref<2x360x128xbf16, #tpu.memory_space<any>> -> memref<1x216x128xbf16, #tpu.memory_space<any>>
    %15 = tpu.memref_squeeze %14 : memref<1x216x128xbf16, #tpu.memory_space<any>> -> memref<216x128xbf16, #tpu.memory_space<any>>
    %c0_i32_6 = arith.constant 0 : i32
    %c0_i32_7 = arith.constant 0 : i32
    %16 = tpu.memref_slice %arg9[%9, %c0_i32_6, %c0_i32_7] : memref<2x216x128xbf16, #tpu.memory_space<vmem>> -> memref<1x216x128xbf16, #tpu.memory_space<vmem>>
    %17 = tpu.memref_squeeze %16 : memref<1x216x128xbf16, #tpu.memory_space<vmem>> -> memref<216x128xbf16, #tpu.memory_space<vmem>>
    %18 = tpu.memref_slice %arg11[%9] : memref<2x!tpu.dma_semaphore, #tpu.memory_space<semaphore_mem>> -> memref<1x!tpu.dma_semaphore, #tpu.memory_space<semaphore_mem>>
    %19 = tpu.memref_squeeze %18 : memref<1x!tpu.dma_semaphore, #tpu.memory_space<semaphore_mem>> -> memref<!tpu.dma_semaphore, #tpu.memory_space<semaphore_mem>>
    tpu.wait_dma2 semaphore(%19 : memref<!tpu.dma_semaphore, #tpu.memory_space<semaphore_mem>>) src(%15 : memref<216x128xbf16, #tpu.memory_space<any>>) dst(%17 : memref<216x128xbf16, #tpu.memory_space<vmem>>)
    %c1_i32_8 = arith.constant 1 : i32
    %20 = arith.addi %arg1, %c1_i32_8 : i32
    %c2_i32_9 = arith.constant 2 : i32
    %21 = arith.cmpi slt, %20, %c2_i32_9 : i32
    %22 = arith.extui %21 : i1 to i32
    %c0_i32_10 = arith.constant 0 : i32
    %23 = arith.cmpi ne, %22, %c0_i32_10 : i32
    scf.if %23 {
      %c1_i32_68 = arith.constant 1 : i32
      %106 = arith.subi %c1_i32_68, %9 : i32
      %c1_i32_69 = arith.constant 1 : i32
      %107 = arith.addi %arg1, %c1_i32_69 : i32
      %c144_i32_70 = arith.constant 144 : i32
      %108 = arith.muli %107, %c144_i32_70 : i32
      %c0_i32_71 = arith.constant 0 : i32
      %109 = tpu.memref_slice %arg2[%arg0, %108, %c0_i32_71] : memref<2x360x128xbf16, #tpu.memory_space<any>> -> memref<1x216x128xbf16, #tpu.memory_space<any>>
      %110 = tpu.memref_squeeze %109 : memref<1x216x128xbf16, #tpu.memory_space<any>> -> memref<216x128xbf16, #tpu.memory_space<any>>
      %c0_i32_72 = arith.constant 0 : i32
      %c0_i32_73 = arith.constant 0 : i32
      %111 = tpu.memref_slice %arg9[%106, %c0_i32_72, %c0_i32_73] : memref<2x216x128xbf16, #tpu.memory_space<vmem>> -> memref<1x216x128xbf16, #tpu.memory_space<vmem>>
      %112 = tpu.memref_squeeze %111 : memref<1x216x128xbf16, #tpu.memory_space<vmem>> -> memref<216x128xbf16, #tpu.memory_space<vmem>>
      %113 = tpu.memref_slice %arg11[%106] : memref<2x!tpu.dma_semaphore, #tpu.memory_space<semaphore_mem>> -> memref<1x!tpu.dma_semaphore, #tpu.memory_space<semaphore_mem>>
      %114 = tpu.memref_squeeze %113 : memref<1x!tpu.dma_semaphore, #tpu.memory_space<semaphore_mem>> -> memref<!tpu.dma_semaphore, #tpu.memory_space<semaphore_mem>>
      tpu.enqueue_dma source(%110 : memref<216x128xbf16, #tpu.memory_space<any>>) target(%112 : memref<216x128xbf16, #tpu.memory_space<vmem>>) target_semaphore(%114 : memref<!tpu.dma_semaphore, #tpu.memory_space<semaphore_mem>>)
    } else {
    }
    %24 = arith.index_cast %9 : i32 to index
    %c0 = arith.constant 0 : index
    %c0_11 = arith.constant 0 : index
    %25 = vector.load %arg9[%24, %c0, %c0_11] : memref<2x216x128xbf16, #tpu.memory_space<vmem>>, vector<1x216x128xbf16>
    %26 = vector.shape_cast %25 : vector<1x216x128xbf16> to vector<216x128xbf16>
    %cst = arith.constant 0.000000e+00 : f32
    %27 = vector.broadcast %cst : f32 to vector<178x128xf32>
    %28 = vector.extract_strided_slice %26 {offsets = [0, 0], sizes = [178, 128], strides = [1, 1]} : vector<216x128xbf16> to vector<178x128xbf16>
    %29 = vector.extract_strided_slice %26 {offsets = [1, 0], sizes = [178, 128], strides = [1, 1]} : vector<216x128xbf16> to vector<178x128xbf16>
    %30 = vector.extract_strided_slice %26 {offsets = [2, 0], sizes = [178, 128], strides = [1, 1]} : vector<216x128xbf16> to vector<178x128xbf16>
    %31 = tpu.concatenate %28, %29, %30 in 1 : vector<178x128xbf16>, vector<178x128xbf16>, vector<178x128xbf16> -> vector<178x384xbf16>
    %c0_12 = arith.constant 0 : index
    %c0_13 = arith.constant 0 : index
    %c0_14 = arith.constant 0 : index
    %32 = vector.load %arg3[%c0_12, %c0_13, %c0_14] : memref<3x384x128xbf16, #tpu.memory_space<vmem>>, vector<1x384x128xbf16>
    %33 = vector.shape_cast %32 : vector<1x384x128xbf16> to vector<384x128xbf16>
    %cst_15 = arith.constant dense<0.000000e+00> : vector<178x128xf32>
    %34 = tpu.matmul %31, %33, %cst_15 {dimension_numbers = #tpu.dot_dimension_numbers<[1], [0], [0], [1], [0, 0, 1, 1], [], []>} : vector<178x384xbf16>, vector<384x128xbf16>, vector<178x128xf32> -> vector<178x128xf32>
    %35 = arith.addf %27, %34 : vector<178x128xf32>
    %36 = vector.extract_strided_slice %26 {offsets = [18, 0], sizes = [178, 128], strides = [1, 1]} : vector<216x128xbf16> to vector<178x128xbf16>
    %37 = vector.extract_strided_slice %26 {offsets = [19, 0], sizes = [178, 128], strides = [1, 1]} : vector<216x128xbf16> to vector<178x128xbf16>
    %38 = vector.extract_strided_slice %26 {offsets = [20, 0], sizes = [178, 128], strides = [1, 1]} : vector<216x128xbf16> to vector<178x128xbf16>
    %39 = tpu.concatenate %36, %37, %38 in 1 : vector<178x128xbf16>, vector<178x128xbf16>, vector<178x128xbf16> -> vector<178x384xbf16>
    %c1 = arith.constant 1 : index
    %c0_16 = arith.constant 0 : index
    %c0_17 = arith.constant 0 : index
    %40 = vector.load %arg3[%c1, %c0_16, %c0_17] : memref<3x384x128xbf16, #tpu.memory_space<vmem>>, vector<1x384x128xbf16>
    %41 = vector.shape_cast %40 : vector<1x384x128xbf16> to vector<384x128xbf16>
    %cst_18 = arith.constant dense<0.000000e+00> : vector<178x128xf32>
    %42 = tpu.matmul %39, %41, %cst_18 {dimension_numbers = #tpu.dot_dimension_numbers<[1], [0], [0], [1], [0, 0, 1, 1], [], []>} : vector<178x384xbf16>, vector<384x128xbf16>, vector<178x128xf32> -> vector<178x128xf32>
    %43 = arith.addf %35, %42 : vector<178x128xf32>
    %44 = vector.extract_strided_slice %26 {offsets = [36, 0], sizes = [178, 128], strides = [1, 1]} : vector<216x128xbf16> to vector<178x128xbf16>
    %45 = vector.extract_strided_slice %26 {offsets = [37, 0], sizes = [178, 128], strides = [1, 1]} : vector<216x128xbf16> to vector<178x128xbf16>
    %46 = vector.extract_strided_slice %26 {offsets = [38, 0], sizes = [178, 128], strides = [1, 1]} : vector<216x128xbf16> to vector<178x128xbf16>
    %47 = tpu.concatenate %44, %45, %46 in 1 : vector<178x128xbf16>, vector<178x128xbf16>, vector<178x128xbf16> -> vector<178x384xbf16>
    %c2 = arith.constant 2 : index
    %c0_19 = arith.constant 0 : index
    %c0_20 = arith.constant 0 : index
    %48 = vector.load %arg3[%c2, %c0_19, %c0_20] : memref<3x384x128xbf16, #tpu.memory_space<vmem>>, vector<1x384x128xbf16>
    %49 = vector.shape_cast %48 : vector<1x384x128xbf16> to vector<384x128xbf16>
    %cst_21 = arith.constant dense<0.000000e+00> : vector<178x128xf32>
    %50 = tpu.matmul %47, %49, %cst_21 {dimension_numbers = #tpu.dot_dimension_numbers<[1], [0], [0], [1], [0, 0, 1, 1], [], []>} : vector<178x384xbf16>, vector<384x128xbf16>, vector<178x128xf32> -> vector<178x128xf32>
    %51 = arith.addf %43, %50 : vector<178x128xf32>
    %c0_22 = arith.constant 0 : index
    %c0_23 = arith.constant 0 : index
    %52 = vector.load %arg4[%c0_22, %c0_23] : memref<1x128xf32, #tpu.memory_space<vmem>>, vector<1x128xf32>
    %53 = vector.broadcast %52 : vector<1x128xf32> to vector<178x128xf32>
    %54 = arith.addf %51, %53 : vector<178x128xf32>
    %cst_24 = arith.constant 0.000000e+00 : f32
    %55 = vector.broadcast %cst_24 : f32 to vector<178x128xf32>
    %56 = arith.maximumf %54, %55 : vector<178x128xf32>
    %c0_25 = arith.constant 0 : index
    %c0_26 = arith.constant 0 : index
    %c0_27 = arith.constant 0 : index
    %57 = vector.load %arg7[%c0_25, %c0_26, %c0_27] : memref<1x178x1xf32, #tpu.memory_space<vmem>>, vector<1x178x1xf32>
    %58 = vector.shape_cast %57 : vector<1x178x1xf32> to vector<178x1xf32>
    %59 = vector.broadcast %58 : vector<178x1xf32> to vector<178x128xf32>
    %60 = arith.mulf %56, %59 : vector<178x128xf32>
    %cst_28 = arith.constant 0.000000e+00 : bf16
    %61 = vector.broadcast %cst_28 : bf16 to vector<1x128xbf16>
    %c0_29 = arith.constant 0 : index
    %c0_30 = arith.constant 0 : index
    %62 = vector.load %arg10[%c0_29, %c0_30] : memref<180x128xbf16, #tpu.memory_space<vmem>>, vector<1x128xbf16>
    tpu.vector_store %arg10[%c0_29, %c0_30], %61 {strides = array<i32>} : memref<180x128xbf16, #tpu.memory_space<vmem>>, vector<1x128xbf16>,
    %63 = arith.truncf %60 : vector<178x128xf32> to vector<178x128xbf16>
    %c1_31 = arith.constant 1 : index
    %c0_32 = arith.constant 0 : index
    %64 = vector.load %arg10[%c1_31, %c0_32] : memref<180x128xbf16, #tpu.memory_space<vmem>>, vector<178x128xbf16>
    tpu.vector_store %arg10[%c1_31, %c0_32], %63 {strides = array<i32>} : memref<180x128xbf16, #tpu.memory_space<vmem>>, vector<178x128xbf16>,
    %c179 = arith.constant 179 : index
    %c0_33 = arith.constant 0 : index
    %65 = vector.load %arg10[%c179, %c0_33] : memref<180x128xbf16, #tpu.memory_space<vmem>>, vector<1x128xbf16>
    tpu.vector_store %arg10[%c179, %c0_33], %61 {strides = array<i32>} : memref<180x128xbf16, #tpu.memory_space<vmem>>, vector<1x128xbf16>,
    %66 = vector.extract_strided_slice %26 {offsets = [37, 0], sizes = [142, 128], strides = [1, 1]} : vector<216x128xbf16> to vector<142x128xbf16>
    %67 = arith.extf %66 : vector<142x128xbf16> to vector<142x128xf32>
    %cst_34 = arith.constant 0.000000e+00 : f32
    %68 = vector.broadcast %cst_34 : f32 to vector<142x128xf32>
    %c0_35 = arith.constant 0 : index
    %c0_36 = arith.constant 0 : index
    %69 = vector.load %arg10[%c0_35, %c0_36] : memref<180x128xbf16, #tpu.memory_space<vmem>>, vector<142x128xbf16>
    %c1_37 = arith.constant 1 : index
    %c0_38 = arith.constant 0 : index
    %70 = vector.load %arg10[%c1_37, %c0_38] : memref<180x128xbf16, #tpu.memory_space<vmem>>, vector<142x128xbf16>
    %c2_39 = arith.constant 2 : index
    %c0_40 = arith.constant 0 : index
    %71 = vector.load %arg10[%c2_39, %c0_40] : memref<180x128xbf16, #tpu.memory_space<vmem>>, vector<142x128xbf16>
    %72 = tpu.concatenate %69, %70, %71 in 1 : vector<142x128xbf16>, vector<142x128xbf16>, vector<142x128xbf16> -> vector<142x384xbf16>
    %c0_41 = arith.constant 0 : index
    %c0_42 = arith.constant 0 : index
    %c0_43 = arith.constant 0 : index
    %73 = vector.load %arg5[%c0_41, %c0_42, %c0_43] : memref<3x384x128xbf16, #tpu.memory_space<vmem>>, vector<1x384x128xbf16>
    %74 = vector.shape_cast %73 : vector<1x384x128xbf16> to vector<384x128xbf16>
    %cst_44 = arith.constant dense<0.000000e+00> : vector<142x128xf32>
    %75 = tpu.matmul %72, %74, %cst_44 {dimension_numbers = #tpu.dot_dimension_numbers<[1], [0], [0], [1], [0, 0, 1, 1], [], []>} : vector<142x384xbf16>, vector<384x128xbf16>, vector<142x128xf32> -> vector<142x128xf32>
    %76 = arith.addf %68, %75 : vector<142x128xf32>
    %c18 = arith.constant 18 : index
    %c0_45 = arith.constant 0 : index
    %77 = vector.load %arg10[%c18, %c0_45] : memref<180x128xbf16, #tpu.memory_space<vmem>>, vector<142x128xbf16>
    %c19 = arith.constant 19 : index
    %c0_46 = arith.constant 0 : index
    %78 = vector.load %arg10[%c19, %c0_46] : memref<180x128xbf16, #tpu.memory_space<vmem>>, vector<142x128xbf16>
    %c20 = arith.constant 20 : index
    %c0_47 = arith.constant 0 : index
    %79 = vector.load %arg10[%c20, %c0_47] : memref<180x128xbf16, #tpu.memory_space<vmem>>, vector<142x128xbf16>
    %80 = tpu.concatenate %77, %78, %79 in 1 : vector<142x128xbf16>, vector<142x128xbf16>, vector<142x128xbf16> -> vector<142x384xbf16>
    %c1_48 = arith.constant 1 : index
    %c0_49 = arith.constant 0 : index
    %c0_50 = arith.constant 0 : index
    %81 = vector.load %arg5[%c1_48, %c0_49, %c0_50] : memref<3x384x128xbf16, #tpu.memory_space<vmem>>, vector<1x384x128xbf16>
    %82 = vector.shape_cast %81 : vector<1x384x128xbf16> to vector<384x128xbf16>
    %cst_51 = arith.constant dense<0.000000e+00> : vector<142x128xf32>
    %83 = tpu.matmul %80, %82, %cst_51 {dimension_numbers = #tpu.dot_dimension_numbers<[1], [0], [0], [1], [0, 0, 1, 1], [], []>} : vector<142x384xbf16>, vector<384x128xbf16>, vector<142x128xf32> -> vector<142x128xf32>
    %84 = arith.addf %76, %83 : vector<142x128xf32>
    %c36 = arith.constant 36 : index
    %c0_52 = arith.constant 0 : index
    %85 = vector.load %arg10[%c36, %c0_52] : memref<180x128xbf16, #tpu.memory_space<vmem>>, vector<142x128xbf16>
    %c37 = arith.constant 37 : index
    %c0_53 = arith.constant 0 : index
    %86 = vector.load %arg10[%c37, %c0_53] : memref<180x128xbf16, #tpu.memory_space<vmem>>, vector<142x128xbf16>
    %c38 = arith.constant 38 : index
    %c0_54 = arith.constant 0 : index
    %87 = vector.load %arg10[%c38, %c0_54] : memref<180x128xbf16, #tpu.memory_space<vmem>>, vector<142x128xbf16>
    %88 = tpu.concatenate %85, %86, %87 in 1 : vector<142x128xbf16>, vector<142x128xbf16>, vector<142x128xbf16> -> vector<142x384xbf16>
    %c2_55 = arith.constant 2 : index
    %c0_56 = arith.constant 0 : index
    %c0_57 = arith.constant 0 : index
    %89 = vector.load %arg5[%c2_55, %c0_56, %c0_57] : memref<3x384x128xbf16, #tpu.memory_space<vmem>>, vector<1x384x128xbf16>
    %90 = vector.shape_cast %89 : vector<1x384x128xbf16> to vector<384x128xbf16>
    %cst_58 = arith.constant dense<0.000000e+00> : vector<142x128xf32>
    %91 = tpu.matmul %88, %90, %cst_58 {dimension_numbers = #tpu.dot_dimension_numbers<[1], [0], [0], [1], [0, 0, 1, 1], [], []>} : vector<142x384xbf16>, vector<384x128xbf16>, vector<142x128xf32> -> vector<142x128xf32>
    %92 = arith.addf %84, %91 : vector<142x128xf32>
    %c0_59 = arith.constant 0 : index
    %c0_60 = arith.constant 0 : index
    %93 = vector.load %arg6[%c0_59, %c0_60] : memref<1x128xf32, #tpu.memory_space<vmem>>, vector<1x128xf32>
    %94 = vector.broadcast %93 : vector<1x128xf32> to vector<142x128xf32>
    %95 = arith.addf %92, %94 : vector<142x128xf32>
    %96 = arith.addf %95, %67 : vector<142x128xf32>
    %cst_61 = arith.constant 0.000000e+00 : f32
    %97 = vector.broadcast %cst_61 : f32 to vector<142x128xf32>
    %98 = arith.maximumf %96, %97 : vector<142x128xf32>
    %c0_62 = arith.constant 0 : index
    %c0_63 = arith.constant 0 : index
    %c0_64 = arith.constant 0 : index
    %99 = vector.load %arg8[%c0_62, %c0_63, %c0_64] : memref<1x144x128xf32, #tpu.memory_space<vmem>>, vector<1x142x128xf32>
    %100 = vector.shape_cast %99 : vector<1x142x128xf32> to vector<142x128xf32>
    %101 = vector.shape_cast %98 : vector<142x128xf32> to vector<1x142x128xf32>
    tpu.vector_store %arg8[%c0_62, %c0_63, %c0_64], %101 {strides = array<i32>} : memref<1x144x128xf32, #tpu.memory_space<vmem>>, vector<1x142x128xf32>,
    %cst_65 = arith.constant 0.000000e+00 : f32
    %102 = vector.broadcast %cst_65 : f32 to vector<2x128xf32>
    %c0_66 = arith.constant 0 : index
    %c142 = arith.constant 142 : index
    %c0_67 = arith.constant 0 : index
    %103 = vector.load %arg8[%c0_66, %c142, %c0_67] : memref<1x144x128xf32, #tpu.memory_space<vmem>>, vector<1x2x128xf32>
    %104 = vector.shape_cast %103 : vector<1x2x128xf32> to vector<2x128xf32>
    %105 = vector.shape_cast %102 : vector<2x128xf32> to vector<1x2x128xf32>
    tpu.vector_store %arg8[%c0_66, %c142, %c0_67], %105 {strides = array<i32>} : memref<1x144x128xf32, #tpu.memory_space<vmem>>, vector<1x2x128xf32>,
    return
  }
  func.func @transform_1(%arg0: i32, %arg1: i32) -> (i32, i32, i32) {
    %c0_i32 = arith.constant 0 : i32
    %c0_i32_0 = arith.constant 0 : i32
    %c0_i32_1 = arith.constant 0 : i32
    %c0_i32_2 = arith.constant 0 : i32
    return %c0_i32, %c0_i32_0, %c0_i32_1 : i32, i32, i32
  }
  func.func @transform_2(%arg0: i32, %arg1: i32) -> (i32, i32) {
    %c0_i32 = arith.constant 0 : i32
    %c0_i32_0 = arith.constant 0 : i32
    %c0_i32_1 = arith.constant 0 : i32
    return %c0_i32, %c0_i32_0 : i32, i32
  }
  func.func @transform_3(%arg0: i32, %arg1: i32) -> (i32, i32, i32) {
    %c0_i32 = arith.constant 0 : i32
    %c0_i32_0 = arith.constant 0 : i32
    %c0_i32_1 = arith.constant 0 : i32
    %c0_i32_2 = arith.constant 0 : i32
    return %c0_i32, %c0_i32_0, %c0_i32_1 : i32, i32, i32
  }
  func.func @transform_4(%arg0: i32, %arg1: i32) -> (i32, i32) {
    %c0_i32 = arith.constant 0 : i32
    %c0_i32_0 = arith.constant 0 : i32
    %c0_i32_1 = arith.constant 0 : i32
    return %c0_i32, %c0_i32_0 : i32, i32
  }
  func.func @transform_5(%arg0: i32, %arg1: i32) -> (i32, i32, i32) {
    %c0_i32 = arith.constant 0 : i32
    %c0_i32_0 = arith.constant 0 : i32
    %c0_i32_1 = arith.constant 0 : i32
    return %arg1, %c0_i32, %c0_i32_0 : i32, i32, i32
  }
  func.func @transform_6(%arg0: i32, %arg1: i32) -> (i32, i32, i32) {
    %c0_i32 = arith.constant 0 : i32
    %c0_i32_0 = arith.constant 0 : i32
    return %arg0, %arg1, %c0_i32 : i32, i32, i32
  }
}

</mosaic_0001>

<bundles_post_ra>
// kernel: block2d_forward.1
= control target key start
LH: loop header
LB: loop body
LE: loop exit
PB: predicated region body
PF: predicated region fallthrough
CT: control target
= control target key end

     0   :  { %s6696_s21 = smov 0   ;;  %s6698_s22 = smov 0   ;;  %s8708_s0 = inlined_call_operand.vmem [shape: bf16[2,360,128], index: 0, kind: input, shape index: {}]   ;;  %s8709_s1 = inlined_call_operand.vmem [shape: bf16[3,384,128], index: 1, kind: input, shape index: {}]   ;;  %s8710_s2 = inlined_call_operand.vmem [shape: f32[1,128], index: 2, kind: input, shape index: {}]   ;;  %s8711_s3 = inlined_call_operand.vmem [shape: bf16[3,384,128], index: 3, kind: input, shape index: {}]   ;;  %s8712_s4 = inlined_call_operand.vmem [shape: f32[1,128], index: 4, kind: input, shape index: {}]   ;;  %s8713_s5 = inlined_call_operand.vmem [shape: f32[2,178,1], index: 5, kind: input, shape index: {}]   ;;  %s8714_s6 = inlined_call_operand.vmem [shape: f32[2,288,128], index: 6, kind: output, shape index: {}]  }
   0x1   :  { %s6700_s23 = smov 0   ;;  %s6702_s24 = smov 0  }
   0x2   :  { %s6704_s25 = smov 0  }
   0x3 LB: > { %s25_s26 = sadd.s32 1, %s6648_s23  ;;  %s28_s27 = sadd.s32 1, %s6652_s24  ;;  %s6656_s25 = sphi %s6704_s25, %s16_s25   ;;  %s6652_s24 = sphi %s6702_s24, %s8724_s24   ;;  %s6648_s23 = sphi %s6700_s23, %s8723_s23   ;;  %s6644_s22 = sphi %s6698_s22, %s8722_s22   ;;  %s6640_s21 = sphi %s6696_s21, %s8721_s21  }
   0x4   : > { %p26_p0 = scmp.ge.s32.totalorder %s25_s26, 2  ;;  %p4937_p1 = scmp.ge.s32.totalorder %s6656_s25, 1 }
   0x5   : > { %p202_p2 = scmp.lt.s32.totalorder %s6656_s25, 5 }
   0x6   : > { %s8726_s26 = smov (%p26_p0, %s25_s26), 0  ;;  %s8728_s27 = smov (!%p26_p0, %s28_s27), %s6652_s24 }
   0x7   : > { %p203_p3 = pnand %p4937_p1, %p202_p2  ;;  %p30_p4 = scmp.ge.s32.totalorder %s8728_s27, 2 }
   0x8   : > { %p234_p5 = scmp.lt.s32.totalorder (!%p203_p3), %s6640_s21, 1  ;;  %s239_s28 = smul.u32 (!%p203_p3), 18, %s6640_s21 }
   0x9   : > { %s8730_s27 = smov (%p30_p4, %s8728_s27), 0  ;;  %206 = sbr.rel (%p203_p3) target bundleno = 1033 (0x409), region = 40 }
   0xa   : > { %p240_p6 = scmp.lt.s32.totalorder (!%p203_p3), %s6644_s22, 1  ;;  %p242_p7 = scmp.lt.s32.totalorder (!%p203_p3), %s239_s28, 35 }
   0xb   : > { %s251_s9 = ssub.s32 (!%p203_p3), 0, %s6640_s21  ;;  %p250_p8 = scmp.lt.s32.totalorder (!%p203_p3), %s6640_s21, 0 }
   0xc   : > { %s4940_s13 = smin.u32 (!%p203_p3), %s6640_s21, %s251_s9  ;;  %p4943_p10 = scmp.ne.s32.totalorder (!%p203_p3), %s6640_s21, 0 }
   0xd   : > { %s253_s14 = sand.u32 (!%p203_p3), 1, %s4940_s13  }
   0xe   : > { %s254_s16 = ssub.s32 (!%p203_p3), 0, %s253_s14 }
  0x10   : > { %s235_s29 = scalar_select %p234_p5, %s6640_s21, 1 }
  0x11   : > { %s241_s30 = scalar_select %p240_p6, %s6644_s22, 1 }
  0x12   : > { %s6363_s7 = smul.u32 184, %s235_s29  ;;  %s8732_s28 = smov (!%p242_p7, %s239_s28), 35 }
  0x13   : > { %s6364_s8 = smul.u32 36, %s241_s30  ;;  %s8734_s16 = smov (!%p250_p8, %s254_s16), %s253_s14 }
  0x14   : > { %s6739_s12 = scalar_lea.vmem %s8713_s5, %s6363_s7  ;;  %p4942_p9 = scmp.lt.s32.totalorder %s8734_s16, 0 }
  0x15   : > { %s245_s15 = sadd.s32 %s6364_s8, %s8732_s28  ;;  %s260_s29 = sadd.s32 2, %s8734_s16 }
  0x16   : > { %s4939_s17 = sshll.u32 %s245_s15, 3  ;;  %s8736_s29 = smov (!%p4942_p9, %s260_s29), %s8734_s16 }
  0x17   : > { %s6746_s20 = scalar_lea.vmem %s8714_s6, %s4939_s17  ;;  %265 = sbr.rel (%p4943_p10) target bundleno = 36 (0x24), region = 44 }
  0x18   : > { %s5360_s30 = smul.u32 (!%p4943_p10), 180, %s6644_s22 }
  0x1a   : > { %s268_s28 = scalar_lea.vmem (!%p4943_p10), %s8708_s0, %s5360_s30 }
  0x1b   : > { %v306_v0 = vld [vmem:[%s268_s28] sm:$0xff] (!%p4943_p10)  ;;  %v308_v1 = vld [vmem:[%s268_s28 + $0x8] sm:$0xff] (!%p4943_p10)  ;;  %v310_v2 = vld [vmem:[%s268_s28 + $0x10] sm:$0xff] (!%p4943_p10) }
  0x1c   : > { %307 = vst [vmem:[#allocation2] sm:$0xff] (!%p4943_p10), %v306_v0  ;;  %309 = vst [vmem:[#allocation2 + $0x8] sm:$0xff] (!%p4943_p10), %v308_v1  ;;  %v312_v3 = vld [vmem:[%s268_s28 + $0x18] sm:$0xff] (!%p4943_p10)  ;;  %v314_v4 = vld [vmem:[%s268_s28 + $0x20] sm:$0xff] (!%p4943_p10) }
  0x1d   : > { %311 = vst [vmem:[#allocation2 + $0x10] sm:$0xff] (!%p4943_p10), %v310_v2  ;;  %v316_v5 = vld [vmem:[%s268_s28 + $0x28] sm:$0xff] (!%p4943_p10)  ;;  %313 = vst [vmem:[#allocation2 + $0x18] sm:$0xff] (!%p4943_p10), %v312_v3  ;;  %v318_v6 = vld [vmem:[%s268_s28 + $0x30] sm:$0xff] (!%p4943_p10) }
  0x1e   : > { %315 = vst [vmem:[#allocation2 + $0x20] sm:$0xff] %v314_v4  ;;  %317 = vst [vmem:[#allocation2 + $0x28] sm:$0xff] %v316_v5  ;;  %v320_v7 = vld [vmem:[%s268_s28 + $0x38] sm:$0xff]  ;;  %v322_v8 = vld [vmem:[%s268_s28 + $0x40] sm:$0xff] }
  0x1f   : > { %319 = vst [vmem:[#allocation2 + $0x30] sm:$0xff] %v318_v6  ;;  %321 = vst [vmem:[#allocation2 + $0x38] sm:$0xff] %v320_v7  ;;  %v324_v9 = vld [vmem:[%s268_s28 + $0x48] sm:$0xff]  ;;  %v326_v10 = vld [vmem:[%s268_s28 + $0x50] sm:$0xff] }
  0x20   : > { %323 = vst [vmem:[#allocation2 + $0x40] sm:$0xff] %v322_v8  ;;  %v328_v11 = vld [vmem:[%s268_s28 + $0x58] sm:$0xff]  ;;  %325 = vst [vmem:[#allocation2 + $0x48] sm:$0xff] %v324_v9  ;;  %v330_v12 = vld [vmem:[%s268_s28 + $0x60] sm:$0xff] }
  0x21   : > { %327 = vst [vmem:[#allocation2 + $0x50] sm:$0xff] %v326_v10  ;;  %329 = vst [vmem:[#allocation2 + $0x58] sm:$0xff] %v328_v11  ;;  %v4945_v13 = vld [vmem:[%s268_s28 + $0x68] sm:$0xf] }
  0x22   : > { %331 = vst [vmem:[#allocation2 + $0x60] sm:$0xff] %v330_v12  ;;  %342 = vst [vmem:[#allocation2 + $0x68] sm:$0xf] %v4945_v13 }
  0x23   : > { %346 = vsyncadd [#allocation4], 1728 }
  0x24 PF: > { %s5361_s8 = smul.u32 108, %s8736_s29  ;;  %s350_s11 = scalar_lea.sflag [#allocation4], %s8736_s29 }
  0x26   : > { %s6756_s10 = scalar_lea.vmem [#allocation2], %s5361_s8 }
  0x27   : > { %6636 = dma.done.wait %s350_s11, 1728 }
  0x28   : > { %6637 = vsyncadd %s350_s11, 4294965568  ;;  %s355_s13 = sadd.s32 1, %s6640_s21 }
  0x29   : > { %p4947_p11 = scmp.ge.s32.totalorder %s355_s13, 2 }
  0x2a   : > { %s360_s14 = ssub.s32 (!%p4947_p11), 1, %s8736_s29  ;;  %s361_s15 = smul.u32 (!%p4947_p11), 144, %s355_s13 }
  0x2b   : > { %359 = sbr.rel (%p4947_p11) target bundleno = 58 (0x3a), region = 85 }
  0x2c   : > { %s364_s16 = smul.u32 (!%p4947_p11), 45, %s6644_s22  ;;  %s362_s17 = sshra.s32 (!%p4947_p11), %s361_s15, 3 }
  0x2d   : > { %s5362_s18 = smul.u32 (!%p4947_p11), 108, %s360_s14  ;;  %s371_s22 = scalar_lea.sflag (!%p4947_p11), [#allocation4], %s360_s14 }
  0x2e   : > { %s365_s19 = sadd.s32 (!%p4947_p11), %s364_s16, %s362_s17 }
  0x2f   : > { %s4948_s30 = sshll.u32 (!%p4947_p11), %s365_s19, 2  ;;  %s370_s21 = scalar_lea.vmem (!%p4947_p11), [#allocation2], %s5362_s18 }
  0x30   : > { %s367_s28 = scalar_lea.vmem (!%p4947_p11), %s8708_s0, %s4948_s30 }
  0x31   : > { %v409_v14 = vld [vmem:[%s367_s28] sm:$0xff] (!%p4947_p11)  ;;  %v411_v15 = vld [vmem:[%s367_s28 + $0x8] sm:$0xff] (!%p4947_p11)  ;;  %v413_v16 = vld [vmem:[%s367_s28 + $0x10] sm:$0xff] (!%p4947_p11) }
  0x32   : > { %410 = vst [vmem:[%s370_s21] sm:$0xff] %v409_v14  ;;  %412 = vst [vmem:[%s370_s21 + $0x8] sm:$0xff] %v411_v15  ;;  %v415_v17 = vld [vmem:[%s367_s28 + $0x18] sm:$0xff]  ;;  %v417_v18 = vld [vmem:[%s367_s28 + $0x20] sm:$0xff] }
  0x33   : > { %414 = vst [vmem:[%s370_s21 + $0x10] sm:$0xff] %v413_v16  ;;  %v419_v19 = vld [vmem:[%s367_s28 + $0x28] sm:$0xff]  ;;  %416 = vst [vmem:[%s370_s21 + $0x18] sm:$0xff] %v415_v17  ;;  %v421_v20 = vld [vmem:[%s367_s28 + $0x30] sm:$0xff] }
  0x34   : > { %418 = vst [vmem:[%s370_s21 + $0x20] sm:$0xff] %v417_v18  ;;  %420 = vst [vmem:[%s370_s21 + $0x28] sm:$0xff] %v419_v19  ;;  %v423_v21 = vld [vmem:[%s367_s28 + $0x38] sm:$0xff]  ;;  %v425_v22 = vld [vmem:[%s367_s28 + $0x40] sm:$0xff] }
  0x35   : > { %422 = vst [vmem:[%s370_s21 + $0x30] sm:$0xff] %v421_v20  ;;  %424 = vst [vmem:[%s370_s21 + $0x38] sm:$0xff] %v423_v21  ;;  %v427_v23 = vld [vmem:[%s367_s28 + $0x48] sm:$0xff]  ;;  %v429_v24 = vld [vmem:[%s367_s28 + $0x50] sm:$0xff] }
  0x36   : > { %426 = vst [vmem:[%s370_s21 + $0x40] sm:$0xff] %v425_v22  ;;  %v431_v25 = vld [vmem:[%s367_s28 + $0x58] sm:$0xff]  ;;  %428 = vst [vmem:[%s370_s21 + $0x48] sm:$0xff] %v427_v23  ;;  %v433_v26 = vld [vmem:[%s367_s28 + $0x60] sm:$0xff] }
  0x37   : > { %430 = vst [vmem:[%s370_s21 + $0x50] sm:$0xff] %v429_v24  ;;  %432 = vst [vmem:[%s370_s21 + $0x58] sm:$0xff] %v431_v25  ;;  %v4950_v27 = vld [vmem:[%s367_s28 + $0x68] sm:$0xf] }
  0x38   : > { %434 = vst [vmem:[%s370_s21 + $0x60] sm:$0xff] %v433_v26  ;;  %4951 = vst [vmem:[%s370_s21 + $0x68] sm:$0xf] %v4950_v27 }
  0x39   : > { %449 = vsyncadd %s371_s22, 1728 }
  0x3a PF: > { %v6410_v28 = vld [vmem:[%s8709_s1 + $0x100] sm:$0xff]   ;;  %v6413_v31 = vld [vmem:[%s8709_s1 + $0x108] sm:$0xff]   ;;  %v6416_v34 = vld [vmem:[%s8709_s1 + $0x110] sm:$0xff]   ;;  %vm655_vm0 = vcmask 1046528   ;;  %vm547_vm1 = vsmask.f32 7424 }
  0x3b   : > { %v6411_v29 = vld [vmem:[%s8709_s1 + $0x140] sm:$0xff]   ;;  %5386 = vmatprep.subr.bf16.mxu0 %v6410_v28  ;;  %v6414_v32 = vld [vmem:[%s8709_s1 + $0x148] sm:$0xff]   ;;  %v6417_v35 = vld [vmem:[%s8709_s1 + $0x150] sm:$0xff]   ;;  %vm1762_vm2 = vcmask 1045504   ;;  %vm2506_vm3 = vsmask.f32 256 }
  0x3c   : > { %v6412_v30 = vld [vmem:[%s8709_s1 + $0xc0] sm:$0xff]   ;;  %5971 = vmatprep.subr.bf16.mxu1 %v6411_v29  ;;  %v6415_v33 = vld [vmem:[%s8709_s1 + $0xc8] sm:$0xff]   ;;  %v6418_v36 = vld [vmem:[%s8709_s1 + $0xd0] sm:$0xff]   ;;  %vm2505_vm4 = vcmask 1040384   ;;  %vm6660_vm6 = vmmov 0   ;;  %vm2811_vm8 = vcmask 1043456  }
  0x3d   : > { %5387 = vmatpush3.bf16.msra.mxu0 %v6412_v30  ;;  %5972 = vmatpush3.bf16.msra.mxu1 %v6411_v29  ;;  %v6419_v37 = vld [vmem:[%s8709_s1 + $0x118] sm:$0xff]   ;;  %v6422_v40 = vld [vmem:[%s8709_s1 + $0x120] sm:$0xff]   ;;  %v6425_v43 = vld [vmem:[%s8709_s1 + $0x128] sm:$0xff]   ;;  %vm2581_vm7 = vsmask.f32 4368  ;;  %vm2838_vm12 = vcmask 1041408  }
  0x3e   : > { %5388 = vmatprep.subr.bf16.mxu0 %v6413_v31  ;;  %5973 = vmatprep.subr.bf16.mxu1 %v6414_v32  ;;  %v6420_v38 = vld [vmem:[%s8709_s1 + $0x158] sm:$0xff]   ;;  %v6423_v41 = vld [vmem:[%s8709_s1 + $0x160] sm:$0xff]   ;;  %v6426_v44 = vld [vmem:[%s8709_s1 + $0x168] sm:$0xff]   ;;  %vm2812_vm9 = vsmask.f32 7938  ;;  %vm2844_vm15 = vcmask 1041409  }
  0x3f   : > { %v6421_v39 = vld [vmem:[%s8709_s1 + $0xd8] sm:$0xff]   ;;  %v6424_v42 = vld [vmem:[%s8709_s1 + $0xe0] sm:$0xff]   ;;  %v6427_v45 = vld [vmem:[%s8709_s1 + $0xe8] sm:$0xff]   ;;  %vm2839_vm13 = vsmask.f32 1280 }
  0x40   : > { %v6428_v46 = vld [vmem:[%s8709_s1 + $0x130] sm:$0xff]   ;;  %v6431_v49 = vld [vmem:[%s8709_s1 + $0x138] sm:$0xff]   ;;  %v6438_v3 = vld [vmem:[%s8709_s1 + $0x40] sm:$0xff]  }
  0x41   : > { %5389 = vmatpush3.bf16.msra.mxu0 %v6415_v33  ;;  %5974 = vmatpush3.bf16.msra.mxu1 %v6414_v32  ;;  %v6429_v47 = vld [vmem:[%s8709_s1 + $0x170] sm:$0xff]   ;;  %v6432_v50 = vld [vmem:[%s8709_s1 + $0x178] sm:$0xff]   ;;  %v6439_v14 = vld [vmem:[%s8709_s1] sm:$0xff]  }
  0x42   : > { %5390 = vmatprep.subr.bf16.mxu0 %v6416_v34  ;;  %5975 = vmatprep.subr.bf16.mxu1 %v6417_v35  ;;  %v6430_v48 = vld [vmem:[%s8709_s1 + $0xf0] sm:$0xff]   ;;  %v6842_v52 = vld [vmem:[%s6756_s10 + $0x18] sm:$0xff]   ;;  %vm2507_vm5 = vmand %vm2505_vm4, %vm2506_vm3 }
  0x43   : > { %v6839_v51 = vld [vmem:[%s6756_s10 + $0x10] sm:$0xff]   ;;  %v6845_v53 = vld [vmem:[%s6756_s10 + $0x8] sm:$0xff]   ;;  %v6848_v54 = vld [vmem:[%s6756_s10 + $0x20] sm:$0xff]   ;;  %v572_v60 = vshll.u32 %v6842_v52, 16  ;;  %v661_v63 = vrot.slane %v6842_v52, 1  ;;  %v576_v7 = vshrl.u32 %v6842_v52, 16 }
  0x44   : > { %v6433_v55 = vld [vmem:[%s8709_s1 + $0xf8] sm:$0xff]   ;;  %v556_v56 = vshll.u32 %v6845_v53, 16  ;;  %v560_v57 = vshrl.u32 %v6845_v53, 16  ;;  %v564_v58 = vshll.u32 %v6839_v51, 16  ;;  %v568_v59 = vshrl.u32 %v6839_v51, 16  ;;  %v6440_v22 = vld [vmem:[%s8709_s1 + $0x48] sm:$0xff]   ;;  %vm7755_vm10 = vmand %vm2811_vm8, %vm2812_vm9 }
  0x45   : > { %5391 = vmatpush3.bf16.msra.mxu0 %v6418_v36  ;;  %5976 = vmatpush3.bf16.msra.mxu1 %v6417_v35  ;;  %v657_v61 = vrot.slane %v6845_v53, 1  ;;  %v659_v62 = vrot.slane %v6839_v51, 1  ;;  %v663_v2 = vrot.slane %v6848_v54, 1  ;;  %v574_v4 = vrot.slane %v572_v60, 1  ;;  %v6877_v8 = vld [vmem:[%s6756_s10 + $0x28] sm:$0xff]   ;;  %v6890_v17 = vld [vmem:[%s6756_s10 + $0x30] sm:$0xff]   ;;  %vm7761_vm11 = vmor %vm2506_vm3, %vm2581_vm7 }
  0x46   : > { %5392 = vmatprep.subr.bf16.mxu0 %v6419_v37  ;;  %5977 = vmatprep.subr.bf16.mxu1 %v6420_v38  ;;  %v6861_v0 = vrot.slane %v556_v56, 1  ;;  %v566_v1 = vrot.slane %v564_v58, 1  ;;  %v580_v16 = vshll.u32 %v6848_v54, 16  ;;  %v665_v26 = vrot.slane %v6877_v8, 1  ;;  %v6910_v30 = vld [vmem:[%s6756_s10 + $0x38] sm:$0xff]   ;;  %v6913_v31 = vld [vmem:[%s6756_s10 + $0x40] sm:$0xff]   ;;  %vm7933_vm14 = vmand %vm2838_vm12, %vm2839_vm13 }
  0x47   : > { %v6870_v5 = vsel %vm655_vm0, %v657_v61, %v659_v62  ;;  %v6873_v6 = vsel %vm655_vm0, %v659_v62, %v661_v63  ;;  %v6883_v13 = vsel %vm655_vm0, %v661_v63, %v663_v2  ;;  %v578_v15 = vor.u32 %v576_v7, %v574_v4  ;;  %v6442_v35 = vld [vmem:[%s8709_s1 + $0x8] sm:$0xff]   ;;  %v6448_v62 = vld [vmem:[%s8709_s1 + $0x58] sm:$0xff]  }
  0x48   : > { %v562_v9 = vor.u32 %v560_v57, %v6861_v0  ;;  %v570_v10 = vor.u32 %v568_v59, %v566_v1  ;;  %v817_v11 = vrot.slane %v6870_v5, 1  ;;  %v818_v12 = vrot.slane %v6873_v6, 1 }
  0x49   : > { %5393 = vmatpush3.bf16.msra.mxu0 %v6421_v39  ;;  %5978 = vmatpush3.bf16.msra.mxu1 %v6420_v38  ;;  %v822_v21 = vrot.slane %v6883_v13, 1  ;;  %v582_v25 = vrot.slane %v580_v16, 1  ;;  %v584_v28 = vshrl.u32 %v6848_v54, 16  ;;  %v588_v29 = vshll.u32 %v6877_v8, 16  ;;  %v6444_v39 = vld [vmem:[%s8709_s1 + $0x50] sm:$0xff]  }
  0x4a   : > { %5394 = vmatprep.subr.bf16.mxu0 %v6422_v40  ;;  %5979 = vmatprep.subr.bf16.mxu1 %v6423_v41  ;;  %v6893_v18 = vsel %vm547_vm1, %v562_v9, %v566_v1  ;;  %v6896_v19 = vsel %vm547_vm1, %v570_v10, %v574_v4  ;;  %v819_v20 = vsel %vm655_vm0, %v817_v11, %v818_v12  ;;  %v667_v38 = vrot.slane %v6890_v17, 1  ;;  %v6967_v4 = vld [vmem:[%s6756_s10 + $0x58] sm:$0xf]  ;;  %v473_v9 = vld [vmem:[%s6756_s10 + $0x5c] sm:$0xf] }
  0x4b   : > { %v814_v23 = vrot.slane %v6893_v18, 1  ;;  %v815_v24 = vrot.slane %v6896_v19, 1  ;;  %5987 = vmatprep.mubr.bf16.mxu1 %v819_v20  ;;  %v823_v27 = vsel %vm655_vm0, %v818_v12, %v822_v21  ;;  %v6917_v33 = vsel %vm547_vm1, %v578_v15, %v582_v25  ;;  %v6449_v15 = vld [vmem:[%s8709_s1 + $0x18] sm:$0xff]   ;;  %v6452_v20 = vld [vmem:[%s8709_s1 + $0x60] sm:$0xff]  }
  0x4c   : > { %v6920_v34 = vsel %vm655_vm0, %v663_v2, %v665_v26  ;;  %v820_v36 = vrot.slane %v6917_v33, 1  ;;  %v586_v40 = vor.u32 %v584_v28, %v582_v25  ;;  %v671_v58 = vrot.slane %v6913_v31, 1 }
  0x4d   : > { %5395 = vmatpush3.bf16.msra.mxu0 %v6424_v42  ;;  %5980 = vmatpush3.bf16.msra.mxu1 %v6423_v41  ;;  %v816_v32 = vsel %vm655_vm0, %v814_v23, %v815_v24  ;;  %v826_v37 = vrot.slane %v6920_v34, 1  ;;  %v590_v41 = vrot.slane %v588_v29, 1  ;;  %v669_v42 = vrot.slane %v6910_v30, 1 }
  0x4e   : > { %5396 = vmatprep.subr.bf16.mxu0 %v6425_v43  ;;  %5981 = vmatprep.subr.bf16.mxu1 %v6426_v44  ;;  %v592_v43 = vshrl.u32 %v6877_v8, 16  ;;  %v6989_v23 = vcombine.low %v6967_v4, %v473_v9  ;;  %v6467_v9 = vld [vmem:[%s8709_s1 + $0x180] sm:$0xff]   ;;  %vm2845_vm3 = vsmask.f32 7942 }
  0x4f   : > { %1063 = vmatprep.mubr.bf16.mxu0 %v816_v32  ;;  %v6951_v56 = vsel %vm547_vm1, %v586_v40, %v590_v41  ;;  %v6954_v57 = vsel %vm655_vm0, %v667_v38, %v669_v42  ;;  %v6453_v32 = vld [vmem:[%s8709_s1 + $0x20] sm:$0xff]   ;;  %vm2846_vm4 = vmand %vm2844_vm15, %vm2845_vm3 }
  0x50   : > { %v824_v59 = vrot.slane %v6951_v56, 1  ;;  %v834_v60 = vrot.slane %v6954_v57, 1  ;;  %v594_v63 = vor.u32 %v592_v43, %v590_v41  ;;  %v7001_v28 = vrot.slane %v6989_v23, 1 }
  0x51   : > { %5397 = vmatpush3.bf16.msra.mxu0 %v6427_v45  ;;  %5982 = vmatpush3.bf16.msra.mxu1 %v6426_v44  ;;  %v6935_v44 = vld [vmem:[%s6756_s10 + $0x48] sm:$0xff]   ;;  %v821_v45 = vsel %vm655_vm0, %v815_v24, %v820_v36  ;;  %v612_v43 = vshll.u32 %v6913_v31, 16 }
  0x52   : > { %5398 = vmatprep.subr.bf16.mxu0 %v6428_v46  ;;  %5983 = vmatprep.subr.bf16.mxu1 %v6429_v47  ;;  %v827_v46 = vsel %vm655_vm0, %v822_v21, %v826_v37  ;;  %v825_v10 = vsel %vm655_vm0, %v820_v36, %v824_v59  ;;  %v600_v21 = vshrl.u32 %v6890_v17, 16 }
  0x55   : > { %5399 = vmatpush3.bf16.msra.mxu0 %v6430_v48  ;;  %5984 = vmatpush3.bf16.msra.mxu1 %v6429_v47  ;;  %v6940_v47 = vsel %vm655_vm0, %v665_v26, %v667_v38  ;;  %v596_v48 = vshll.u32 %v6890_v17, 16  ;;  %v6997_v26 = vld [vmem:[%s6756_s10 + $0x60] sm:$0xf] }
  0x56   : > { %5400 = vmatprep.subr.bf16.mxu0 %v6431_v49  ;;  %5985 = vmatprep.subr.bf16.mxu1 %v6432_v50  ;;  %v6944_v49 = vld [vmem:[%s6756_s10 + $0x50] sm:$0xff]   ;;  %v7017_v40 = vcombine.low %v6997_v26, %v6997_v26 }
  0x57   : > { %v598_v1 = vrot.slane %v596_v48, 1  ;;  %v6981_v16 = vrot.slane %v6944_v49, 1 }
  0x59   : > { %5401 = vmatpush3.bf16.msra.mxu0 %v6433_v55  ;;  %5986 = vmatpush3.bf16.msra.mxu1 %v6432_v50  ;;  %v830_v50 = vrot.slane %v6940_v47, 1  ;;  %v6445_v55 = vld [vmem:[%s8709_s1 + $0x10] sm:$0xff]   ;;  %v6974_v12 = vsel %vm547_vm1, %v594_v63, %v598_v1  ;;  %v7022_v41 = vsel %vm655_vm0, %v6981_v16, %v7001_v28 }
  0x5a   : > { %5494 = vmatprep.subr.bf16.mxu1 %v6438_v3  ;;  %v6964_v3 = vsel %vm655_vm0, %v669_v42, %v671_v58  ;;  %v608_v42 = vshrl.u32 %v6910_v30, 16 }
  0x5b   : > { %v831_v2 = vsel %vm655_vm0, %v826_v37, %v830_v50  ;;  %v835_v7 = vsel %vm655_vm0, %v830_v50, %v834_v60  ;;  %v838_v11 = vrot.slane %v6964_v3, 1  ;;  %v6456_v50 = vld [vmem:[%s8709_s1 + $0x28] sm:$0xff]  }
  0x5c   : > { %5988 = vmatmul.mubr.bf16.vlgmr.msra.gmra.mrb[0].mxu1 %v823_v27  ;;  %1064 = vmatmul.mubr.bf16.vlgmr.msra.gmra.mrb[0].mxu0 %v6870_v5  ;;  %v828_v27 = vrot.slane %v6974_v12, 1 }
  0x5d   : > { %5495 = vmatpush3.bf16.msra.mxu1 %v6439_v14  ;;  %1071 = vmatprep.mubr.bf16.mxu0 %v821_v45  ;;  %v673_v14 = vrot.slane %v6935_v44, 1  ;;  %v839_v29 = vsel %vm655_vm0, %v834_v60, %v838_v11  ;;  %v6466_v60 = vld [vmem:[%s8709_s1 + $0x1c0] sm:$0xff]  }
  0x5e   : > { %5496 = vmatprep.subr.bf16.mxu1 %v6440_v22  ;;  %5991 = vmatprep.mubr.bf16.mxu1 %v827_v46  ;;  %v604_v22 = vshll.u32 %v6910_v30, 16  ;;  %v829_v45 = vsel %vm655_vm0, %v824_v59, %v828_v27  ;;  %v6459_v59 = vld [vmem:[%s8709_s1 + $0x70] sm:$0xff]  }
  0x5f   : > { %v6993_v24 = vsel %vm655_vm0, %v671_v58, %v673_v14  ;;  %v7010_v38 = vsel %vm655_vm0, %v673_v14, %v6981_v16  ;;  %v7037_v58 = vrot.slane %v7017_v40, 1  ;;  %5602 = vmatprep.subr.bf16.mxu0 %v6466_v60  ;;  %v6468_v14 = vld [vmem:[%s8709_s1 + $0x1c8] sm:$0xff]  }
  0x60   : > { %v842_v25 = vrot.slane %v6993_v24, 1  ;;  %v606_v36 = vrot.slane %v604_v22, 1  ;;  %v846_v46 = vrot.slane %v7010_v38, 1  ;;  %5603 = vmatpush3.bf16.msra.mxu0 %v6467_v9  ;;  %v6469_v22 = vld [vmem:[%s8709_s1 + $0x188] sm:$0xff]  }
  0x61   : > { %5497 = vmatpush3.bf16.msra.mxu1 %v6442_v35  ;;  %v602_v35 = vor.u32 %v600_v21, %v598_v1  ;;  %v614_v1 = vrot.slane %v612_v43, 1  ;;  %5604 = vmatprep.subr.bf16.mxu0 %v6468_v14  ;;  %v7091_v43 = vld [vmem:[%s8709_s1 + $0x80] sm:$0xff]   ;;  %v1767_v14 = vrot.slane %v6917_v33, 2 }
  0x62   : > { %5498 = vmatprep.subr.bf16.mxu1 %v6444_v39  ;;  %v843_v37 = vsel %vm655_vm0, %v838_v11, %v842_v25  ;;  %v6454_v39 = vld [vmem:[%s8709_s1 + $0x68] sm:$0xff]   ;;  %v610_v63 = vor.u32 %v608_v42, %v606_v36 }
  0x63   : > { %v7029_v48 = vsel %vm547_vm1, %v602_v35, %v606_v36  ;;  %v7057_v11 = vld [vmem:[%s6756_s10] sm:$0xff]   ;;  %v616_v35 = vshrl.u32 %v6913_v31, 16  ;;  %v620_v36 = vshll.u32 %v6935_v44, 16 }
  0x64   : > { %5992 = vmatmul.mubr.bf16.gmra.mrb[4].mxu1 %v831_v2  ;;  %1072 = vmatmul.mubr.bf16.gmra.mrb[4].mxu0 %v6873_v6  ;;  %v832_v2 = vrot.slane %v7029_v48, 1  ;;  %v7069_v21 = vsel %vm547_vm1, %v610_v63, %v614_v1  ;;  %v551_v42 = vshll.u32 %v7057_v11, 16  ;;  %v1766_v63 = vrot.slane %v6896_v19, 2 }
  0x65   : > { %5499 = vmatpush3.bf16.msra.mxu1 %v6445_v55  ;;  %5995 = vmatprep.mubr.bf16.mxu1 %v835_v7  ;;  %v850_v55 = vrot.slane %v7022_v41, 1  ;;  %v6461_v7 = vld [vmem:[%s8709_s1 + $0x78] sm:$0xff]  }
  0x66   : > { %5500 = vmatprep.subr.bf16.mxu1 %v6448_v62  ;;  %1079 = vmatprep.mubr.bf16.mxu0 %v825_v10  ;;  %v6460_v62 = vld [vmem:[%s8709_s1 + $0x30] sm:$0xff]   ;;  %v847_v10 = vsel %vm655_vm0, %v842_v25, %v846_v46  ;;  %v833_v25 = vsel %vm655_vm0, %v828_v27, %v832_v2  ;;  %v836_v27 = vrot.slane %v7069_v21, 1  ;;  %v553_v9 = vrot.slane %v551_v42, 1  ;;  %v6478_v42 = vld [vmem:[%s8709_s1 + $0x1e8] sm:$0xff]  }
  0x67   : > { %5605 = vmatpush3.bf16.msra.mxu0 %v6469_v22  ;;  %v628_v22 = vshll.u32 %v6944_v49, 16 }
  0x69   : > { %5501 = vmatpush3.bf16.msra.mxu1 %v6449_v15  ;;  %v851_v15 = vsel %vm655_vm0, %v846_v46, %v850_v55  ;;  %v618_v46 = vor.u32 %v616_v35, %v614_v1  ;;  %v624_v1 = vshrl.u32 %v6935_v44, 16 }
  0x6a   : > { %5502 = vmatprep.subr.bf16.mxu1 %v6452_v20  ;;  %v7066_v20 = vsel %vm655_vm0, %v7001_v28, %v7037_v58 }
  0x6c   : > { %5996 = vmatmul.mubr.bf16.gmra.mrb[8].mxu1 %v839_v29  ;;  %1080 = vmatmul.mubr.bf16.gmra.mrb[8].mxu0 %v6883_v13  ;;  %v858_v29 = vrot.slane %v7037_v58, 1 }
  0x6d   : > { %5999 = vmatprep.mubr.bf16.mxu1 %v843_v37  ;;  %5503 = vmatpush3.bf16.msra.mxu1 %v6453_v32  ;;  %v6462_v32 = vld [vmem:[%s8709_s1 + $0x38] sm:$0xff]   ;;  %v854_v37 = vrot.slane %v7066_v20, 1 }
  0x6e   : > { %5504 = vmatprep.subr.bf16.mxu1 %v6454_v39  ;;  %1087 = vmatprep.mubr.bf16.mxu0 %v829_v45  ;;  %v6471_v39 = vld [vmem:[%s8709_s1 + $0x1d0] sm:$0xff]  }
  0x6f   : > { %v6472_v45 = vld [vmem:[%s8709_s1 + $0x190] sm:$0xff]   ;;  %5606 = vmatprep.subr.bf16.mxu0 %v6471_v39  ;;  %v855_v60 = vsel %vm655_vm0, %v850_v55, %v854_v37  ;;  %v837_v55 = vsel %vm655_vm0, %v832_v2, %v836_v27  ;;  %v630_v39 = vrot.slane %v628_v22, 1  ;;  %v6482_v22 = vld [vmem:[%s8709_s1 + $0x1f8] sm:$0xff]  }
  0x70   : > { %5607 = vmatpush3.bf16.msra.mxu0 %v6472_v45  ;;  %v475_v45 = vld [vmem:[%s6756_s10 + $0x64] sm:$0xf] }
  0x71   : > { %5505 = vmatpush3.bf16.msra.mxu1 %v6456_v50  ;;  %v622_v50 = vrot.slane %v620_v36, 1  ;;  %v6476_v36 = vld [vmem:[%s8709_s1 + $0x1a0] sm:$0xff]  }
  0x72   : > { %5506 = vmatprep.subr.bf16.mxu1 %v6459_v59  ;;  %v6473_v59 = vld [vmem:[%s8709_s1 + $0x1d8] sm:$0xff]  }
  0x73   : > { %5608 = vmatprep.subr.bf16.mxu0 %v6473_v59  ;;  %v632_v59 = vshrl.u32 %v6944_v49, 16 }
  0x74   : > { %6000 = vmatmul.mubr.bf16.gmra.mrb[12].mxu1 %v847_v10  ;;  %1088 = vmatmul.mubr.bf16.gmra.mrb[12].mxu0 %v6920_v34  ;;  %v6474_v10 = vld [vmem:[%s8709_s1 + $0x198] sm:$0xff]  }
  0x75   : > { %6003 = vmatprep.mubr.bf16.mxu1 %v851_v15  ;;  %5507 = vmatpush3.bf16.msra.mxu1 %v6460_v62  ;;  %v549_v62 = vshrl.u32 %v7057_v11, 16  ;;  %v7111_v15 = vsel %vm547_vm1, %v618_v46, %v622_v50 }
  0x76   : > { %5508 = vmatprep.subr.bf16.mxu1 %v6461_v7  ;;  %1095 = vmatprep.mubr.bf16.mxu0 %v833_v25  ;;  %v859_v7 = vsel %vm655_vm0, %v854_v37, %v858_v29  ;;  %v6475_v25 = vld [vmem:[%s8709_s1 + $0x1e0] sm:$0xff]   ;;  %v840_v35 = vrot.slane %v7111_v15, 1  ;;  %v626_v37 = vor.u32 %v624_v1, %v622_v50 }
  0x77   : > { %v554_v2 = vor.u32 %v553_v9, %v549_v62  ;;  %5609 = vmatpush3.bf16.msra.mxu0 %v6474_v10  ;;  %v6479_v62 = vld [vmem:[%s8709_s1 + $0x1a8] sm:$0xff]   ;;  %v7149_v9 = vor.u32 %v632_v59, %v630_v39  ;;  %v656_v10 = vrot.slane %v7057_v11, 1 }
  0x78   : > { %5610 = vmatprep.subr.bf16.mxu0 %v6475_v25  ;;  %v841_v50 = vsel %vm655_vm0, %v836_v27, %v840_v35  ;;  %v6481_v27 = vld [vmem:[%s8709_s1 + $0x1b0] sm:$0xff]  }
  0x79   : > { %5509 = vmatpush3.bf16.msra.mxu1 %v6462_v32  ;;  %v7120_v32 = vsel %vm1762_vm2, %v1766_v63, %v1767_v14  ;;  %v559_v46 = vsel %vm547_vm1, %v554_v2, %v6861_v0  ;;  %v7140_v63 = vsel %vm547_vm1, %v626_v37, %v630_v39  ;;  %v6480_v0 = vld [vmem:[%s8709_s1 + $0x1f0] sm:$0xff]   ;;  %v7166_v25 = vsel %vm655_vm0, %v656_v10, %v657_v61  ;;  %v6483_v37 = vld [vmem:[%s8709_s1 + $0x1b8] sm:$0xff]  }
  0x7a   : > { %6011 = vmatprep.subr.bf16.mxu1 %v7091_v43 }
  0x7b   : > { %5611 = vmatpush3.bf16.msra.mxu0 %v6476_v36  ;;  %v754_v36 = vshll.u32 %v7017_v40, 16 }
  0x7c   : > { %6004 = vmatmul.mubr.bf16.gmra.mrb[16].mxu1 %v855_v60  ;;  %1096 = vmatmul.mubr.bf16.gmra.mrb[16].mxu0 %v6940_v47  ;;  %v746_v60 = vshll.u32 %v6989_v23, 16 }
  0x7d   : > { %6007 = vmatprep.mubr.bf16.mxu1 %v859_v7  ;;  %1103 = vmatprep.mubr.bf16.mxu0 %v837_v55  ;;  %v7146_v7 = vcombine.low %v6997_v26, %v475_v45  ;;  %v6465_v26 = vld [vmem:[%s8709_s1 + $0x88] sm:$0xff]   ;;  %v750_v55 = vshrl.u32 %v6989_v23, 16 }
  0x7e   : > { %5612 = vmatprep.subr.bf16.mxu0 %v6478_v42  ;;  %v748_v1 = vrot.slane %v746_v60, 1  ;;  %v1814_v42 = vrot.slane %v6989_v23, 2  ;;  %v7179_v45 = vld [vmem:[%s6756_s10 + $0x68] ss:$0 sps:$4 sm:$0xff]  }
  0x7f   : > { %5613 = vmatpush3.bf16.msra.mxu0 %v6479_v62  ;;  %v1694_v39 = vshll.u32 %v7146_v7, 16  ;;  %v1698_v61 = vshrl.u32 %v7146_v7, 16  ;;  %v6470_v62 = vld [vmem:[%s8709_s1 + $0x90] sm:$0xff]  }
  0x80   : > { %5614 = vmatprep.subr.bf16.mxu0 %v6480_v0  ;;  %v7170_v2 = vsel %vm547_vm1, %v7149_v9, %v748_v1  ;;  %v752_v60 = vor.u32 %v750_v55, %v748_v1 }
  0x81   : > { %v848_v0 = vrot.slane %v7170_v2, 1  ;;  %v1810_v1 = vrot.slane %v7170_v2, 2  ;;  %v2360_v2 = vld [vmem:[%s6739_s12 + $0x80] sm:$0xff] }
  0x83   : > { %5615 = vmatpush3.bf16.msra.mxu0 %v6481_v27  ;;  %v1702_v27 = vshll.u32 %v7179_v45, 16 }
  0x84   : > { %6008 = vmatmul.mubr.bf16.gmra.mrb[20].mxu1 %v858_v29  ;;  %1104 = vmatmul.mubr.bf16.gmra.mrb[20].mxu0 %v6954_v57  ;;  %v844_v29 = vrot.slane %v7140_v63, 1 }
  0x85   : > { %1463 = vmatprep.mubr.bf16.mxu1 %v559_v46  ;;  %1111 = vmatprep.mubr.bf16.mxu0 %v841_v50  ;;  %v1820_v46 = vrot.slane %v7146_v7, 2  ;;  %v1696_v50 = vrot.slane %v1694_v39, 1  ;;  %v7202_v55 = vrot.slane %v1702_v27, 1  ;;  %v6484_v27 = vld [vmem:[%s8709_s1 + $0xa0] sm:$0xff]  }
  0x86   : > { %v845_v59 = vsel %vm655_vm0, %v840_v35, %v844_v29  ;;  %5616 = vmatprep.subr.bf16.mxu0 %v6482_v22  ;;  %v756_v35 = vrot.slane %v754_v36, 1 }
  0x87   : > { %5617 = vmatpush3.bf16.msra.mxu0 %v6483_v37  ;;  %v6477_v37 = vld [vmem:[%s8709_s1 + $0x98] sm:$0xff]  }
  0x88   : > { %v757_v36 = vsel %vm547_vm1, %v752_v60, %v756_v35 }
  0x8c   : > { %1464 = vmatmul.mubr.bf16.vlgmr.msra.gmra.mrb[24].mxu1 %v7057_v11  ;;  %v7197_v11 = vsel %vm1762_vm2, %v1814_v42, %v1820_v46  ;;  %1112 = vmatmul.mubr.bf16.gmra.mrb[24].mxu0 %v6964_v3 }
  0x8d   : > { %6012 = vmatpush3.bf16.msra.mxu1 %v7091_v43  ;;  %1471 = vmatprep.mubr.bf16.mxu1 %v6893_v18  ;;  %v1697_v43 = vsel %vm547_vm1, %v752_v60, %v1696_v50  ;;  %v1700_v18 = vor.u32 %v1698_v61, %v1696_v50  ;;  %v852_v60 = vrot.slane %v757_v36, 1  ;;  %v1764_v36 = vrot.slane %v6842_v52, 2 }
  0x8e   : > { %6013 = vmatprep.subr.bf16.mxu1 %v6465_v26  ;;  %1119 = vmatprep.mubr.bf16.mxu0 %v845_v59  ;;  %v1816_v10 = vrot.slane %v1697_v43, 2  ;;  %v758_v59 = vshrl.u32 %v7017_v40, 16  ;;  %v7250_v43 = vld [vmem:[%s8709_s1 + $0x200] sm:$0xff]  }
  0x8f   : > { %v7211_v39 = vsel %vm547_vm1, %v1700_v18, %v7202_v55  ;;  %v1763_v18 = vrot.slane %v6839_v51, 2 }
  0x90   : > { %v7207_v22 = vsel %vm1762_vm2, %v1810_v1, %v1816_v10  ;;  %v1822_v61 = vrot.slane %v7211_v39, 2  ;;  %v760_v40 = vor.u32 %v758_v59, %v756_v35  ;;  %v6488_v35 = vld [vmem:[%s8709_s1 + $0xb8] sm:$0xff]  }
  0x91   : > { %6014 = vmatpush3.bf16.msra.mxu1 %v6465_v26  ;;  %v849_v26 = vsel %vm655_vm0, %v844_v29, %v848_v0 }
  0x92   : > { %6015 = vmatprep.subr.bf16.mxu1 %v6470_v62  ;;  %v7224_v50 = vsel %vm1762_vm2, %v1816_v10, %v1822_v61  ;;  %v856_v29 = vrot.slane %v760_v40, 1  ;;  %v1709_v10 = vrot.slane %v7146_v7, 1  ;;  %v2347_v40 = vld [vmem:[%s6739_s12 + $0x18] sm:$0xff] }
  0x94   : > { %1472 = vmatmul.mubr.bf16.gmra.mrb[28].mxu1 %v6845_v53  ;;  %1120 = vmatmul.mubr.bf16.gmra.mrb[28].mxu0 %v6993_v24  ;;  %v6485_v53 = vld [vmem:[%s8709_s1 + $0xa8] sm:$0xff]  }
  0x95   : > { %1479 = vmatprep.mubr.bf16.mxu1 %v6896_v19  ;;  %6016 = vmatpush3.bf16.msra.mxu1 %v6470_v62  ;;  %v853_v19 = vsel %vm655_vm0, %v848_v0, %v852_v60  ;;  %v6486_v62 = vld [vmem:[%s8709_s1 + $0xb0] sm:$0xff]   ;;  %v857_v0 = vsel %vm655_vm0, %v852_v60, %v856_v29  ;;  %v1772_v60 = vrot.slane %v6848_v54, 2 }
  0x96   : > { %6017 = vmatprep.subr.bf16.mxu1 %v6477_v37  ;;  %1127 = vmatprep.mubr.bf16.mxu0 %v849_v26  ;;  %v7266_v26 = vsel %vm655_vm0, %v7001_v28, %v1709_v10  ;;  %v1765_v28 = vsel %vm1762_vm2, %v1763_v18, %v1764_v36 }
  0x99   : > { %6018 = vmatpush3.bf16.msra.mxu1 %v6477_v37  ;;  %v1711_v37 = vrot.slane %v7179_v45, 1 }
  0x9a   : > { %6019 = vmatprep.subr.bf16.mxu1 %v6484_v27 }
  0x9b   : > { %v1712_v59 = vsel %vm655_vm0, %v1709_v10, %v1711_v37  ;;  %v2349_v10 = vld [vmem:[%s6739_s12 + $0x28] sm:$0xff] }
  0x9c   : > { %1480 = vmatmul.mubr.bf16.gmra.mrb[32].mxu1 %v6839_v51  ;;  %1128 = vmatmul.mubr.bf16.gmra.mrb[32].mxu0 %v7010_v38  ;;  %v1818_v51 = vrot.slane %v7266_v26, 2 }
  0x9d   : > { %1487 = vmatprep.mubr.bf16.mxu1 %v6917_v33  ;;  %6020 = vmatpush3.bf16.msra.mxu1 %v6484_v27  ;;  %v7284_v27 = vrot.slane %v1711_v37, 2 }
  0x9e   : > { %6021 = vmatprep.subr.bf16.mxu1 %v6485_v53  ;;  %1135 = vmatprep.mubr.bf16.mxu0 %v853_v19  ;;  %v7299_v19 = vcombine.low %v6967_v4, %v6967_v4 }
  0xa1   : > { %6022 = vmatpush3.bf16.msra.mxu1 %v6485_v53  ;;  %v1773_v53 = vsel %vm1762_vm2, %v1764_v36, %v1772_v60  ;;  %v1792_v36 = vrot.slane %v7069_v21, 2 }
  0xa2   : > { %6023 = vmatprep.subr.bf16.mxu1 %v6486_v62 }
  0xa4   : > { %1488 = vmatmul.mubr.bf16.gmra.mrb[36].mxu1 %v6842_v52  ;;  %1136 = vmatmul.mubr.bf16.gmra.mrb[36].mxu0 %v7022_v41  ;;  %v1824_v52 = vrot.slane %v1712_v59, 2 }
  0xa5   : > { %1495 = vmatprep.mubr.bf16.mxu1 %v6951_v56  ;;  %6024 = vmatpush3.bf16.msra.mxu1 %v6486_v62  ;;  %v2346_v62 = vld [vmem:[%s6739_s12 + $0x10] sm:$0xff] }
  0xa6   : > { %6025 = vmatprep.subr.bf16.mxu1 %v6488_v35  ;;  %1143 = vmatprep.mubr.bf16.mxu0 %v857_v0  ;;  %v636_v0 = vshll.u32 %v7299_v19, 16 }
  0xa9   : > { %6026 = vmatpush3.bf16.msra.mxu1 %v6488_v35  ;;  %v1786_v35 = vrot.slane %v7029_v48, 2 }
  0xaa   : > { %6051 = vmatprep.subr.bf16.mxu1 %v7250_v43 }
  0xab   : > { %v1793_v59 = vsel %vm1762_vm2, %v1786_v35, %v1792_v36 }
  0xac   : > { %1496 = vmatmul.mubr.bf16.gmra.mrb[40].mxu1 %v6848_v54  ;;  %1144 = vmatmul.mubr.bf16.gmra.mrb[40].mxu0 %v7066_v20  ;;  %v1774_v20 = vrot.slane %v6951_v56, 2  ;;  %v7289_v54 = vsel %vm1762_vm2, %v1824_v52, %v7284_v27 }
  0xad   : > { %1503 = vmatprep.mubr.bf16.mxu1 %v6974_v12  ;;  %1151 = vmatprep.mubr.bf16.mxu0 %v856_v29  ;;  %v1778_v29 = vrot.slane %v6877_v8, 2 }
  0xae   : > { %v1775_v56 = vsel %vm1762_vm2, %v1767_v14, %v1774_v20  ;;  %v2345_v14 = vld [vmem:[%s6739_s12 + $0x8] sm:$0xff] }
  0xaf   : > { %v1779_v18 = vsel %vm1762_vm2, %v1772_v60, %v1778_v29  ;;  %v640_v60 = vshrl.u32 %v7299_v19, 16 }
  0xb4   : > { %1504 = vmatmul.mubr.bf16.gmra.mrb[44].mxu1 %v6877_v8  ;;  %1152 = vmatmul.mubr.bf16.gmra.mrb[44].mxu0 %v7037_v58  ;;  %v7276_v58 = vsel %vm1762_vm2, %v1818_v51, %v1824_v52  ;;  %v638_v8 = vrot.slane %v636_v0, 1  ;;  %v2348_v52 = vld [vmem:[%s6739_s12 + $0x20] sm:$0xff]  ;;  %v2359_v0 = vld [vmem:[%s6739_s12 + $0x78] sm:$0xff] }
  0xb5   : > { %1511 = vmatprep.mubr.bf16.mxu1 %v7029_v48  ;;  %2044 = vmatprep.mubr.bf16.mxu0 %v7120_v32  ;;  %v1780_v32 = vrot.slane %v6974_v12, 2  ;;  %v6658_v12 = vmov 0   ;;  %v1784_v48 = vrot.slane %v6890_v17, 2 }
  0xb6   : > { %6408 = vset.pattern.permute.xlu0 %v6658_v12  ;;  %6409 = vset.pattern.permute.xlu1 %v6658_v12  ;;  %v639_v37 = vsel %vm547_vm1, %v7149_v9, %v638_v8  ;;  %v642_v9 = vor.u32 %v640_v60, %v638_v8  ;;  %v1804_v12 = vrot.slane %v7140_v63, 2  ;;  %v6491_v8 = vld [vmem:[%s8709_s1 + $0x210] sm:$0xff]  }
  0xb7   : > { %v1781_v33 = vsel %vm1762_vm2, %v1774_v20, %v1780_v32  ;;  %2374 = vperm.xlu0 %6408, %v2345_v14   ;;  %2384 = vperm.xlu1 %6409, %v2347_v40   ;;  %v1787_v4 = vsel %vm1762_vm2, %v1780_v32, %v1786_v35  ;;  %v1785_v20 = vsel %vm1762_vm2, %v1778_v29, %v1784_v48  ;;  %v2353_v32 = vld [vmem:[%s6739_s12 + $0x48] sm:$0xff]  ;;  %v2355_v14 = vld [vmem:[%s6739_s12 + $0x58] sm:$0xff]  ;;  %v2366_v60 = vld [vmem:[%s6739_s12 + $0xb0] sm:$0x3] }
  0xb8   : > { %v2357_v35 = vld [vmem:[%s6739_s12 + $0x68] sm:$0xff] }
  0xbb   : > { %2379 = vperm.xlu0 %6408, %v2346_v62   ;;  %2389 = vperm.xlu1 %6409, %v2348_v52   ;;  %v2354_v62 = vld [vmem:[%s6739_s12 + $0x50] sm:$0xff] }
  0xbc   : > { %1512 = vmatmul.mubr.bf16.gmra.mrb[48].mxu1 %v6890_v17  ;;  %2045 = vmatmul.mubr.bf16.vlgmr.msra.gmra.mrb[48].mxu0 %v1765_v28  ;;  %v1790_v17 = vrot.slane %v6910_v30, 2  ;;  %v1798_v28 = vrot.slane %v7111_v15, 2 }
  0xbd   : > { %1519 = vmatprep.mubr.bf16.mxu1 %v7069_v21  ;;  %2052 = vmatprep.mubr.bf16.mxu0 %v1775_v56  ;;  %v2351_v21 = vld [vmem:[%s6739_s12 + $0x38] sm:$0xff]  ;;  %v2350_v56 = vld [vmem:[%s6739_s12 + $0x30] sm:$0xff] }
  0xbe   : > { %v1805_v29 = vsel %vm1762_vm2, %v1798_v28, %v1804_v12 }
  0xbf   : > { %2394 = vperm.xlu0 %6408, %v2349_v10   ;;  %2399 = vperm.xlu1 %6409, %v2350_v56  }
  0xc3   : > { %2404 = vperm.xlu0 %6408, %v2351_v21   ;;  %v2365_v21 = vld [vmem:[%s6739_s12 + $0xa8] sm:$0xff] }
  0xc4   : > { %1520 = vmatmul.mubr.bf16.gmra.mrb[52].mxu1 %v6910_v30  ;;  %2053 = vmatmul.mubr.bf16.gmra.mrb[52].mxu0 %v1773_v53  ;;  %v1791_v53 = vsel %vm1762_vm2, %v1784_v48, %v1790_v17  ;;  %v1796_v30 = vrot.slane %v6913_v31, 2 }
  0xc5   : > { %1527 = vmatprep.mubr.bf16.mxu1 %v7111_v15  ;;  %2060 = vmatprep.mubr.bf16.mxu0 %v1781_v33  ;;  %v1799_v33 = vsel %vm1762_vm2, %v1792_v36, %v1798_v28  ;;  %v2352_v15 = vld [vmem:[%s6739_s12 + $0x40] sm:$0xff]  ;;  %v2362_v36 = vld [vmem:[%s6739_s12 + $0x90] sm:$0xff] }
  0xc6   : > { %2409 = vperm.xlu1 %6409, %v2352_v15   ;;  %v1797_v40 = vsel %vm1762_vm2, %v1790_v17, %v1796_v30  ;;  %v6495_v17 = vld [vmem:[%s8709_s1 + $0x228] sm:$0xff]   ;;  %v6496_v28 = vld [vmem:[%s8709_s1 + $0x230] sm:$0xff]  }
  0xc7   : > { %2414 = vperm.xlu0 %6408, %v2353_v32  }
  0xca   : > { %2419 = vperm.xlu1 %6409, %v2354_v62  }
  0xcb   : > { %2424 = vperm.xlu0 %6408, %v2355_v14  }
  0xcc   : > { %1528 = vmatmul.mubr.bf16.gmra.mrb[56].mxu1 %v6913_v31  ;;  %2061 = vmatmul.mubr.bf16.gmra.mrb[56].mxu0 %v1779_v18  ;;  %v1802_v31 = vrot.slane %v6935_v44, 2  ;;  %v6490_v18 = vld [vmem:[%s8709_s1 + $0x208] sm:$0xff]  }
  0xcd   : > { %1535 = vmatprep.mubr.bf16.mxu1 %v7140_v63  ;;  %2068 = vmatprep.mubr.bf16.mxu0 %v1787_v4  ;;  %v2356_v63 = vld [vmem:[%s6739_s12 + $0x60] sm:$0xff]  ;;  %v2358_v4 = vld [vmem:[%s6739_s12 + $0x70] sm:$0xff] }
  0xce   : > { %2429 = vperm.xlu1 %6409, %v2356_v63   ;;  %v1803_v10 = vsel %vm1762_vm2, %v1796_v30, %v1802_v31 }
  0xcf   : > { %2434 = vperm.xlu0 %6408, %v2357_v35  }
  0xd2   : > { %2439 = vperm.xlu1 %6409, %v2358_v4  }
  0xd3   : > { %2444 = vperm.xlu0 %6408, %v2359_v0  }
  0xd4   : > { %1536 = vmatmul.mubr.bf16.gmra.mrb[60].mxu1 %v6935_v44  ;;  %2069 = vmatmul.mubr.bf16.gmra.mrb[60].mxu0 %v1785_v20  ;;  %v2361_v44 = vld [vmem:[%s6739_s12 + $0x88] sm:$0xff]  ;;  %v1706_v20 = vshrl.u32 %v7179_v45, 16 }
  0xd5   : > { %1543 = vmatprep.mubr.bf16.mxu1 %v639_v37  ;;  %2076 = vmatprep.mubr.bf16.mxu0 %v1793_v59  ;;  %v6494_v37 = vld [vmem:[%s8709_s1 + $0x220] sm:$0xff]  }
  0xd6   : > { %2449 = vperm.xlu1 %6409, %v2360_v2   ;;  %v2364_v59 = vld [vmem:[%s6739_s12 + $0xa0] sm:$0xff] }
  0xd7   : > { %2454 = vperm.xlu0 %6408, %v2361_v44  }
  0xda   : > { %2459 = vperm.xlu1 %6409, %v2362_v36  }
  0xdc   : > { %1544 = vmatmul.mubr.bf16.gmra.mrb[64].mxu1 %v6944_v49  ;;  %2077 = vmatmul.mubr.bf16.gmra.mrb[64].mxu0 %v1791_v53 }
  0xdd   : > { %1551 = vmatprep.mubr.bf16.mxu1 %v642_v9  ;;  %2084 = vmatprep.mubr.bf16.mxu0 %v1799_v33  ;;  %v1826_v9 = vrot.slane %v7179_v45, 2  ;;  %v1776_v45 = vrot.slane %v6920_v34, 2 }
  0xde   : > { %2469 = vperm.xlu1 %6409, %v2364_v59  }
  0xdf   : > { %v1827_v39 = vsel %vm1762_vm2, %v1820_v46, %v1826_v9 }
  0xe2   : > { %2474 = vperm.xlu1 %6409, %v2365_v21  }
  0xe4   : > { %1552 = vmatmul.mubr.bf16.gmra.mrb[68].mxu1 %v7299_v19  ;;  %2085 = vmatmul.mubr.bf16.gmra.mrb[68].mxu0 %v1797_v40 }
  0xe5   : > { %6027 = vmatprep.mubr.bf16.mxu1 %v7166_v25  ;;  %2092 = vmatprep.mubr.bf16.mxu0 %v1805_v29  ;;  %v1811_v25 = vsel %vm1762_vm2, %v1804_v12, %v1810_v1  ;;  %v2363_v1 = vld [vmem:[%s6739_s12 + $0x98] sm:$0xff] }
  0xe6   : > { %2464 = vperm.xlu0 %6408, %v2363_v1  }
  0xec   : > { %6028 = vmatmul.mubr.bf16.vlgmr.msra.gmra.mrb[0].mxu1 %v6870_v5  ;;  %2093 = vmatmul.mubr.bf16.gmra.mrb[72].mxu0 %v1803_v10  ;;  %v1808_v5 = vrot.slane %v6944_v49, 2  ;;  %v2344_v49 = vld [vmem:[%s6739_s12] sm:$0xff] }
  0xed   : > { %6052 = vmatpush3.bf16.msra.mxu1 %v7250_v43  ;;  %6031 = vmatprep.mubr.bf16.mxu1 %v6873_v6  ;;  %v6492_v43 = vld [vmem:[%s8709_s1 + $0x218] sm:$0xff]  }
  0xee   : > { %6053 = vmatprep.subr.bf16.mxu1 %v6490_v18  ;;  %2100 = vmatprep.mubr.bf16.mxu0 %v1811_v25  ;;  %v1809_v48 = vsel %vm1762_vm2, %v1802_v31, %v1808_v5  ;;  %v1815_v52 = vsel %vm1762_vm2, %v1808_v5, %v1814_v42  ;;  %v6497_v42 = vld [vmem:[%s8709_s1 + $0x238] sm:$0xff]   ;;  %v6498_v25 = vld [vmem:[%s8711_s3 + $0x100] sm:$0xff]  }
  0xef   : > { %2369 = vperm.xlu0 %6408, %v2344_v49   ;;  %5710 = vmatprep.subr.bf16.mxu0 %v6498_v25 }
  0xf1   : > { %6054 = vmatpush3.bf16.msra.mxu1 %v6490_v18 }
  0xf2   : > { %6055 = vmatprep.subr.bf16.mxu1 %v6491_v8 }
  0xf3   : > { %2479 = vperm.xlu0 %6408, %v2366_v60  }
  0xf4   : > { %6032 = vmatmul.mubr.bf16.gmra.mrb[4].mxu1 %v6883_v13  ;;  %2101 = vmatmul.mubr.bf16.gmra.mrb[76].mxu0 %v1809_v48  ;;  %v6501_v48 = vld [vmem:[%s8711_s3 + $0xc8] sm:$0xff]  }
  0xf5   : > { %6056 = vmatpush3.bf16.msra.mxu1 %v6491_v8  ;;  %6035 = vmatprep.mubr.bf16.mxu1 %v6920_v34  ;;  %v1800_v34 = vrot.slane %v6993_v24, 2 }
  0xf6   : > { %6057 = vmatprep.subr.bf16.mxu1 %v6492_v43  ;;  %2108 = vmatprep.mubr.bf16.mxu0 %v7207_v22  ;;  %v1708_v22 = vor.u32 %v1706_v20, %v7202_v55 }
  0xf8   : > { %v1828_v23 = vrot.slane %v1708_v22, 2 }
  0xf9   : > { %6058 = vmatpush3.bf16.msra.mxu1 %v6492_v43 }
  0xfa   : > { %6059 = vmatprep.subr.bf16.mxu1 %v6494_v37  ;;  %v1829_v55 = vsel %vm1762_vm2, %v1822_v61, %v1828_v23  ;;  %v1769_v61 = vrot.slane %v6873_v6, 2  ;;  %v1788_v6 = vrot.slane %v6954_v57, 2 }
  0xfc   : > { %6036 = vmatmul.mubr.bf16.gmra.mrb[8].mxu1 %v6940_v47  ;;  %2109 = vmatmul.mubr.bf16.gmra.mrb[80].mxu0 %v1815_v52 }
  0xfd   : > { %6039 = vmatprep.mubr.bf16.mxu1 %v6954_v57  ;;  %6060 = vmatpush3.bf16.msra.mxu1 %v6494_v37  ;;  %v1812_v57 = vrot.slane %v7022_v41, 2 }
  0xfe   : > { %6061 = vmatprep.subr.bf16.mxu1 %v6495_v17  ;;  %2116 = vmatprep.mubr.bf16.mxu0 %v7224_v50  ;;  %v677_v50 = vrot.slane %v7299_v19, 1 }
  0xff   : > { %v1819_v14 = vsel %vm1762_vm2, %v1812_v57, %v1818_v51 }
 0x100   : > { %v678_v56 = vsel %vm655_vm0, %v6981_v16, %v677_v50  ;;  %v1782_v16 = vrot.slane %v6940_v47, 2  ;;  %v1806_v47 = vrot.slane %v7010_v38, 2 }
 0x101   : > { %6062 = vmatpush3.bf16.msra.mxu1 %v6495_v17 }
 0x102   : > { %6063 = vmatprep.subr.bf16.mxu1 %v6496_v28  ;;  %v1783_v46 = vsel %vm1762_vm2, %v1776_v45, %v1782_v16  ;;  %v1789_v32 = vsel %vm1762_vm2, %v1782_v16, %v1788_v6  ;;  %v1807_v30 = vsel %vm1762_vm2, %v1800_v34, %v1806_v47 }
 0x104   : > { %6040 = vmatmul.mubr.bf16.gmra.mrb[12].mxu1 %v6964_v3  ;;  %2117 = vmatmul.mubr.bf16.gmra.mrb[84].mxu0 %v7197_v11  ;;  %v1770_v11 = vrot.slane %v6883_v13, 2  ;;  %v1794_v13 = vrot.slane %v6964_v3, 2  ;;  %v1813_v3 = vsel %vm1762_vm2, %v1806_v47, %v1812_v57 }
 0x105   : > { %6043 = vmatprep.mubr.bf16.mxu1 %v6993_v24  ;;  %6064 = vmatpush3.bf16.msra.mxu1 %v6496_v28 }
 0x106   : > { %6065 = vmatprep.subr.bf16.mxu1 %v6497_v42  ;;  %2124 = vmatprep.mubr.bf16.mxu0 %v1829_v55  ;;  %v1771_v19 = vsel %vm1762_vm2, %v1769_v61, %v1770_v11  ;;  %v1777_v7 = vsel %vm1762_vm2, %v1770_v11, %v1776_v45  ;;  %v1795_v53 = vsel %vm1762_vm2, %v1788_v6, %v1794_v13  ;;  %v6504_v61 = vld [vmem:[%s8711_s3 + $0x118] sm:$0xff]  }
 0x107   : > { %v1801_v33 = vsel %vm1762_vm2, %v1794_v13, %v1800_v34 }
 0x109   : > { %6066 = vmatpush3.bf16.msra.mxu1 %v6497_v42 }
 0x10c   : > { %6044 = vmatmul.mubr.bf16.gmra.mrb[16].mxu1 %v7010_v38  ;;  %2125 = vmatmul.mubr.bf16.gmra.mrb[88].mxu0 %v1827_v39  ;;  %v6503_v39 = vld [vmem:[%s8711_s3 + $0xd0] sm:$0xff]  }
 0x10d   : > { %6047 = vmatprep.mubr.bf16.mxu1 %v678_v56  ;;  %2132 = vmatprep.mubr.bf16.mxu0 %v1828_v23 }
 0x114   : > { %6048 = vmatmul.mubr.bf16.gmra.mrb[72].mxu1 %v677_v50  ;;  %2133 = vmatmul.mubr.bf16.gmra.mrb[92].mxu0 %v1826_v9  ;;  %v6502_v50 = vld [vmem:[%s8711_s3 + $0x110] sm:$0xff]  }
 0x115   : > { %6067 = vmatprep.mubr.bf16.mxu1 %v1771_v19  ;;  %v6505_v19 = vld [vmem:[%s8711_s3 + $0xd8] sm:$0xff]  }
 0x11c   : > { %6068 = vmatmul.mubr.bf16.vlgmr.msra.gmra.mrb[0].mxu1 %v1777_v7 }
 0x11d   : > { %6071 = vmatprep.mubr.bf16.mxu1 %v1783_v46 }
 0x124   : > { %6072 = vmatmul.mubr.bf16.gmra.mrb[4].mxu1 %v1789_v32 }
 0x125   : > { %6075 = vmatprep.mubr.bf16.mxu1 %v1795_v53 }
 0x12c   : > { %6076 = vmatmul.mubr.bf16.gmra.mrb[8].mxu1 %v1801_v33 }
 0x12d   : > { %6079 = vmatprep.mubr.bf16.mxu1 %v1807_v30 }
 0x12f   : > { %v5402_v15 = vpop.f32.mrb[0].mxu0 }
 0x130   : > { %v5403_v12 = vpop.f32.mrb[1].mxu0 }
 0x131   : > { %v7424_v40 = vadd.f32 %v5403_v12, %v5402_v15  ;;  %v5405_v24 = vpop.f32.mrb[2].mxu0 }
 0x132   : > { %v5406_v38 = vpop.f32.mrb[3].mxu0 }
 0x133   : > { %v7426_v29 = vadd.f32 %v5406_v38, %v5405_v24 }
 0x134   : > { %6080 = vmatmul.mubr.bf16.gmra.mrb[12].mxu1 %v1813_v3 }
 0x135   : > { %6083 = vmatprep.mubr.bf16.mxu1 %v1819_v14 }
 0x137   : > { %v5408_v62 = vpop.f32.mrb[4].mxu0 }
 0x138   : > { %v5409_v35 = vpop.f32.mrb[5].mxu0 }
 0x139   : > { %v7428_v31 = vadd.f32 %v5409_v35, %v5408_v62  ;;  %v5411_v41 = vpop.f32.mrb[6].mxu0 }
 0x13a   : > { %v5412_v63 = vpop.f32.mrb[7].mxu0 }
 0x13b   : > { %v7432_v26 = vadd.f32 %v5412_v63, %v5411_v41 }
 0x13c   : > { %6084 = vmatmul.mubr.bf16.gmra.mrb[16].mxu1 %v7276_v58  ;;  %v6499_v58 = vld [vmem:[%s8711_s3 + $0xc0] sm:$0xff]  }
 0x13d   : > { %6087 = vmatprep.mubr.bf16.mxu1 %v7289_v54  ;;  %5711 = vmatpush3.bf16.msra.mxu0 %v6499_v58 }
 0x13f   : > { %v5414_v51 = vpop.f32.mrb[8].mxu0 }
 0x140   : > { %v5415_v0 = vpop.f32.mrb[9].mxu0 }
 0x141   : > { %v7434_v18 = vadd.f32 %v5415_v0, %v5414_v51  ;;  %v5417_v10 = vpop.f32.mrb[10].mxu0 }
 0x142   : > { %v5418_v4 = vpop.f32.mrb[11].mxu0 }
 0x143   : > { %v7440_v44 = vadd.f32 %v5418_v4, %v5417_v10 }
 0x144   : > { %6088 = vmatmul.mubr.bf16.gmra.mrb[76].mxu1 %v7284_v27  ;;  %v6500_v27 = vld [vmem:[%s8711_s3 + $0x108] sm:$0xff]  }
 0x145   : > { %5712 = vmatprep.subr.bf16.mxu0 %v6500_v27 }
 0x146   : > { %5713 = vmatpush3.bf16.msra.mxu0 %v6501_v48 }
 0x147   : > { %v5420_v54 = vpop.f32.mrb[12].mxu0  ;;  %5714 = vmatprep.subr.bf16.mxu0 %v6502_v50 }
 0x148   : > { %v5421_v8 = vpop.f32.mrb[13].mxu0 }
 0x149   : > { %v7445_v5 = vadd.f32 %v5421_v8, %v5420_v54  ;;  %v5423_v2 = vpop.f32.mrb[14].mxu0 }
 0x14a   : > { %v5424_v1 = vpop.f32.mrb[15].mxu0  ;;  %5715 = vmatpush3.bf16.msra.mxu0 %v6503_v39 }
 0x14b   : > { %v7447_v43 = vadd.f32 %v5424_v1, %v5423_v2  ;;  %5716 = vmatprep.subr.bf16.mxu0 %v6504_v61 }
 0x14e   : > { %5717 = vmatpush3.bf16.msra.mxu0 %v6505_v19 }
 0x14f   : > { %v5426_v36 = vpop.f32.mrb[16].mxu0 }
 0x150   : > { %v5427_v49 = vpop.f32.mrb[17].mxu0 }
 0x151   : > { %v7455_v37 = vadd.f32 %v5427_v49, %v5426_v36  ;;  %v5429_v20 = vpop.f32.mrb[18].mxu0 }
 0x152   : > { %v5430_v59 = vpop.f32.mrb[19].mxu0 }
 0x153   : > { %v7457_v60 = vadd.f32 %v5430_v59, %v5429_v20 }
 0x157   : > { %v7459_v17 = vpop.f32.mrb[20].mxu1  ;;  %v5432_v21 = vpop.f32.mrb[20].mxu0 }
 0x158   : > { %v7461_v52 = vpop.f32.mrb[21].mxu1  ;;  %v5433_v23 = vpop.f32.mrb[21].mxu0 }
 0x159   : > { %v6010_v22 = vpop.f32.mrb[22].mxu1  ;;  %v7465_v42 = vadd.f32 %v5433_v23, %v5432_v21  ;;  %v5435_v55 = vpop.f32.mrb[22].mxu0 }
 0x15a   : > { %v7463_v28 = vpop.f32.mrb[23].mxu1  ;;  %v5436_v9 = vpop.f32.mrb[23].mxu0 }
 0x15b   : > { %v7470_v56 = vadd.f32 %v5436_v9, %v5435_v55 }
 0x15f   : > { %v5510_v11 = vpop.f32.mrb[24].mxu1  ;;  %v5438_v46 = vpop.f32.mrb[24].mxu0 }
 0x160   : > { %v5511_v45 = vpop.f32.mrb[25].mxu1  ;;  %v5439_v13 = vpop.f32.mrb[25].mxu0 }
 0x161   : > { %v5512_v16 = vadd.f32 %v5511_v45, %v5510_v11  ;;  %v5513_v7 = vpop.f32.mrb[26].mxu1  ;;  %v7484_v34 = vadd.f32 %v5439_v13, %v5438_v46  ;;  %v5441_v47 = vpop.f32.mrb[26].mxu0 }
 0x162   : > { %v5514_v6 = vpop.f32.mrb[27].mxu1  ;;  %v5442_v33 = vpop.f32.mrb[27].mxu0 }
 0x163   : > { %v7482_v32 = vadd.f32 %v5512_v16, %v7424_v40  ;;  %v5515_v53 = vadd.f32 %v5514_v6, %v5513_v7  ;;  %v7489_v57 = vadd.f32 %v5442_v33, %v5441_v47 }
 0x165   : > { %v7487_v30 = vadd.f32 %v5515_v53, %v7426_v29 }
 0x167   : > { %v5516_v3 = vpop.f32.mrb[28].mxu1  ;;  %v5444_v24 = vpop.f32.mrb[28].mxu0 }
 0x168   : > { %v5517_v15 = vpop.f32.mrb[29].mxu1  ;;  %v5445_v62 = vpop.f32.mrb[29].mxu0 }
 0x169   : > { %v5518_v14 = vadd.f32 %v5517_v15, %v5516_v3  ;;  %v5519_v12 = vpop.f32.mrb[30].mxu1  ;;  %v7494_v41 = vadd.f32 %v5445_v62, %v5444_v24  ;;  %v5447_v63 = vpop.f32.mrb[30].mxu0  ;;  %v6659_v62 = vmov 0.0  }
 0x16a   : > { %v5520_v38 = vpop.f32.mrb[31].mxu1  ;;  %v5448_v51 = vpop.f32.mrb[31].mxu0  ;;  %6091 = vmatprep.subr.bf16.mxu1 %v6659_v62  ;;  %4795 = vst [vmem:[%s6746_s20 + $0x8e] sm:$0x3] %v6659_v62  ;;  %6107 = vmatprep.mubr.msk.bf16.mxu1 %vm6660_vm6, %v6659_v62 }
 0x16b   : > { %v7492_v40 = vadd.f32 %v5518_v14, %v7428_v31  ;;  %v5521_v35 = vadd.f32 %v5520_v38, %v5519_v12  ;;  %v7499_v0 = vadd.f32 %v5448_v51, %v5447_v63  ;;  %v6509_v12 = vld [vmem:[%s8711_s3 + $0x140] sm:$0xff]  }
 0x16c   : > { %v6507_v38 = vld [vmem:[%s8711_s3 + $0xe0] sm:$0xff]   ;;  %6092 = vmatpush3.bf16.msra.mxu1 %v6509_v12 }
 0x16d   : > { %v7497_v29 = vadd.f32 %v5521_v35, %v7432_v26  ;;  %6093 = vmatprep.subr.bf16.mxu1 %v6659_v62 }
 0x16f   : > { %v5522_v10 = vpop.f32.mrb[32].mxu1  ;;  %v5450_v54 = vpop.f32.mrb[32].mxu0 }
 0x170   : > { %v5523_v25 = vpop.f32.mrb[33].mxu1  ;;  %v5451_v2 = vpop.f32.mrb[33].mxu0 }
 0x171   : > { %v5524_v4 = vadd.f32 %v5523_v25, %v5522_v10  ;;  %v5525_v58 = vpop.f32.mrb[34].mxu1  ;;  %v7504_v27 = vadd.f32 %v5451_v2, %v5450_v54  ;;  %v5453_v48 = vpop.f32.mrb[34].mxu0  ;;  %v6511_v25 = vld [vmem:[%s8711_s3 + $0x148] sm:$0xff]  }
 0x172   : > { %v5526_v8 = vpop.f32.mrb[35].mxu1  ;;  %v5454_v36 = vpop.f32.mrb[35].mxu0  ;;  %6094 = vmatpush3.bf16.msra.mxu1 %v6511_v25 }
 0x173   : > { %v7502_v31 = vadd.f32 %v5524_v4, %v7434_v18  ;;  %v5527_v1 = vadd.f32 %v5526_v8, %v5525_v58  ;;  %v7509_v49 = vadd.f32 %v5454_v36, %v5453_v48  ;;  %v2508_v18 = vld [vmem:[#allocation3] sm:$0x1]  ;;  %6095 = vmatprep.subr.bf16.mxu1 %v6659_v62  ;;  %v6512_v36 = vld [vmem:[%s8711_s3 + $0x150] sm:$0xff]  }
 0x174   : > { %v2509_v9 = vsel %vm2507_vm5, 0, %v2508_v18 }
 0x175   : > { %v7507_v26 = vadd.f32 %v5527_v1, %v7440_v44  ;;  %2510 = vst [vmem:[#allocation3] sm:$0x1] %v2509_v9 }
 0x176   : > { %6096 = vmatpush3.bf16.msra.mxu1 %v6512_v36 }
 0x177   : > { %v5528_v20 = vpop.f32.mrb[36].mxu1  ;;  %v5456_v23 = vpop.f32.mrb[36].mxu0  ;;  %6097 = vmatprep.subr.bf16.mxu1 %v6659_v62 }
 0x178   : > { %v5529_v59 = vpop.f32.mrb[37].mxu1  ;;  %v5457_v50 = vpop.f32.mrb[37].mxu0 }
 0x179   : > { %v5530_v22 = vadd.f32 %v5529_v59, %v5528_v20  ;;  %v5531_v21 = vpop.f32.mrb[38].mxu1  ;;  %v7515_v61 = vadd.f32 %v5457_v50, %v5456_v23  ;;  %v5459_v11 = vpop.f32.mrb[38].mxu0 }
 0x17a   : > { %v5532_v55 = vpop.f32.mrb[39].mxu1  ;;  %v5460_v19 = vpop.f32.mrb[39].mxu0 }
 0x17b   : > { %v7513_v39 = vadd.f32 %v5530_v22, %v7445_v5  ;;  %v5533_v44 = vadd.f32 %v5532_v55, %v5531_v21  ;;  %v7520_v16 = vadd.f32 %v5460_v19, %v5459_v11 }
 0x17d   : > { %v7518_v45 = vadd.f32 %v5533_v44, %v7447_v43  ;;  %v6506_v43 = vld [vmem:[%s8711_s3 + $0x120] sm:$0xff]   ;;  %v6514_v44 = vld [vmem:[%s8711_s3 + $0x158] sm:$0xff]  }
 0x17e   : > { %5718 = vmatprep.subr.bf16.mxu0 %v6506_v43  ;;  %6098 = vmatpush3.bf16.msra.mxu1 %v6514_v44 }
 0x17f   : > { %v5534_v7 = vpop.f32.mrb[40].mxu1  ;;  %v5462_v6 = vpop.f32.mrb[40].mxu0  ;;  %5719 = vmatpush3.bf16.msra.mxu0 %v6507_v38  ;;  %6099 = vmatprep.subr.bf16.mxu1 %v6659_v62 }
 0x180   : > { %v5535_v46 = vpop.f32.mrb[41].mxu1  ;;  %v5463_v47 = vpop.f32.mrb[41].mxu0 }
 0x181   : > { %v5536_v13 = vadd.f32 %v5535_v46, %v5534_v7  ;;  %v5537_v53 = vpop.f32.mrb[42].mxu1  ;;  %v5464_v33 = vadd.f32 %v5463_v47, %v5462_v6  ;;  %v5465_v15 = vpop.f32.mrb[42].mxu0 }
 0x182   : > { %v5538_v5 = vpop.f32.mrb[43].mxu1  ;;  %v5466_v24 = vpop.f32.mrb[43].mxu0 }
 0x183   : > { %v7523_v3 = vadd.f32 %v5536_v13, %v7455_v37  ;;  %v5539_v14 = vadd.f32 %v5538_v5, %v5537_v53  ;;  %v7538_v37 = vadd.f32 %v5464_v33, %v7461_v52  ;;  %v5467_v35 = vadd.f32 %v5466_v24, %v5465_v15  ;;  %v6508_v53 = vld [vmem:[%s8711_s3 + $0x128] sm:$0xff]  }
 0x184   : > { %5720 = vmatprep.subr.bf16.mxu0 %v6508_v53 }
 0x185   : > { %v7541_v63 = vadd.f32 %v5539_v14, %v7457_v60  ;;  %v7545_v51 = vadd.f32 %v5467_v35, %v7463_v28 }
 0x187   : > { %v5540_v10 = vpop.f32.mrb[44].mxu1  ;;  %v5468_v52 = vpop.f32.mrb[44].mxu0 }
 0x188   : > { %v5541_v4 = vpop.f32.mrb[45].mxu1  ;;  %v5469_v60 = vpop.f32.mrb[45].mxu0 }
 0x189   : > { %v5542_v58 = vadd.f32 %v5541_v4, %v5540_v10  ;;  %v5543_v54 = vpop.f32.mrb[46].mxu1  ;;  %v5470_v2 = vadd.f32 %v5469_v60, %v5468_v52  ;;  %v5471_v48 = vpop.f32.mrb[46].mxu0  ;;  %v6517_v10 = vld [vmem:[%s8711_s3 + $0x168] sm:$0xff]   ;;  %v6519_v60 = vld [vmem:[%s8711_s3 + $0x170] sm:$0xff]  }
 0x18a   : > { %v5544_v8 = vpop.f32.mrb[47].mxu1  ;;  %v5472_v20 = vpop.f32.mrb[47].mxu0 }
 0x18b   : > { %v7552_v1 = vadd.f32 %v5542_v58, %v7465_v42  ;;  %v5545_v28 = vadd.f32 %v5544_v8, %v5543_v54  ;;  %v7558_v59 = vadd.f32 %v7459_v17, %v5470_v2 }
 0x18d   : > { %v7561_v22 = vadd.f32 %v5545_v28, %v7470_v56 }
 0x18f   : > { %v5546_v21 = vpop.f32.mrb[48].mxu1  ;;  %v5618_v42 = vpop.f32.mrb[48].mxu0 }
 0x190   : > { %v5547_v23 = vpop.f32.mrb[49].mxu1  ;;  %v5619_v50 = vpop.f32.mrb[49].mxu0 }
 0x191   : > { %v5548_v18 = vadd.f32 %v5547_v23, %v5546_v21  ;;  %v5549_v55 = vpop.f32.mrb[50].mxu1  ;;  %v5620_v11 = vadd.f32 %v5619_v50, %v5618_v42  ;;  %v5621_v56 = vpop.f32.mrb[50].mxu0 }
 0x192   : > { %v5550_v9 = vpop.f32.mrb[51].mxu1  ;;  %v5622_v7 = vpop.f32.mrb[51].mxu0 }
 0x193   : > { %v7568_v17 = vadd.f32 %v5548_v18, %v7484_v34  ;;  %v5551_v19 = vadd.f32 %v5550_v9, %v5549_v55  ;;  %v5623_v6 = vadd.f32 %v5622_v7, %v5621_v56  ;;  %v7574_v13 = vadd.f32 %v7482_v32, %v5620_v11  ;;  %v6510_v34 = vld [vmem:[%s8711_s3 + $0xe8] sm:$0xff]   ;;  %v6516_v32 = vld [vmem:[%s8711_s3 + $0x160] sm:$0xff]   ;;  %v6515_v18 = vld [vmem:[%s8711_s3 + $0xf0] sm:$0xff]  }
 0x194   : > { %5721 = vmatpush3.bf16.msra.mxu0 %v6510_v34  ;;  %6100 = vmatpush3.bf16.msra.mxu1 %v6516_v32  ;;  %v6518_v11 = vld [vmem:[%s8711_s3 + $0x138] sm:$0xff]  }
 0x195   : > { %v7571_v46 = vadd.f32 %v5551_v19, %v7489_v57  ;;  %v7584_v5 = vadd.f32 %v7487_v30, %v5623_v6  ;;  %6101 = vmatprep.subr.bf16.mxu1 %v6659_v62  ;;  %v6521_v56 = vld [vmem:[%s8711_s3 + $0x178] sm:$0xff]  }
 0x197   : > { %v5552_v47 = vpop.f32.mrb[52].mxu1  ;;  %v5624_v33 = vpop.f32.mrb[52].mxu0 }
 0x198   : > { %v5553_v57 = vpop.f32.mrb[53].mxu1  ;;  %v5625_v43 = vpop.f32.mrb[53].mxu0  ;;  %6102 = vmatpush3.bf16.msra.mxu1 %v6517_v10 }
 0x199   : > { %v5554_v15 = vadd.f32 %v5553_v57, %v5552_v47  ;;  %v5555_v14 = vpop.f32.mrb[54].mxu1  ;;  %v5626_v30 = vadd.f32 %v5625_v43, %v5624_v33  ;;  %v5627_v38 = vpop.f32.mrb[54].mxu0  ;;  %6103 = vmatprep.subr.bf16.mxu1 %v6659_v62 }
 0x19a   : > { %v5556_v12 = vpop.f32.mrb[55].mxu1  ;;  %v5628_v25 = vpop.f32.mrb[55].mxu0 }
 0x19b   : > { %v7591_v24 = vadd.f32 %v5554_v15, %v7494_v41  ;;  %v5557_v35 = vadd.f32 %v5556_v12, %v5555_v14  ;;  %v5629_v52 = vadd.f32 %v5628_v25, %v5627_v38  ;;  %v7600_v58 = vadd.f32 %v7492_v40, %v5626_v30  ;;  %v6513_v40 = vld [vmem:[%s8711_s3 + $0x130] sm:$0xff]  }
 0x19c   : > { %6104 = vmatpush3.bf16.msra.mxu1 %v6519_v60  ;;  %5722 = vmatprep.subr.bf16.mxu0 %v6513_v40  ;;  %v7664_v40 = vpop.permute.xlu0 %2374 }
 0x19d   : > { %v7597_v4 = vadd.f32 %v5557_v35, %v7499_v0  ;;  %v7604_v54 = vadd.f32 %v7497_v29, %v5629_v52  ;;  %6105 = vmatprep.subr.bf16.mxu1 %v6659_v62  ;;  %5723 = vmatpush3.bf16.msra.mxu0 %v6515_v18 }
 0x19e   : > { %5724 = vmatprep.subr.bf16.mxu0 %v6518_v11 }
 0x19f   : > { %v5558_v41 = vpop.f32.mrb[56].mxu1  ;;  %v5630_v2 = vpop.f32.mrb[56].mxu0 }
 0x1a0   : > { %v5559_v8 = vpop.f32.mrb[57].mxu1  ;;  %v5631_v48 = vpop.f32.mrb[57].mxu0  ;;  %6106 = vmatpush3.bf16.msra.mxu1 %v6521_v56 }
 0x1a1   : > { %v5560_v28 = vadd.f32 %v5559_v8, %v5558_v41  ;;  %v5561_v0 = vpop.f32.mrb[58].mxu1  ;;  %v5632_v20 = vadd.f32 %v5631_v48, %v5630_v2  ;;  %v5633_v21 = vpop.f32.mrb[58].mxu0  ;;  %6143 = vmatprep.subr.bf16.mxu1 %v6659_v62 }
 0x1a2   : > { %v5562_v36 = vpop.f32.mrb[59].mxu1  ;;  %v5634_v42 = vpop.f32.mrb[59].mxu0 }
 0x1a3   : > { %v7614_v29 = vadd.f32 %v5560_v28, %v7504_v27  ;;  %v5563_v23 = vadd.f32 %v5562_v36, %v5561_v0  ;;  %v5635_v50 = vadd.f32 %v5634_v42, %v5633_v21  ;;  %v7623_v9 = vadd.f32 %v7502_v31, %v5632_v20  ;;  %v7670_v56 = vpop.permute.xlu0 %2379 }
 0x1a5   : > { %v7620_v55 = vadd.f32 %v5563_v23, %v7509_v49  ;;  %v7626_v27 = vadd.f32 %v7507_v26, %v5635_v50  ;;  %v6520_v49 = vld [vmem:[%s8711_s3 + $0xf8] sm:$0xff]  }
 0x1a6   : > { %5725 = vmatpush3.bf16.msra.mxu0 %v6520_v49 }
 0x1a7   : > { %v5564_v44 = vpop.f32.mrb[60].mxu1  ;;  %v5636_v31 = vpop.f32.mrb[60].mxu0 }
 0x1a8   : > { %v5565_v19 = vpop.f32.mrb[61].mxu1  ;;  %v5637_v26 = vpop.f32.mrb[61].mxu0 }
 0x1a9   : > { %v5566_v7 = vadd.f32 %v5565_v19, %v5564_v44  ;;  %v5567_v6 = vpop.f32.mrb[62].mxu1  ;;  %v5638_v47 = vadd.f32 %v5637_v26, %v5636_v31  ;;  %v5639_v32 = vpop.f32.mrb[62].mxu0 }
 0x1aa   : > { %v5568_v53 = vpop.f32.mrb[63].mxu1  ;;  %v5640_v33 = vpop.f32.mrb[63].mxu0 }
 0x1ab   : > { %v7639_v34 = vadd.f32 %v5566_v7, %v7515_v61  ;;  %v5569_v57 = vadd.f32 %v5568_v53, %v5567_v6  ;;  %v5641_v14 = vadd.f32 %v5640_v33, %v5639_v32  ;;  %v7647_v43 = vadd.f32 %v7513_v39, %v5638_v47  ;;  %v7675_v26 = vpop.permute.xlu0 %2394 }
 0x1ad   : > { %v7644_v15 = vadd.f32 %v5569_v57, %v7520_v16  ;;  %v7650_v30 = vadd.f32 %v7518_v45, %v5641_v14 }
 0x1af   : > { %v5570_v12 = vpop.f32.mrb[64].mxu1  ;;  %v5642_v38 = vpop.f32.mrb[64].mxu0 }
 0x1b0   : > { %v5571_v61 = vpop.f32.mrb[65].mxu1  ;;  %v5643_v25 = vpop.f32.mrb[65].mxu0 }
 0x1b1   : > { %v5572_v35 = vadd.f32 %v5571_v61, %v5570_v12  ;;  %v5573_v10 = vpop.f32.mrb[66].mxu1  ;;  %v5644_v41 = vadd.f32 %v5643_v25, %v5642_v38  ;;  %v5645_v60 = vpop.f32.mrb[66].mxu0 }
 0x1b2   : > { %v5574_v52 = vpop.f32.mrb[67].mxu1  ;;  %v5646_v2 = vpop.f32.mrb[67].mxu0 }
 0x1b3   : > { %v5575_v8 = vadd.f32 %v5574_v52, %v5573_v10  ;;  %v7653_v16 = vadd.f32 %v5572_v35, %v7538_v37  ;;  %v5647_v28 = vadd.f32 %v5646_v2, %v5645_v60  ;;  %v7659_v45 = vadd.f32 %v7523_v3, %v5644_v41  ;;  %v7686_v57 = vpop.permute.xlu0 %2404 }
 0x1b5   : > { %v7656_v39 = vadd.f32 %v5575_v8, %v7545_v51  ;;  %v7662_v48 = vadd.f32 %v7541_v63, %v5647_v28 }
 0x1b7   : > { %v5576_v0 = vpop.f32.mrb[68].mxu1  ;;  %v5648_v20 = vpop.f32.mrb[68].mxu0 }
 0x1b8   : > { %v5577_v36 = vpop.f32.mrb[69].mxu1  ;;  %v5649_v37 = vpop.f32.mrb[69].mxu0 }
 0x1b9   : > { %v5578_v21 = vadd.f32 %v5577_v36, %v5576_v0  ;;  %v5579_v23 = vpop.f32.mrb[70].mxu1  ;;  %v5650_v18 = vadd.f32 %v5649_v37, %v5648_v20  ;;  %v5651_v50 = vpop.f32.mrb[70].mxu0 }
 0x1ba   : > { %v5580_v42 = vpop.f32.mrb[71].mxu1  ;;  %v5652_v44 = vpop.f32.mrb[71].mxu0 }
 0x1bb   : > { %v1554_v51 = vadd.f32 %v5578_v21, %v7558_v59  ;;  %v5653_v11 = vadd.f32 %v5652_v44, %v5651_v50  ;;  %v7668_v3 = vadd.f32 %v7552_v1, %v5650_v18  ;;  %v6526_v1 = vld [vmem:[%s8711_s3 + $0x40] sm:$0xff]  }
 0x1bc   : > { %5797 = vmatprep.subr.bf16.mxu0 %v6526_v1 }
 0x1bd   : > { %v7673_v63 = vadd.f32 %v7561_v22, %v5653_v11 }
 0x1bf   : > { %v5654_v19 = vpop.f32.mrb[72].mxu0 }
 0x1c0   : > { %v5655_v49 = vpop.f32.mrb[73].mxu0 }
 0x1c1   : > { %v5656_v31 = vadd.f32 %v5655_v49, %v5654_v19  ;;  %v5657_v7 = vpop.f32.mrb[74].mxu0 }
 0x1c2   : > { %v5658_v6 = vpop.f32.mrb[75].mxu0 }
 0x1c3   : > { %v5659_v53 = vadd.f32 %v5658_v6, %v5657_v7  ;;  %v7678_v59 = vadd.f32 %v7568_v17, %v5656_v31 }
 0x1c5   : > { %v7681_v47 = vadd.f32 %v7571_v46, %v5659_v53  ;;  %v7694_v46 = vpop.permute.xlu0 %2414 }
 0x1c7   : > { %v5660_v22 = vpop.f32.mrb[76].mxu0 }
 0x1c8   : > { %v5661_v32 = vpop.f32.mrb[77].mxu0 }
 0x1c9   : > { %v5662_v33 = vadd.f32 %v5661_v32, %v5660_v22  ;;  %v5663_v14 = vpop.f32.mrb[78].mxu0  ;;  %v7699_v2 = vpop.permute.xlu0 %2424 }
 0x1ca   : > { %v5664_v12 = vpop.f32.mrb[79].mxu0 }
 0x1cb   : > { %v5665_v61 = vadd.f32 %v5664_v12, %v5663_v14  ;;  %v7689_v38 = vadd.f32 %v7591_v24, %v5662_v33  ;;  %v2385_v12 = vpop.permute.xlu1 %2384 }
 0x1cd   : > { %v7692_v17 = vadd.f32 %v7597_v4, %v5665_v61  ;;  %v7704_v21 = vpop.permute.xlu0 %2434 }
 0x1cf   : > { %v5666_v35 = vpop.f32.mrb[80].mxu0 }
 0x1d0   : > { %v5667_v10 = vpop.f32.mrb[81].mxu0 }
 0x1d1   : > { %v5668_v25 = vadd.f32 %v5667_v10, %v5666_v35  ;;  %v5669_v52 = vpop.f32.mrb[82].mxu0  ;;  %v7712_v18 = vpop.permute.xlu0 %2444  ;;  %v7733_v35 = vld [vmem:[%s8710_s2] ss:$0 sm:$0xff] }
 0x1d2   : > { %v5670_v41 = vpop.f32.mrb[83].mxu0 }
 0x1d3   : > { %v5671_v60 = vadd.f32 %v5670_v41, %v5669_v52  ;;  %v7697_v8 = vadd.f32 %v7614_v29, %v5668_v25  ;;  %v2390_v41 = vpop.permute.xlu1 %2389 }
 0x1d5   : > { %v7702_v28 = vadd.f32 %v7620_v55, %v5671_v60  ;;  %v7720_v6 = vpop.permute.xlu0 %2454 }
 0x1d7   : > { %v5672_v24 = vpop.f32.mrb[84].mxu0 }
 0x1d8   : > { %v5673_v0 = vpop.f32.mrb[85].mxu0 }
 0x1d9   : > { %v5674_v4 = vadd.f32 %v5673_v0, %v5672_v24  ;;  %v5675_v36 = vpop.f32.mrb[86].mxu0 }
 0x1da   : > { %v5676_v20 = vpop.f32.mrb[87].mxu0 }
 0x1db   : > { %v5677_v23 = vadd.f32 %v5676_v20, %v5675_v36  ;;  %v7707_v37 = vadd.f32 %v7639_v34, %v5674_v4 }
 0x1dd   : > { %v7710_v42 = vadd.f32 %v7644_v15, %v5677_v23 }
 0x1df   : > { %v5678_v29 = vpop.f32.mrb[88].mxu0 }
 0x1e0   : > { %v5679_v50 = vpop.f32.mrb[89].mxu0 }
 0x1e1   : > { %v7714_v55 = vadd.f32 %v5679_v50, %v5678_v29  ;;  %v5681_v44 = vpop.f32.mrb[90].mxu0 }
 0x1e2   : > { %v5682_v11 = vpop.f32.mrb[91].mxu0 }
 0x1e3   : > { %v7716_v19 = vadd.f32 %v5682_v11, %v5681_v44 }
 0x1e7   : > { %v6049_v49 = vpop.f32.mrb[72].mxu1  ;;  %v5684_v53 = vpop.f32.mrb[92].mxu0 }
 0x1e8   : > { %v7718_v31 = vadd.f32 %v6049_v49, %v1554_v51  ;;  %v1673_v7 = vpop.f32.mrb[73].mxu1  ;;  %v5685_v22 = vpop.f32.mrb[93].mxu0 }
 0x1e9   : > { %v7723_v34 = vadd.f32 %v1673_v7, %v7653_v16  ;;  %v6050_v15 = vpop.f32.mrb[74].mxu1  ;;  %v7728_v33 = vadd.f32 %v5685_v22, %v5684_v53  ;;  %v5687_v14 = vpop.f32.mrb[94].mxu0 }
 0x1ea   : > { %v1676_v1 = vpop.f32.mrb[75].mxu1  ;;  %v5688_v61 = vpop.f32.mrb[95].mxu0 }
 0x1eb   : > { %v7726_v32 = vadd.f32 %v1676_v1, %v7656_v39  ;;  %v7735_v16 = vpop.permute.xlu0 %2464  ;;  %v2400_v15 = vpop.permute.xlu1 %2399 }
 0x1ef   : > { %v6069_v51 = vpop.f32.mrb[0].mxu1  ;;  %v2370_v44 = vpop.permute.xlu0 %2369 }
 0x1f0   : > { %v6265_v10 = vadd.f32 %v7600_v58, %v6069_v51  ;;  %v2174_v25 = vpop.f32.mrb[1].mxu1 }
 0x1f1   : > { %v6268_v52 = vadd.f32 %v7574_v13, %v2174_v25  ;;  %v6070_v39 = vpop.f32.mrb[2].mxu1 }
 0x1f2   : > { %v2300_v60 = vadd.f32 %v6265_v10, %v7733_v35  ;;  %v6271_v24 = vadd.f32 %v7604_v54, %v6070_v39  ;;  %v2177_v0 = vpop.f32.mrb[3].mxu1 }
 0x1f3   : > { %v2298_v4 = vadd.f32 %v6268_v52, %v7733_v35  ;;  %v6274_v36 = vadd.f32 %v7584_v5, %v2177_v0 }
 0x1f4   : > { %v2323_v20 = vmax.f32 %v2300_v60, 0.0  ;;  %v2301_v23 = vadd.f32 %v6271_v24, %v7733_v35 }
 0x1f5   : > { %v2299_v29 = vadd.f32 %v6274_v36, %v7733_v35  ;;  %v2321_v58 = vmax.f32 %v2298_v4, 0.0 }
 0x1f6   : > { %v2484_v50 = vmul.f32 %v7670_v56, %v2323_v20  ;;  %v2324_v13 = vmax.f32 %v2301_v23, 0.0 }
 0x1f7   : > { %v2322_v11 = vmax.f32 %v2299_v29, 0.0  ;;  %v2482_v49 = vmul.f32 %v2370_v44, %v2321_v58  ;;  %v6073_v7 = vpop.f32.mrb[4].mxu1  ;;  %v7751_v29 = vpop.permute.xlu1 %2409 }
 0x1f8   : > { %v5365_v54 = vpack.c.bf16 %v2484_v50, %v2484_v50  ;;  %v2485_v53 = vmul.f32 %v2385_v12, %v2324_v13  ;;  %v6277_v1 = vadd.f32 %v7647_v43, %v6073_v7  ;;  %v2190_v5 = vpop.f32.mrb[5].mxu1 }
 0x1f9   : > { %v2483_v22 = vmul.f32 %v7664_v40, %v2322_v11  ;;  %v5363_v14 = vpack.c.bf16 %v2482_v49, %v2482_v49  ;;  %v6280_v61 = vadd.f32 %v7623_v9, %v2190_v5  ;;  %v6074_v51 = vpop.f32.mrb[6].mxu1  ;;  %v2814_v11 = vld [vmem:[#allocation3] sm:$0xf] }
 0x1fa   : > { %v2601_v56 = vshrl.u32 %v5365_v54, 16  ;;  %v5366_v10 = vpack.c.bf16 %v2485_v53, %v2485_v53  ;;  %v2304_v25 = vadd.f32 %v6277_v1, %v7733_v35  ;;  %v2193_v52 = vpop.f32.mrb[7].mxu1  ;;  %v2604_v39 = vshll.u32 %v5365_v54, 16 }
 0x1fb   : > { %v5364_v60 = vpack.c.bf16 %v2483_v22, %v2483_v22  ;;  %v2584_v12 = vshrl.u32 %v5363_v14, 16  ;;  %v2302_v24 = vadd.f32 %v6280_v61, %v7733_v35  ;;  %v2587_v4 = vshll.u32 %v5363_v14, 16 }
 0x1fc   : > { %v2603_v43 = vrot.slane %v2601_v56, 7  ;;  %v2610_v0 = vshrl.u32 %v5366_v10, 16  ;;  %v2327_v40 = vmax.f32 %v2304_v25, 0.0  ;;  %v2613_v36 = vshll.u32 %v5366_v10, 16 }
 0x1fd   : > { %v2592_v20 = vshrl.u32 %v5364_v60, 16  ;;  %v2586_v23 = vrot.slane %v2584_v12, 7  ;;  %v2325_v9 = vmax.f32 %v2302_v24, 0.0  ;;  %v2595_v13 = vshll.u32 %v5364_v60, 16 }
 0x1fe   : > { %v2606_v58 = vor.u32 %v2604_v39, %v2603_v43  ;;  %v2612_v50 = vrot.slane %v2610_v0, 7  ;;  %v2488_v49 = vmul.f32 %v2400_v15, %v2327_v40  ;;  %v2608_v7 = vrot.slane %v2603_v43, 4 }
 0x1ff   : > { %v2594_v53 = vrot.slane %v2592_v20, 7  ;;  %v2589_v1 = vor.u32 %v2587_v4, %v2586_v23  ;;  %v2486_v5 = vmul.f32 %v2390_v41, %v2325_v9  ;;  %v6077_v22 = vpop.f32.mrb[8].mxu1  ;;  %v2590_v61 = vrot.slane %v2586_v23, 4  ;;  %v2420_v23 = vpop.permute.xlu1 %2419 }
 0x200   : > { %v2615_v14 = vor.u32 %v2613_v36, %v2612_v50  ;;  %v5369_v56 = vpack.c.bf16 %v2488_v49, %v2488_v49  ;;  %v6283_v10 = vadd.f32 %v7650_v30, %v6074_v51  ;;  %v2206_v25 = vpop.f32.mrb[9].mxu1  ;;  %v6286_v44 = vadd.f32 %v7626_v27, %v2193_v52 }
 0x201   : > { %v2597_v39 = vor.u32 %v2595_v13, %v2594_v53  ;;  %v2599_v60 = vrot.slane %v2594_v53, 4  ;;  %v2815_v15 = vsel %vm7755_vm10, %v2589_v1, %v2814_v11  ;;  %v5367_v12 = vpack.c.bf16 %v2486_v5, %v2486_v5  ;;  %v6078_v24 = vpop.f32.mrb[10].mxu1 }
 0x202   : > { %v2616_v43 = vsel %vm7761_vm11, %v2608_v7, %v2615_v14  ;;  %2816 = vst [vmem:[#allocation3] sm:$0xf] %v2815_v15  ;;  %v2637_v0 = vshrl.u32 %v5369_v56, 16  ;;  %v2640_v41 = vshll.u32 %v5369_v56, 16  ;;  %v2305_v4 = vadd.f32 %v6283_v10, %v7733_v35  ;;  %v2209_v40 = vpop.f32.mrb[11].mxu1 }
 0x203   : > { %2819 = vst [vmem:[#allocation3 + $0xc] sm:$0xf] %v2616_v43  ;;  %v2607_v30 = vsel %vm7761_vm11, %v2599_v60, %v2606_v58  ;;  %v2598_v51 = vsel %vm7761_vm11, %v2590_v61, %v2597_v39  ;;  %v2619_v36 = vshrl.u32 %v5367_v12, 16  ;;  %v2622_v20 = vshll.u32 %v5367_v12, 16  ;;  %v7796_v12 = vpop.permute.xlu1 %2429 }
 0x204   : > { %2818 = vst [vmem:[#allocation3 + $0x8] sm:$0xf] %v2607_v30  ;;  %2817 = vst [vmem:[#allocation3 + $0x4] sm:$0xf] %v2598_v51  ;;  %v2639_v9 = vrot.slane %v2637_v0, 7  ;;  %v2328_v13 = vmax.f32 %v2305_v4, 0.0  ;;  %v6289_v11 = vadd.f32 %v7668_v3, %v6077_v22  ;;  %v6292_v7 = vadd.f32 %v7659_v45, %v2206_v25 }
 0x205   : > { %v7777_v49 = vrot.slane %v2619_v36, 7  ;;  %v6295_v58 = vadd.f32 %v7673_v63, %v6078_v24  ;;  %v6298_v53 = vadd.f32 %v7662_v48, %v2209_v40  ;;  %v2617_v1 = vrot.slane %v2612_v50, 4 }
 0x206   : > { %v7782_v5 = vor.u32 %v2640_v41, %v2639_v9  ;;  %v2489_v14 = vmul.f32 %v7686_v57, %v2328_v13  ;;  %v2303_v61 = vadd.f32 %v6286_v44, %v7733_v35  ;;  %v2644_v56 = vrot.slane %v2639_v9, 4 }
 0x207   : > { %v2624_v27 = vor.u32 %v2622_v20, %v7777_v49  ;;  %v2308_v3 = vadd.f32 %v6289_v11, %v7733_v35  ;;  %v2306_v52 = vadd.f32 %v6292_v7, %v7733_v35  ;;  %v6081_v22 = vpop.f32.mrb[12].mxu1  ;;  %v2309_v63 = vadd.f32 %v6295_v58, %v7733_v35 }
 0x208   : > { %v5370_v45 = vpack.c.bf16 %v2489_v14, %v2489_v14  ;;  %v2326_v10 = vmax.f32 %v2303_v61, 0.0  ;;  %v2307_v48 = vadd.f32 %v6298_v53, %v7733_v35  ;;  %v2222_v50 = vpop.f32.mrb[13].mxu1  ;;  %v6301_v60 = vadd.f32 %v7689_v38, %v6081_v22 }
 0x209   : > { %v2625_v57 = vsel %vm7761_vm11, %v2617_v1, %v2624_v27  ;;  %v2331_v25 = vmax.f32 %v2308_v3, 0.0  ;;  %v2329_v39 = vmax.f32 %v2306_v52, 0.0  ;;  %v7794_v15 = vpop.f32.mrb[14].mxu1  ;;  %v2332_v41 = vmax.f32 %v2309_v63, 0.0  ;;  %v2440_v52 = vpop.permute.xlu1 %2439 }
 0x20a   : > { %2820 = vst [vmem:[#allocation3 + $0x10] sm:$0xf] %v2625_v57  ;;  %v2646_v24 = vshrl.u32 %v5370_v45, 16  ;;  %v2649_v43 = vshll.u32 %v5370_v45, 16  ;;  %v2487_v0 = vmul.f32 %v7675_v26, %v2326_v10  ;;  %v2225_v4 = vpop.f32.mrb[15].mxu1  ;;  %v2330_v51 = vmax.f32 %v2307_v48, 0.0 }
 0x20b   : > { %v2492_v40 = vmul.f32 %v2420_v23, %v2331_v25  ;;  %v2490_v30 = vmul.f32 %v7751_v29, %v2329_v39  ;;  %v2312_v36 = vadd.f32 %v6301_v60, %v7733_v35  ;;  %v2493_v38 = vmul.f32 %v7699_v2, %v2332_v41 }
 0x20c   : > { %v2648_v20 = vrot.slane %v2646_v24, 7  ;;  %v5368_v9 = vpack.c.bf16 %v2487_v0, %v2487_v0  ;;  %v6304_v13 = vadd.f32 %v7678_v59, %v2222_v50  ;;  %v2491_v7 = vmul.f32 %v7694_v46, %v2330_v51 }
 0x20d   : > { %v5373_v44 = vpack.c.bf16 %v2492_v40, %v2492_v40  ;;  %v5371_v11 = vpack.c.bf16 %v2490_v30, %v2490_v30  ;;  %v2335_v58 = vmax.f32 %v2312_v36, 0.0  ;;  %v2626_v26 = vrot.slane %v7777_v49, 4 }
 0x20e   : > { %v2651_v53 = vor.u32 %v2649_v43, %v2648_v20  ;;  %v2628_v23 = vshrl.u32 %v5368_v9, 16  ;;  %v2631_v1 = vshll.u32 %v5368_v9, 16  ;;  %v5374_v22 = vpack.c.bf16 %v2493_v38, %v2493_v38 }
 0x20f   : > { %v2673_v29 = vshrl.u32 %v5373_v44, 16  ;;  %v2676_v14 = vshll.u32 %v5373_v44, 16  ;;  %v2655_v61 = vshrl.u32 %v5371_v11, 16  ;;  %v2658_v27 = vshll.u32 %v5371_v11, 16  ;;  %v6085_v3 = vpop.f32.mrb[16].mxu1 }
 0x210   : > { %v2652_v2 = vsel %vm7761_vm11, %v2644_v56, %v2651_v53  ;;  %v2630_v59 = vrot.slane %v2628_v23, 7  ;;  %v5372_v45 = vpack.c.bf16 %v2491_v7, %v2491_v7  ;;  %v2238_v10 = vpop.f32.mrb[17].mxu1  ;;  %v2496_v49 = vmul.f32 %v2440_v52, %v2335_v58 }
 0x211   : > { %2823 = vst [vmem:[#allocation3 + $0x1c] sm:$0xf] %v2652_v2  ;;  %v2675_v46 = vrot.slane %v2673_v29, 7  ;;  %v2657_v63 = vrot.slane %v2655_v61, 7  ;;  %v2310_v48 = vadd.f32 %v6304_v13, %v7733_v35  ;;  %v6086_v50 = vpop.f32.mrb[18].mxu1  ;;  %v2653_v57 = vrot.slane %v2648_v20, 4  ;;  %v2450_v2 = vpop.permute.xlu1 %2449 }
 0x212   : > { %v2633_v25 = vor.u32 %v2631_v1, %v2630_v59  ;;  %v2635_v39 = vrot.slane %v2630_v59, 4  ;;  %v2682_v60 = vshrl.u32 %v5374_v22, 16  ;;  %v2241_v24 = vpop.f32.mrb[19].mxu1  ;;  %v2685_v56 = vshll.u32 %v5374_v22, 16 }
 0x213   : > { %v2678_v43 = vor.u32 %v2676_v14, %v2675_v46  ;;  %v2680_v0 = vrot.slane %v2675_v46, 4  ;;  %v2660_v41 = vor.u32 %v2658_v27, %v2657_v63  ;;  %v2664_v36 = vshrl.u32 %v5372_v45, 16 }
 0x214   : > { %v2634_v40 = vsel %vm7761_vm11, %v2626_v26, %v2633_v25  ;;  %v2643_v30 = vsel %vm7761_vm11, %v2635_v39, %v7782_v5  ;;  %v7813_v51 = vrot.slane %v2682_v60, 7  ;;  %v2662_v9 = vrot.slane %v2657_v63, 4 }
 0x215   : > { %2821 = vst [vmem:[#allocation3 + $0x14] sm:$0xf] %v2634_v40  ;;  %2822 = vst [vmem:[#allocation3 + $0x18] sm:$0xf] %v2643_v30  ;;  %v2661_v20 = vsel %vm7761_vm11, %v2653_v57, %v2660_v41  ;;  %v5377_v38 = vpack.c.bf16 %v2496_v49, %v2496_v49  ;;  %v2333_v13 = vmax.f32 %v2310_v48, 0.0  ;;  %v2666_v11 = vrot.slane %v2664_v36, 7 }
 0x216   : > { %2824 = vst [vmem:[#allocation3 + $0x20] sm:$0xf] %v2661_v20  ;;  %v2687_v44 = vor.u32 %v2685_v56, %v7813_v51  ;;  %v2667_v7 = vshll.u32 %v5372_v45, 16  ;;  %v6307_v58 = vadd.f32 %v7692_v17, %v7794_v15  ;;  %v6310_v23 = vadd.f32 %v7681_v47, %v2225_v4 }
 0x217   : > { %v2709_v5 = vshrl.u32 %v5377_v38, 16  ;;  %v2712_v26 = vshll.u32 %v5377_v38, 16  ;;  %v2494_v53 = vmul.f32 %v7796_v12, %v2333_v13  ;;  %v6089_v1 = vpop.f32.mrb[76].mxu1  ;;  %v2671_v61 = vrot.slane %v2666_v11, 4 }
 0x218   : > { %v2688_v29 = vsel %vm7761_vm11, %v2680_v0, %v2687_v44  ;;  %v2669_v14 = vor.u32 %v2667_v7, %v2666_v11  ;;  %v2313_v27 = vadd.f32 %v6307_v58, %v7733_v35  ;;  %v7825_v52 = vpop.f32.mrb[77].mxu1  ;;  %v2311_v15 = vadd.f32 %v6310_v23, %v7733_v35 }
 0x219   : > { %2827 = vst [vmem:[#allocation3 + $0x2c] sm:$0xf] %v2688_v29  ;;  %v2711_v59 = vrot.slane %v2709_v5, 7  ;;  %v5375_v17 = vpack.c.bf16 %v2494_v53, %v2494_v53  ;;  %v6313_v12 = vadd.f32 %v7707_v37, %v6085_v3  ;;  %v6090_v22 = vpop.f32.mrb[78].mxu1  ;;  %v2679_v4 = vsel %vm7761_vm11, %v2671_v61, %v2678_v43 }
 0x21a   : > { %v2670_v47 = vsel %vm7761_vm11, %v2662_v9, %v2669_v14  ;;  %v2336_v45 = vmax.f32 %v2313_v27, 0.0  ;;  %v6316_v46 = vadd.f32 %v7697_v8, %v2238_v10  ;;  %v7834_v63 = vpop.f32.mrb[79].mxu1  ;;  %v2689_v49 = vrot.slane %v7813_v51, 4  ;;  %2826 = vst [vmem:[#allocation3 + $0x28] sm:$0xf] %v2679_v4  ;;  %v2460_v51 = vpop.permute.xlu1 %2459 }
 0x21b   : > { %2825 = vst [vmem:[#allocation3 + $0x24] sm:$0xf] %v2670_v47  ;;  %v2714_v48 = vor.u32 %v2712_v26, %v2711_v59  ;;  %v2691_v57 = vshrl.u32 %v5375_v17, 16  ;;  %v2694_v25 = vshll.u32 %v5375_v17, 16  ;;  %v2334_v3 = vmax.f32 %v2311_v15, 0.0 }
 0x21c   : > { %v2497_v37 = vmul.f32 %v7712_v18, %v2336_v45  ;;  %v2316_v39 = vadd.f32 %v6313_v12, %v7733_v35  ;;  %v2314_v60 = vadd.f32 %v6316_v46, %v7733_v35  ;;  %v6319_v0 = vadd.f32 %v7710_v42, %v6086_v50 }
 0x21d   : > { %v2693_v43 = vrot.slane %v2691_v57, 7  ;;  %v6322_v8 = vadd.f32 %v7702_v28, %v2241_v24  ;;  %v2263_v10 = vadd.f32 %v6089_v1, %v7728_v33  ;;  %v2495_v56 = vmul.f32 %v7704_v21, %v2334_v3 }
 0x21e   : > { %v5378_v41 = vpack.c.bf16 %v2497_v37, %v2497_v37  ;;  %v2339_v40 = vmax.f32 %v2316_v39, 0.0  ;;  %v2337_v30 = vmax.f32 %v2314_v60, 0.0  ;;  %v2716_v36 = vrot.slane %v2711_v59, 4 }
 0x21f   : > { %v2696_v18 = vor.u32 %v2694_v25, %v2693_v43  ;;  %v2317_v20 = vadd.f32 %v6319_v0, %v7733_v35  ;;  %v2315_v9 = vadd.f32 %v6322_v8, %v7733_v35  ;;  %v2698_v38 = vrot.slane %v2693_v43, 4  ;;  %v7857_v25 = vld [vmem:[#allocation3 + $0x10] sm:$0xff]   ;;  %v7861_v43 = vld [vmem:[#allocation3 + $0x18] sm:$0xff]  }
 0x220   : > { %v2718_v13 = vshrl.u32 %v5378_v41, 16  ;;  %v5376_v44 = vpack.c.bf16 %v2495_v56, %v2495_v56  ;;  %v2500_v42 = vmul.f32 %v2460_v51, %v2339_v40  ;;  %v2498_v33 = vmul.f32 %v2450_v2, %v2337_v30 }
 0x221   : > { %v2697_v28 = vsel %vm7761_vm11, %v2689_v49, %v2696_v18  ;;  %v2340_v50 = vmax.f32 %v2317_v20, 0.0  ;;  %v2338_v24 = vmax.f32 %v2315_v9, 0.0  ;;  %v2721_v11 = vshll.u32 %v5378_v41, 16  ;;  %v2470_v41 = vpop.permute.xlu1 %2469  ;;  %v3107_v18 = vld [vmem:[#allocation3 + $0x8] sm:$0xc] }
 0x222   : > { %2828 = vst [vmem:[#allocation3 + $0x30] sm:$0xf] %v2697_v28  ;;  %v2720_v21 = vrot.slane %v2718_v13, 7  ;;  %v2700_v7 = vshrl.u32 %v5376_v44, 16  ;;  %v5381_v58 = vpack.c.bf16 %v2500_v42, %v2500_v42  ;;  %v5379_v5 = vpack.c.bf16 %v2498_v33, %v2498_v33 }
 0x223   : > { %v2501_v26 = vmul.f32 %v7735_v16, %v2340_v50  ;;  %v2499_v53 = vmul.f32 %v7720_v6, %v2338_v24  ;;  %v2290_v23 = vadd.f32 %v2263_v10, %v7718_v31  ;;  %v2703_v14 = vshll.u32 %v5376_v44, 16 }
 0x224   : > { %v2723_v1 = vor.u32 %v2721_v11, %v2720_v21  ;;  %v2702_v29 = vrot.slane %v2700_v7, 7  ;;  %v2745_v61 = vshrl.u32 %v5381_v58, 16  ;;  %v2725_v27 = vrot.slane %v2720_v21, 4  ;;  %v3103_v11 = vld [vmem:[#allocation3 + $0x8] sm:$0xe] }
 0x225   : > { %v2748_v2 = vshll.u32 %v5381_v58, 16  ;;  %v2727_v59 = vshrl.u32 %v5379_v5, 16  ;;  %v5382_v17 = vpack.c.bf16 %v2501_v26, %v2501_v26  ;;  %v2730_v4 = vshll.u32 %v5379_v5, 16  ;;  %v2475_v26 = vpop.permute.xlu1 %2474 }
 0x226   : > { %v2724_v15 = vsel %vm7761_vm11, %v2716_v36, %v2723_v1  ;;  %v2705_v12 = vor.u32 %v2703_v14, %v2702_v29  ;;  %v2707_v22 = vrot.slane %v2702_v29, 4  ;;  %v2747_v47 = vrot.slane %v2745_v61, 7  ;;  %v7871_v36 = vld [vmem:[#allocation3 + $0xc] sm:$0xf] }
 0x227   : > { %2831 = vst [vmem:[#allocation3 + $0x3c] sm:$0xf] %v2724_v15  ;;  %v2729_v16 = vrot.slane %v2727_v59, 7  ;;  %v2754_v6 = vshrl.u32 %v5382_v17, 16  ;;  %v5380_v45 = vpack.c.bf16 %v2499_v53, %v2499_v53  ;;  %v2757_v57 = vshll.u32 %v5382_v17, 16 }
 0x228   : > { %v2706_v31 = vsel %vm7761_vm11, %v2698_v38, %v2705_v12  ;;  %v2715_v46 = vsel %vm7761_vm11, %v2707_v22, %v2714_v48  ;;  %v2750_v49 = vor.u32 %v2748_v2, %v2747_v47  ;;  %v2752_v37 = vrot.slane %v2747_v47, 4  ;;  %v7906_v22 = vld [vmem:[#allocation3 + $0x20] sm:$0xff]  }
 0x229   : > { %2829 = vst [vmem:[#allocation3 + $0x34] sm:$0xf] %v2706_v31  ;;  %2830 = vst [vmem:[#allocation3 + $0x38] sm:$0xf] %v2715_v46  ;;  %v2732_v3 = vor.u32 %v2730_v4, %v2729_v16  ;;  %v7859_v39 = vrot.slane %v2754_v6, 7  ;;  %v2736_v60 = vshrl.u32 %v5380_v45, 16  ;;  %v2320_v8 = vadd.f32 %v7733_v35, %v2290_v23 }
 0x22a   : > { %v2734_v0 = vrot.slane %v2729_v16, 4  ;;  %v2255_v10 = vadd.f32 %v7714_v55, %v7825_v52  ;;  %v2258_v48 = vadd.f32 %v7716_v19, %v7834_v63  ;;  %v2739_v51 = vshll.u32 %v5380_v45, 16  ;;  %v2480_v19 = vpop.permute.xlu0 %2479 }
 0x22b   : > { %v2733_v56 = vsel %vm7761_vm11, %v2725_v27, %v2732_v3  ;;  %v2759_v40 = vor.u32 %v2757_v57, %v7859_v39  ;;  %v2738_v30 = vrot.slane %v2736_v60, 7  ;;  %v2343_v20 = vmax.f32 %v2320_v8, 0.0  ;;  %v6540_v57 = vld [vmem:[%s8711_s3 + $0x80] sm:$0xff]  }
 0x22c   : > { %2832 = vst [vmem:[#allocation3 + $0x40] sm:$0xf] %v2733_v56  ;;  %v2288_v9 = vadd.f32 %v2255_v10, %v7723_v34  ;;  %v2289_v55 = vadd.f32 %v2258_v48, %v7726_v32  ;;  %v7876_v52 = vrot.slane %v7857_v25, 1  ;;  %v3034_v44 = vrot.slane %v7861_v43, 1 }
 0x22d   : > { %v2760_v63 = vsel %vm7761_vm11, %v2752_v37, %v2759_v40  ;;  %v2741_v38 = vor.u32 %v2739_v51, %v2738_v30  ;;  %v2743_v13 = vrot.slane %v2738_v30, 4  ;;  %v2504_v42 = vmul.f32 %v2480_v19, %v2343_v20  ;;  %v2841_v51 = vld [vmem:[#allocation3 + $0x58] sm:$0x3]  ;;  %v6542_v19 = vld [vmem:[%s8711_s3 + $0x88] sm:$0xff]  }
 0x22e   : > { %2835 = vst [vmem:[#allocation3 + $0x4c] sm:$0xf] %v2760_v63  ;;  %v2318_v28 = vadd.f32 %v7733_v35, %v2288_v9  ;;  %v2319_v33 = vadd.f32 %v7733_v35, %v2289_v55  ;;  %v5174_v34 = vcombine.low %v3107_v18, %v7871_v36  ;;  %v7892_v24 = vsel %vm655_vm0, %v7876_v52, %v3034_v44 }
 0x22f   : > { %v2742_v32 = vsel %vm7761_vm11, %v2734_v0, %v2741_v38  ;;  %v2751_v50 = vsel %vm7761_vm11, %v2743_v13, %v2750_v49  ;;  %v2962_v21 = vshll.u32 %v7857_v25, 16  ;;  %v5385_v35 = vpack.c.bf16 %v2504_v42, %v2504_v42 }
 0x230   : > { %2833 = vst [vmem:[#allocation3 + $0x44] sm:$0xf] %v2742_v32  ;;  %2834 = vst [vmem:[#allocation3 + $0x48] sm:$0xf] %v2751_v50  ;;  %v2341_v7 = vmax.f32 %v2318_v28, 0.0  ;;  %v2342_v58 = vmax.f32 %v2319_v33, 0.0  ;;  %v7904_v12 = vcombine.low %v3103_v11, %v7871_v36 }
 0x231   : > { %v3143_v5 = vrot.slane %v5174_v34, 1  ;;  %v3204_v53 = vrot.slane %v7892_v24, 1  ;;  %v7896_v23 = vrot.slane %v2962_v21, 1  ;;  %v2966_v1 = vshrl.u32 %v7857_v25, 16  ;;  %v7937_v33 = vld [vmem:[#allocation3 + $0x28] sm:$0xff]  }
 0x232   : > { %v2970_v29 = vshll.u32 %v7861_v43, 16  ;;  %v2781_v14 = vshrl.u32 %v5385_v35, 16  ;;  %v2784_v61 = vshll.u32 %v5385_v35, 16  ;;  %v2502_v27 = vmul.f32 %v2470_v41, %v2341_v7  ;;  %v2871_v28 = vld [vmem:[#allocation3 + $0x8] sm:$0xf] }
 0x233   : > { %v2503_v2 = vmul.f32 %v2475_v26, %v2342_v58  ;;  %v3144_v59 = vsel %vm655_vm0, %v3143_v5, %v7876_v52  ;;  %v2968_v17 = vor.u32 %v2966_v1, %v7896_v23  ;;  %v2761_v45 = vrot.slane %v7859_v39, 4 }
 0x234   : > { %v2972_v15 = vrot.slane %v2970_v29, 1  ;;  %v2783_v47 = vrot.slane %v2781_v14, 7  ;;  %v5383_v16 = vpack.c.bf16 %v2502_v27, %v2502_v27  ;;  %v3203_v6 = vrot.slane %v3144_v59, 1  ;;  %v7962_v14 = vld [vmem:[#allocation3 + $0x30] sm:$0xff]  }
 0x235   : > { %v5384_v4 = vpack.c.bf16 %v2503_v2, %v2503_v2  ;;  %v3120_v46 = vshrl.u32 %v7904_v12, 16  ;;  %v3122_v49 = vshll.u32 %v7904_v12, 16  ;;  %v3198_v0 = vrot.slane %v7904_v12, 1  ;;  %v6530_v2 = vld [vmem:[%s8711_s3 + $0x48] sm:$0xff]   ;;  %v6544_v12 = vld [vmem:[%s8711_s3 + $0x90] sm:$0xff]  }
 0x236   : > { %v7910_v31 = vsel %vm547_vm1, %v2968_v17, %v2972_v15  ;;  %v2786_v37 = vor.u32 %v2784_v61, %v2783_v47  ;;  %v2763_v3 = vshrl.u32 %v5383_v16, 16  ;;  %v2766_v8 = vshll.u32 %v5383_v16, 16 }
 0x237   : > { %v2772_v60 = vshrl.u32 %v5384_v4, 16  ;;  %v2775_v10 = vshll.u32 %v5384_v4, 16  ;;  %v3205_v39 = vsel %vm655_vm0, %v3203_v6, %v3204_v53  ;;  %v3124_v48 = vrot.slane %v3122_v49, 1  ;;  %v6531_v6 = vld [vmem:[%s8711_s3 + $0x8] sm:$0xff]  }
 0x238   : > { %v2765_v41 = vrot.slane %v2763_v3, 7  ;;  %6108 = vmatmul.mubr.bf16.vlgmr.msra.gmra.mrb[80].mxu1 %v3205_v39  ;;  %v3201_v40 = vrot.slane %v7910_v31, 1  ;;  %v3036_v30 = vrot.slane %v7906_v22, 1  ;;  %v2974_v20 = vshrl.u32 %v7861_v43, 16  ;;  %v6534_v39 = vld [vmem:[%s8711_s3 + $0x10] sm:$0xff]  }
 0x239   : > { %v2774_v56 = vrot.slane %v2772_v60, 7  ;;  %v3125_v18 = vor.u32 %v3124_v48, %v3120_v46  ;;  %6111 = vmatprep.mubr.msk.bf16.mxu1 %vm6660_vm6, %v6659_v62  ;;  %v2978_v9 = vshll.u32 %v7906_v22, 16  ;;  %v2982_v55 = vshrl.u32 %v7906_v22, 16  ;;  %6144 = vmatpush3.bf16.msra.mxu1 %v6540_v57  ;;  %v6533_v46 = vld [vmem:[%s8711_s3 + $0x50] sm:$0xff]   ;;  %v6547_v57 = vld [vmem:[%s8711_s3 + $0x98] sm:$0xff]  }
 0x23a   : > { %v2768_v63 = vor.u32 %v2766_v8, %v2765_v41  ;;  %v2770_v38 = vrot.slane %v2765_v41, 4  ;;  %6145 = vmatprep.subr.bf16.mxu1 %v6659_v62  ;;  %v7945_v32 = vsel %vm655_vm0, %v3034_v44, %v3036_v30  ;;  %v2976_v50 = vor.u32 %v2974_v20, %v2972_v15  ;;  %v6527_v44 = vld [vmem:[%s8711_s3] sm:$0xff]   ;;  %v6536_v48 = vld [vmem:[%s8711_s3 + $0x58] sm:$0xff]  }
 0x23b   : > { %v2777_v13 = vor.u32 %v2775_v10, %v2774_v56  ;;  %v2779_v42 = vrot.slane %v2774_v56, 4  ;;  %v3126_v34 = vsel %vm547_vm1, %v3125_v18, %v7896_v23  ;;  %v2980_v21 = vrot.slane %v2978_v9, 1  ;;  %v6537_v9 = vld [vmem:[%s8711_s3 + $0x18] sm:$0xff]  }
 0x23c   : > { %v2769_v11 = vsel %vm7761_vm11, %v2761_v45, %v2768_v63  ;;  %v3200_v58 = vrot.slane %v3126_v34, 1  ;;  %v3208_v26 = vrot.slane %v7945_v32, 1  ;;  %v2986_v27 = vshll.u32 %v7937_v33, 16 }
 0x23d   : > { %v2778_v35 = vsel %vm7761_vm11, %v2770_v38, %v2777_v13  ;;  %v2787_v7 = vsel %vm7761_vm11, %v2779_v42, %v2786_v37  ;;  %2836 = vst [vmem:[#allocation3 + $0x50] sm:$0xf] %v2769_v11  ;;  %v7960_v1 = vsel %vm547_vm1, %v2976_v50, %v2980_v21  ;;  %v2984_v29 = vor.u32 %v2982_v55, %v2980_v21  ;;  %v2887_v55 = vld [vmem:[#allocation3 + $0x44] sm:$0xf]  ;;  %v6552_v42 = vld [vmem:[%s8711_s3 + $0xa8] sm:$0xff]  }
 0x23e   : > { %2837 = vst [vmem:[#allocation3 + $0x54] sm:$0xf] %v2778_v35  ;;  %v2842_v5 = vsel %vm7933_vm14, %v2787_v7, %v2841_v51  ;;  %6146 = vmatpush3.bf16.msra.mxu1 %v6542_v19  ;;  %v3202_v54 = vsel %vm655_vm0, %v3200_v58, %v3201_v40  ;;  %v3206_v61 = vrot.slane %v7960_v1, 1  ;;  %v3038_v59 = vrot.slane %v7937_v33, 1  ;;  %v6539_v19 = vld [vmem:[%s8711_s3 + $0x60] sm:$0xff]  }
 0x23f   : > { %2843 = vst [vmem:[#allocation3 + $0x58] sm:$0x3] %v2842_v5  ;;  %6147 = vmatprep.subr.bf16.mxu1 %v6659_v62  ;;  %3431 = vmatprep.mubr.bf16.mxu0 %v3202_v54  ;;  %v3199_v17 = vsel %vm655_vm0, %v3198_v0, %v7876_v52  ;;  %v3209_v15 = vsel %vm655_vm0, %v3204_v53, %v3208_v26  ;;  %v2988_v16 = vrot.slane %v2986_v27, 1  ;;  %v2994_v53 = vshll.u32 %v7962_v14, 16  ;;  %v8042_v21 = vld [vmem:[#allocation3 + $0x40] sm:$0xf] }
 0x240   : > { %3432 = vmatmul.mubr.bf16.vlgmr.msra.gmra.mrb[96].mxu0 %v3199_v17  ;;  %6112 = vmatmul.mubr.bf16.gmra.mrb[84].mxu1 %v3209_v15  ;;  %v3207_v47 = vsel %vm655_vm0, %v3201_v40, %v3206_v61  ;;  %v7982_v4 = vsel %vm655_vm0, %v3036_v30, %v3038_v59  ;;  %v3040_v3 = vrot.slane %v7962_v14, 1  ;;  %v2990_v0 = vshrl.u32 %v7937_v33, 16  ;;  %v8012_v40 = vld [vmem:[#allocation3 + $0x38] sm:$0xff]   ;;  %v6549_v30 = vld [vmem:[%s8711_s3 + $0xa0] sm:$0xff]   ;;  %v6546_v17 = vld [vmem:[%s8711_s3 + $0x28] sm:$0xff]  }
 0x241   : > { %5798 = vmatpush3.bf16.msra.mxu0 %v6527_v44  ;;  %3439 = vmatprep.mubr.bf16.mxu0 %v3207_v47  ;;  %v7989_v45 = vsel %vm547_vm1, %v2984_v29, %v2988_v16  ;;  %v3212_v49 = vrot.slane %v7982_v4, 1  ;;  %v2996_v8 = vrot.slane %v2994_v53, 1  ;;  %v2998_v38 = vshrl.u32 %v7962_v14, 16  ;;  %v6541_v7 = vld [vmem:[%s8711_s3 + $0x20] sm:$0xff]   ;;  %v6553_v29 = vld [vmem:[%s8711_s3 + $0xb0] sm:$0xff]   ;;  %v6556_v53 = vld [vmem:[%s8711_s3 + $0xb8] sm:$0xff]  }
 0x242   : > { %5799 = vmatprep.subr.bf16.mxu0 %v6530_v2  ;;  %6115 = vmatprep.mubr.msk.bf16.mxu1 %vm6660_vm6, %v6659_v62  ;;  %v3210_v37 = vrot.slane %v7989_v45, 1  ;;  %v2992_v56 = vor.u32 %v2990_v0, %v2988_v16  ;;  %v8020_v18 = vsel %vm655_vm0, %v3038_v59, %v3040_v3  ;;  %v3002_v13 = vshll.u32 %v8012_v40, 16 }
 0x243   : > { %6148 = vmatpush3.bf16.msra.mxu1 %v6544_v12  ;;  %v3213_v41 = vsel %vm655_vm0, %v3208_v26, %v3212_v49  ;;  %v3216_v63 = vrot.slane %v8020_v18, 1  ;;  %v3042_v50 = vrot.slane %v8012_v40, 1  ;;  %v3000_v11 = vor.u32 %v2998_v38, %v2996_v8  ;;  %v6545_v26 = vld [vmem:[%s8711_s3 + $0x68] sm:$0xff]  }
 0x244   : > { %6149 = vmatprep.subr.bf16.mxu1 %v6659_v62  ;;  %v3211_v51 = vsel %vm655_vm0, %v3206_v61, %v3210_v37  ;;  %v8023_v20 = vsel %vm547_vm1, %v2992_v56, %v2996_v8  ;;  %v8046_v35 = vcombine.low %v8042_v21, %v2887_v55  ;;  %v8052_v58 = vcombine.low %v2871_v28, %v7871_v36  ;;  %v6555_v56 = vld [vmem:[%s8711_s3 + $0x38] sm:$0xff]   ;;  %v6560_v55 = vld [vmem:[%s8711_s3 + $0x1c0] sm:$0xff]  }
 0x245   : > { %5800 = vmatpush3.bf16.msra.mxu0 %v6531_v6  ;;  %v3214_v34 = vrot.slane %v8023_v20, 1  ;;  %v3217_v5 = vsel %vm655_vm0, %v3212_v49, %v3216_v63  ;;  %v3004_v44 = vrot.slane %v3002_v13, 1  ;;  %v8064_v36 = vsel %vm655_vm0, %v3040_v3, %v3042_v50  ;;  %v6550_v6 = vld [vmem:[%s8711_s3 + $0x70] sm:$0xff]   ;;  %v6548_v13 = vld [vmem:[#allocation3 + $0x50] ss:$0 sps:$4 sm:$0x11]  }
 0x246   : > { %v2847_v60 = vld [vmem:[#allocation3 + $0x58] sm:$0x2]  ;;  %5801 = vmatprep.subr.bf16.mxu0 %v6533_v46  ;;  %v2954_v61 = vshll.u32 %v8052_v58, 16  ;;  %v3030_v27 = vrot.slane %v8052_v58, 1  ;;  %v3010_v59 = vshll.u32 %v8046_v35, 16  ;;  %v2958_v12 = vshrl.u32 %v8052_v58, 16 }
 0x247   : > { %v2848_v10 = vsel %vm2846_vm4, 0, %v2847_v60  ;;  %6150 = vmatpush3.bf16.msra.mxu1 %v6547_v57  ;;  %v3215_v54 = vsel %vm655_vm0, %v3210_v37, %v3214_v34  ;;  %v8069_v2 = vsel %vm547_vm1, %v3000_v11, %v3004_v44  ;;  %v3220_v16 = vrot.slane %v8064_v36, 1  ;;  %v6551_v3 = vld [vmem:[%s8711_s3 + $0x30] sm:$0xff]  }
 0x248   : > { %2849 = vst [vmem:[#allocation3 + $0x58] sm:$0x2] %v2848_v10  ;;  %3440 = vmatmul.mubr.bf16.gmra.mrb[100].mxu0 %v7892_v24  ;;  %6116 = vmatmul.mubr.bf16.gmra.mrb[88].mxu1 %v3213_v41  ;;  %v8078_v15 = vrot.slane %v2954_v61, 1  ;;  %v8085_v47 = vsel %vm655_vm0, %v3030_v27, %v7876_v52  ;;  %v3218_v46 = vrot.slane %v8069_v2, 1  ;;  %v8096_v49 = vrot.slane %v8046_v35, 1  ;;  %v6543_v10 = vld [vmem:[#allocation3 + $0x48] sm:$0xff]  }
 0x249   : > { %3447 = vmatprep.mubr.bf16.mxu0 %v3211_v51  ;;  %6119 = vmatprep.mubr.msk.bf16.mxu1 %vm6660_vm6, %v6659_v62  ;;  %v3006_v57 = vshrl.u32 %v8012_v40, 16  ;;  %v3012_v37 = vrot.slane %v3010_v59, 1  ;;  %v3221_v0 = vsel %vm655_vm0, %v3216_v63, %v3220_v16  ;;  %v3014_v51 = vshrl.u32 %v8046_v35, 16 }
 0x24a   : > { %5802 = vmatpush3.bf16.msra.mxu0 %v6534_v39  ;;  %6151 = vmatprep.subr.bf16.mxu1 %v6659_v62  ;;  %v2960_v52 = vor.u32 %v2958_v12, %v8078_v15  ;;  %v6554_v39 = vld [vmem:[%s8711_s3 + $0x78] sm:$0xff]   ;;  %v8116_v41 = vsel %vm655_vm0, %v3042_v50, %v8096_v49  ;;  %v8133_v63 = vrot.slane %v6543_v10, 1  ;;  %v3136_v35 = vshll.u32 %v6548_v13, 16 }
 0x24b   : > { %5803 = vmatprep.subr.bf16.mxu0 %v6536_v48  ;;  %6152 = vmatpush3.bf16.msra.mxu1 %v6549_v30  ;;  %v3008_v8 = vor.u32 %v3006_v57, %v3004_v44  ;;  %v3219_v48 = vsel %vm655_vm0, %v3214_v34, %v3218_v46  ;;  %v3224_v30 = vrot.slane %v8116_v41, 1  ;;  %v8135_v38 = vor.u32 %v3014_v51, %v3012_v37  ;;  %v8162_v57 = vld [vmem:[#allocation3 + $0x18] sm:$0xff]  }
 0x24c   : > { %6153 = vmatprep.subr.bf16.mxu1 %v6659_v62  ;;  %v8106_v60 = vsel %vm547_vm1, %v2960_v52, %v7896_v23  ;;  %v3146_v50 = vsel %vm655_vm0, %v8096_v49, %v8133_v63  ;;  %v3147_v44 = vrot.slane %v6548_v13, 1  ;;  %v8160_v52 = vld [vmem:[#allocation3 + $0x14] sm:$0xf]  ;;  %v4118_v51 = vrot.slane %v8162_v57, 1 }
 0x24d   : > { %v8119_v23 = vsel %vm547_vm1, %v3008_v8, %v3012_v37  ;;  %v8164_v37 = vld [vmem:[#allocation3 + $0x20] sm:$0xff]  }
 0x24e   : > { %5804 = vmatpush3.bf16.msra.mxu0 %v6537_v9  ;;  %v3128_v9 = vshll.u32 %v6543_v10, 16  ;;  %v2870_v8 = vld [vmem:[#allocation3 + $0x4] sm:$0xf] }
 0x24f   : > { %5805 = vmatprep.subr.bf16.mxu0 %v6539_v19  ;;  %6154 = vmatpush3.bf16.msra.mxu1 %v6552_v42  ;;  %v3222_v19 = vrot.slane %v8119_v23, 1  ;;  %v3225_v42 = vsel %vm655_vm0, %v3220_v16, %v3224_v30  ;;  %v3148_v16 = vsel %vm655_vm0, %v8133_v63, %v3147_v44 }
 0x250   : > { %3448 = vmatmul.mubr.bf16.gmra.mrb[104].mxu0 %v7945_v32  ;;  %6120 = vmatmul.mubr.bf16.gmra.mrb[92].mxu1 %v3217_v5  ;;  %v3130_v28 = vrot.slane %v3128_v9, 1  ;;  %v4120_v9 = vrot.slane %v8164_v37, 1 }
 0x251   : > { %3455 = vmatprep.mubr.bf16.mxu0 %v3215_v54  ;;  %6123 = vmatprep.mubr.msk.bf16.mxu1 %vm6660_vm6, %v6659_v62  ;;  %v3223_v34 = vsel %vm655_vm0, %v3218_v46, %v3222_v19  ;;  %v8147_v54 = vld [vmem:[#allocation3 + $0x30] sm:$0xff]   ;;  %v3232_v46 = vrot.slane %v3148_v16, 1 }
 0x252   : > { %5806 = vmatpush3.bf16.msra.mxu0 %v6541_v7  ;;  %6155 = vmatprep.subr.bf16.mxu1 %v6659_v62  ;;  %v3131_v11 = vsel %vm547_vm1, %v8135_v38, %v3130_v28  ;;  %v3228_v7 = vrot.slane %v3146_v50, 1 }
 0x253   : > { %5807 = vmatprep.subr.bf16.mxu0 %v6545_v26  ;;  %6156 = vmatpush3.bf16.msra.mxu1 %v6553_v29  ;;  %v3226_v5 = vrot.slane %v3131_v11, 1  ;;  %v3132_v26 = vshrl.u32 %v6543_v10, 16  ;;  %v3138_v29 = vrot.slane %v3136_v35, 1 }
 0x254   : > { %6157 = vmatprep.subr.bf16.mxu1 %v6659_v62  ;;  %v3229_v61 = vsel %vm655_vm0, %v3224_v30, %v3228_v7  ;;  %v2869_v30 = vld [vmem:[#allocation3] sm:$0xf] }
 0x255   : > { %v3134_v59 = vor.u32 %v3132_v26, %v3130_v28  ;;  %v3227_v12 = vsel %vm655_vm0, %v3222_v19, %v3226_v5  ;;  %v5160_v19 = vcombine.low %v2869_v30, %v2870_v8  ;;  %v4121_v28 = vsel %vm655_vm0, %v4118_v51, %v4120_v9  ;;  %v6566_v30 = vld [vmem:[%s8711_s3 + $0x1d8] sm:$0xff]  }
 0x256   : > { %5808 = vmatpush3.bf16.msra.mxu0 %v6546_v17  ;;  %v8150_v17 = vld [vmem:[#allocation3 + $0x28] sm:$0xff]   ;;  %v4192_v35 = vrot.slane %v4121_v28, 2  ;;  %v6577_v28 = vld [vmem:[%s8711_s3 + $0x1f0] sm:$0xff]  }
 0x257   : > { %5809 = vmatprep.subr.bf16.mxu0 %v6550_v6  ;;  %6158 = vmatpush3.bf16.msra.mxu1 %v6556_v53  ;;  %v3139_v6 = vsel %vm547_vm1, %v3134_v59, %v3138_v29  ;;  %v4124_v53 = vrot.slane %v8147_v54, 1  ;;  %v2949_v26 = vshll.u32 %v5160_v19, 16  ;;  %v2888_v59 = vld [vmem:[#allocation3] sm:$0xe] }
 0x258   : > { %3456 = vmatmul.mubr.bf16.gmra.mrb[108].mxu0 %v7982_v4  ;;  %6124 = vmatmul.mubr.bf16.gmra.mrb[96].mxu1 %v3221_v0  ;;  %v3230_v0 = vrot.slane %v3139_v6, 1  ;;  %v2947_v6 = vshrl.u32 %v5160_v19, 16 }
 0x259   : > { %3463 = vmatprep.mubr.bf16.mxu0 %v3219_v48  ;;  %6127 = vmatprep.mubr.msk.bf16.mxu1 %vm6660_vm6, %v6659_v62  ;;  %v2951_v16 = vrot.slane %v2949_v26, 1  ;;  %v2886_v26 = vld [vmem:[#allocation3 + $0x44] sm:$0x7] }
 0x25a   : > { %5810 = vmatpush3.bf16.msra.mxu0 %v6551_v3  ;;  %6247 = vmatprep.subr.bf16.mxu1 %v6659_v62  ;;  %v4122_v3 = vrot.slane %v8150_v17, 1 }
 0x25b   : > { %5811 = vmatprep.subr.bf16.mxu0 %v6554_v39  ;;  %v3983_v39 = vld [vmem:[#allocation3 + $0x10] sm:$0x8] }
 0x25c   : > { %v8170_v10 = vsel %vm655_vm0, %v4122_v3, %v4124_v53  ;;  %v5282_v48 = vcombine.low %v3983_v39, %v8160_v52  ;;  %v2952_v39 = vor.u32 %v2951_v16, %v2947_v6 }
 0x25d   : > { %v4204_v13 = vrot.slane %v8170_v10, 2 }
 0x25e   : > { %5812 = vmatpush3.bf16.msra.mxu0 %v6555_v56  ;;  %v3233_v56 = vsel %vm655_vm0, %v3228_v7, %v3232_v46 }
 0x25f   : > { %5884 = vmatprep.subr.bf16.mxu0 %v6560_v55  ;;  %v3231_v55 = vsel %vm655_vm0, %v3226_v5, %v3230_v0 }
 0x260   : > { %3464 = vmatmul.mubr.bf16.gmra.mrb[112].mxu0 %v8020_v18  ;;  %6128 = vmatmul.mubr.bf16.gmra.mrb[100].mxu1 %v3225_v42  ;;  %v4117_v42 = vrot.slane %v5282_v48, 1  ;;  %v8200_v48 = vld [vmem:[%s8711_s3 + $0x200] sm:$0xff]  }
 0x261   : > { %3471 = vmatprep.mubr.bf16.mxu0 %v3223_v34  ;;  %6131 = vmatprep.mubr.msk.bf16.mxu1 %vm6660_vm6, %v6659_v62  ;;  %v4123_v34 = vsel %vm655_vm0, %v4120_v9, %v4122_v3  ;;  %v6567_v9 = vld [vmem:[%s8711_s3 + $0x198] sm:$0xff]  }
 0x262   : > { %v4119_v11 = vsel %vm655_vm0, %v4117_v42, %v4118_v51  ;;  %v4198_v7 = vrot.slane %v4123_v34, 2  ;;  %v8257_v51 = vld [vmem:[%s8711_s3 + $0x220] sm:$0xff]   ;;  %v6574_v42 = vld [vmem:[%s8711_s3 + $0x1a8] sm:$0xff]   ;;  %v6583_v34 = vld [vmem:[%s8711_s3 + $0x1b8] sm:$0xff]  }
 0x263   : > { %v4191_v44 = vrot.slane %v4119_v11, 2  ;;  %v4047_v11 = vshrl.u32 %v8162_v57, 16 }
 0x264   : > { %v8185_v5 = vsel %vm1762_vm2, %v4192_v35, %v4198_v7  ;;  %v8190_v29 = vsel %vm1762_vm2, %v4198_v7, %v4204_v13 }
 0x268   : > { %3472 = vmatmul.mubr.bf16.gmra.mrb[116].mxu0 %v8064_v36  ;;  %6132 = vmatmul.mubr.bf16.gmra.mrb[104].mxu1 %v3229_v61  ;;  %v8193_v61 = vsel %vm1762_vm2, %v4191_v44, %v4192_v35 }
 0x269   : > { %3479 = vmatprep.mubr.bf16.mxu0 %v3227_v12  ;;  %6135 = vmatprep.mubr.msk.bf16.mxu1 %vm6660_vm6, %v6659_v62  ;;  %v5170_v12 = vcombine.low %v2888_v59, %v2870_v8  ;;  %v6564_v8 = vld [vmem:[%s8711_s3 + $0x1d0] sm:$0xff]  }
 0x26b   : > { %v3029_v3 = vrot.slane %v5170_v12, 1 }
 0x270   : > { %3480 = vmatmul.mubr.bf16.gmra.mrb[120].mxu0 %v8116_v41  ;;  %6136 = vmatmul.mubr.bf16.gmra.mrb[108].mxu1 %v3233_v56  ;;  %v3031_v56 = vsel %vm655_vm0, %v3029_v3, %v3030_v27  ;;  %v6561_v27 = vld [vmem:[%s8711_s3 + $0x180] sm:$0xff]   ;;  %v5168_v3 = vcombine.low %v8042_v21, %v2886_v26  ;;  %v4067_v21 = vshll.u32 %v8147_v54, 16 }
 0x271   : > { %3487 = vmatprep.mubr.bf16.mxu0 %v3231_v55  ;;  %6139 = vmatprep.mubr.msk.bf16.mxu1 %vm6660_vm6, %v6659_v62  ;;  %v6568_v55 = vld [vmem:[%s8711_s3 + $0x1e0] sm:$0xff]  }
 0x278   : > { %3488 = vmatmul.mubr.bf16.gmra.mrb[124].mxu0 %v3146_v50  ;;  %6140 = vmatmul.mubr.bf16.gmra.mrb[112].mxu1 %v3232_v46  ;;  %v2957_v50 = vsel %vm547_vm1, %v2952_v39, %v8078_v15  ;;  %v8214_v46 = vld [vmem:[%s8711_s3 + $0x208] sm:$0xff]  }
 0x279   : > { %3495 = vmatprep.mubr.bf16.mxu0 %v3230_v0  ;;  %6159 = vmatprep.mubr.msk.bf16.mxu1 %vm6660_vm6, %v6659_v62  ;;  %v6562_v15 = vld [vmem:[%s8711_s3 + $0x1c8] sm:$0xff]  }
 0x27a   : > { %v6563_v0 = vld [vmem:[%s8711_s3 + $0x188] sm:$0xff]  }
 0x280   : > { %3496 = vmatmul.mubr.bf16.gmra.mrb[128].mxu0 %v8133_v63  ;;  %6160 = vmatmul.mubr.bf16.vlgmr.msra.gmra.mrb[116].mxu1 %v3031_v56  ;;  %v8228_v63 = vld [vmem:[%s8711_s3 + $0x210] sm:$0xff]  }
 0x281   : > { %3785 = vmatprep.mubr.bf16.mxu0 %v2957_v50  ;;  %6163 = vmatprep.mubr.msk.bf16.mxu1 %vm6660_vm6, %v6659_v62 }
 0x282   : > { %6255 = vmatpush3.bf16.msra.mxu1 %v8200_v48 }
 0x283   : > { %6248 = vmatprep.subr.bf16.mxu1 %v6659_v62 }
 0x286   : > { %6256 = vmatpush3.bf16.msra.mxu1 %v8214_v46 }
 0x287   : > { %6249 = vmatprep.subr.bf16.mxu1 %v6659_v62 }
 0x288   : > { %3786 = vmatmul.mubr.bf16.vlgmr.msra.gmra.mrb[132].mxu0 %v5160_v19  ;;  %6164 = vmatmul.mubr.bf16.gmra.mrb[120].mxu1 %v8085_v47  ;;  %v8244_v47 = vld [vmem:[%s8711_s3 + $0x218] sm:$0xff]   ;;  %v8288_v19 = vld [vmem:[%s8711_s3 + $0x230] sm:$0xff]  }
 0x289   : > { %3793 = vmatprep.mubr.bf16.mxu0 %v8106_v60  ;;  %5885 = vmatpush3.bf16.msra.mxu0 %v6561_v27  ;;  %v6565_v60 = vld [vmem:[%s8711_s3 + $0x190] sm:$0xff]  }
 0x28a   : > { %5886 = vmatprep.subr.bf16.mxu0 %v6562_v15  ;;  %6167 = vmatprep.mubr.msk.bf16.mxu1 %vm6660_vm6, %v6659_v62  ;;  %v8368_v15 = vld [vmem:[#allocation3 + $0x48] sm:$0xff]  }
 0x28b   : > { %6257 = vmatpush3.bf16.msra.mxu1 %v8228_v63 }
 0x28c   : > { %6250 = vmatprep.subr.bf16.mxu1 %v6659_v62 }
 0x28d   : > { %5887 = vmatpush3.bf16.msra.mxu0 %v6563_v0 }
 0x28e   : > { %5888 = vmatprep.subr.bf16.mxu0 %v6564_v8 }
 0x28f   : > { %6258 = vmatpush3.bf16.msra.mxu1 %v8244_v47 }
 0x290   : > { %3794 = vmatmul.mubr.bf16.gmra.mrb[136].mxu0 %v8052_v58  ;;  %6168 = vmatmul.mubr.bf16.gmra.mrb[124].mxu1 %v7892_v24  ;;  %v8275_v24 = vld [vmem:[%s8711_s3 + $0x228] sm:$0xff]  }
 0x291   : > { %3801 = vmatprep.mubr.bf16.mxu0 %v7910_v31  ;;  %6171 = vmatprep.mubr.msk.bf16.mxu1 %vm6660_vm6, %v6659_v62  ;;  %v6570_v31 = vld [vmem:[%s8711_s3 + $0x1a0] sm:$0xff]   ;;  %v6573_v58 = vld [vmem:[%s8711_s3 + $0x1e8] sm:$0xff]  }
 0x292   : > { %5889 = vmatpush3.bf16.msra.mxu0 %v6565_v60  ;;  %6251 = vmatprep.subr.bf16.mxu1 %v6659_v62 }
 0x293   : > { %5890 = vmatprep.subr.bf16.mxu0 %v6566_v30  ;;  %6259 = vmatpush3.bf16.msra.mxu1 %v8257_v51  ;;  %v4130_v30 = vrot.slane %v8368_v15, 1 }
 0x294   : > { %6252 = vmatprep.subr.bf16.mxu1 %v6659_v62 }
 0x296   : > { %5891 = vmatpush3.bf16.msra.mxu0 %v6567_v9  ;;  %v4063_v9 = vshrl.u32 %v8150_v17, 16 }
 0x297   : > { %5892 = vmatprep.subr.bf16.mxu0 %v6568_v55  ;;  %6260 = vmatpush3.bf16.msra.mxu1 %v8275_v24  ;;  %v4069_v55 = vrot.slane %v4067_v21, 1 }
 0x298   : > { %3802 = vmatmul.mubr.bf16.gmra.mrb[140].mxu0 %v7857_v25  ;;  %6172 = vmatmul.mubr.bf16.gmra.mrb[128].mxu1 %v7945_v32  ;;  %v8306_v25 = vld [vmem:[%s8711_s3 + $0x238] sm:$0xff]   ;;  %v6578_v32 = vld [vmem:[%s8711_s3 + $0x1b0] sm:$0xff]  }
 0x299   : > { %3809 = vmatprep.mubr.bf16.mxu0 %v7960_v1  ;;  %6175 = vmatprep.mubr.msk.bf16.mxu1 %vm6660_vm6, %v6659_v62  ;;  %v6581_v1 = vld [vmem:[%s8711_s3 + $0x1f8] sm:$0xff]  }
 0x29a   : > { %5893 = vmatpush3.bf16.msra.mxu0 %v6570_v31  ;;  %6253 = vmatprep.subr.bf16.mxu1 %v6659_v62 }
 0x29b   : > { %5894 = vmatprep.subr.bf16.mxu0 %v6573_v58  ;;  %6261 = vmatpush3.bf16.msra.mxu1 %v8288_v19 }
 0x29c   : > { %6254 = vmatprep.subr.bf16.mxu1 %v6659_v62 }
 0x29e   : > { %5895 = vmatpush3.bf16.msra.mxu0 %v6574_v42 }
 0x29f   : > { %5896 = vmatprep.subr.bf16.mxu0 %v6577_v28  ;;  %6262 = vmatpush3.bf16.msra.mxu1 %v8306_v25 }
 0x2a0   : > { %3810 = vmatmul.mubr.bf16.gmra.mrb[144].mxu0 %v7861_v43  ;;  %6176 = vmatmul.mubr.bf16.gmra.mrb[132].mxu1 %v7982_v4  ;;  %v3963_v43 = vld [vmem:[#allocation3 + $0x10] sm:$0xc] }
 0x2a1   : > { %3817 = vmatprep.mubr.bf16.mxu0 %v7989_v45  ;;  %6179 = vmatprep.mubr.msk.bf16.mxu1 %vm6660_vm6, %v6659_v62  ;;  %v5271_v4 = vcombine.low %v3963_v43, %v8160_v52  ;;  %v4043_v45 = vshll.u32 %v8162_v57, 16 }
 0x2a2   : > { %5897 = vmatpush3.bf16.msra.mxu0 %v6578_v32 }
 0x2a3   : > { %5898 = vmatprep.subr.bf16.mxu0 %v6581_v1  ;;  %v4036_v52 = vshrl.u32 %v5271_v4, 16  ;;  %v4185_v10 = vrot.slane %v5271_v4, 2  ;;  %v8381_v1 = vld [vmem:[#allocation3 + $0x50] sm:$0xff]  }
 0x2a6   : > { %5899 = vmatpush3.bf16.msra.mxu0 %v6583_v34  ;;  %v4194_v34 = vrot.slane %v8164_v37, 2 }
 0x2a7   : > { %6195 = vmatprep.subr.bf16.mxu0 %v6659_v62 }
 0x2a8   : > { %3818 = vmatmul.mubr.bf16.gmra.mrb[148].mxu0 %v7906_v22  ;;  %6180 = vmatmul.mubr.bf16.gmra.mrb[136].mxu1 %v8020_v18  ;;  %v4038_v22 = vshll.u32 %v5271_v4, 16  ;;  %v8339_v18 = vld [vmem:[#allocation3 + $0x38] sm:$0xff]   ;;  %v4071_v4 = vshrl.u32 %v8147_v54, 16 }
 0x2a9   : > { %3825 = vmatprep.mubr.bf16.mxu0 %v8023_v20  ;;  %6183 = vmatprep.mubr.msk.bf16.mxu1 %vm6660_vm6, %v6659_v62  ;;  %v4079_v26 = vshrl.u32 %v8339_v18, 16 }
 0x2aa   : > { %v4040_v20 = vrot.slane %v4038_v22, 1  ;;  %v4075_v22 = vshll.u32 %v8339_v18, 16 }
 0x2b0   : > { %3826 = vmatmul.mubr.bf16.gmra.mrb[152].mxu0 %v7937_v33  ;;  %6184 = vmatmul.mubr.bf16.gmra.mrb[140].mxu1 %v8064_v36  ;;  %v4051_v33 = vshll.u32 %v8164_v37, 16  ;;  %v4045_v36 = vrot.slane %v4043_v45, 1 }
 0x2b1   : > { %3833 = vmatprep.mubr.bf16.mxu0 %v8069_v2  ;;  %6187 = vmatprep.mubr.msk.bf16.mxu1 %vm6660_vm6, %v6659_v62  ;;  %v4126_v2 = vrot.slane %v8339_v18, 1 }
 0x2b2   : > { %v4053_v35 = vrot.slane %v4051_v33, 1  ;;  %v4049_v7 = vor.u32 %v4047_v11, %v4045_v36  ;;  %v4132_v33 = vrot.slane %v8381_v1, 1  ;;  %v8398_v11 = vld [vmem:[#allocation3 + $0x58] ss:$0 sps:$4 sm:$0x33]  }
 0x2b4   : > { %v4054_v44 = vsel %vm547_vm1, %v4049_v7, %v4053_v35 }
 0x2b5   : > { %v4189_v16 = vrot.slane %v4054_v44, 2  ;;  %v4134_v44 = vrot.slane %v8398_v11, 1 }
 0x2b7   : > { %v4240_v21 = vrot.slane %v4134_v44, 2 }
 0x2b8   : > { %3834 = vmatmul.mubr.bf16.gmra.mrb[156].mxu0 %v7962_v14  ;;  %6188 = vmatmul.mubr.bf16.gmra.mrb[144].mxu1 %v8116_v41  ;;  %v4041_v14 = vor.u32 %v4040_v20, %v4036_v52  ;;  %v4127_v41 = vsel %vm655_vm0, %v4124_v53, %v4126_v2  ;;  %v4133_v52 = vsel %vm655_vm0, %v4130_v30, %v4132_v33 }
 0x2b9   : > { %3841 = vmatprep.mubr.bf16.mxu0 %v8119_v23  ;;  %6191 = vmatprep.mubr.msk.bf16.mxu1 %vm6660_vm6, %v6659_v62  ;;  %v8352_v23 = vld [vmem:[#allocation3 + $0x40] sm:$0xff]   ;;  %v4210_v12 = vrot.slane %v4127_v41, 2  ;;  %v4228_v7 = vrot.slane %v4133_v52, 2 }
 0x2ba   : > { %v4046_v59 = vsel %vm547_vm1, %v4041_v14, %v4045_v36  ;;  %v4128_v53 = vrot.slane %v8352_v23, 1  ;;  %v4200_v14 = vrot.slane %v8150_v17, 2 }
 0x2bb   : > { %v4211_v39 = vsel %vm1762_vm2, %v4204_v13, %v4210_v12  ;;  %v4186_v13 = vrot.slane %v8162_v57, 2 }
 0x2bc   : > { %v4129_v27 = vsel %vm655_vm0, %v4126_v2, %v4128_v53  ;;  %v4131_v32 = vsel %vm655_vm0, %v4128_v53, %v4130_v30  ;;  %v4077_v2 = vrot.slane %v4075_v22, 1  ;;  %v4111_v22 = vshrl.u32 %v8398_v11, 16 }
 0x2bd   : > { %v4216_v8 = vrot.slane %v4129_v27, 2  ;;  %v4187_v31 = vsel %vm1762_vm2, %v4185_v10, %v4186_v13  ;;  %v4222_v43 = vrot.slane %v4131_v32, 2  ;;  %v4195_v20 = vsel %vm1762_vm2, %v4186_v13, %v4194_v34 }
 0x2be   : > { %v4095_v13 = vshrl.u32 %v8368_v15, 16 }
 0x2bf   : > { %v4217_v58 = vsel %vm1762_vm2, %v4210_v12, %v4216_v8  ;;  %v4223_v36 = vsel %vm1762_vm2, %v4216_v8, %v4222_v43  ;;  %v4201_v12 = vsel %vm1762_vm2, %v4194_v34, %v4200_v14 }
 0x2c0   : > { %3842 = vmatmul.mubr.bf16.gmra.mrb[160].mxu0 %v8012_v40  ;;  %6192 = vmatmul.mubr.bf16.gmra.mrb[148].mxu1 %v8096_v49  ;;  %v4055_v40 = vshrl.u32 %v8164_v37, 16  ;;  %v4059_v49 = vshll.u32 %v8150_v17, 16 }
 0x2c1   : > { %3849 = vmatprep.mubr.bf16.mxu0 %v8135_v38  ;;  %6223 = vmatprep.mubr.msk.bf16.mxu1 %vm6660_vm6, %v6659_v62  ;;  %v4188_v38 = vrot.slane %v4046_v59, 2 }
 0x2c2   : > { %v4057_v6 = vor.u32 %v4055_v40, %v4053_v35  ;;  %v4061_v56 = vrot.slane %v4059_v49, 1  ;;  %v4229_v40 = vsel %vm1762_vm2, %v4222_v43, %v4228_v7  ;;  %v4081_v49 = vor.u32 %v4079_v26, %v4077_v2 }
 0x2c3   : > { %v4190_v50 = vsel %vm1762_vm2, %v4188_v38, %v4189_v16  ;;  %v4224_v43 = vrot.slane %v8368_v15, 2 }
 0x2c4   : > { %v4062_v0 = vsel %vm547_vm1, %v4057_v6, %v4061_v56  ;;  %v4065_v42 = vor.u32 %v4063_v9, %v4061_v56  ;;  %v4087_v6 = vshrl.u32 %v8352_v23, 16 }
 0x2c5   : > { %v4196_v60 = vrot.slane %v4062_v0, 2  ;;  %v4099_v0 = vshll.u32 %v8381_v1, 16 }
 0x2c6   : > { %v4070_v57 = vsel %vm547_vm1, %v4065_v42, %v4069_v55  ;;  %v4103_v42 = vshrl.u32 %v8381_v1, 16 }
 0x2c7   : > { %v4197_v28 = vsel %vm1762_vm2, %v4189_v16, %v4196_v60  ;;  %v4202_v45 = vrot.slane %v4070_v57, 2  ;;  %v4101_v8 = vrot.slane %v4099_v0, 1 }
 0x2c8   : > { %3850 = vmatmul.mubr.bf16.gmra.mrb[164].mxu0 %v5168_v3  ;;  %6224 = vmatmul.mubr.bf16.vlgmr.msra.gmra.mrb[152].mxu1 %v4211_v39  ;;  %v4091_v3 = vshll.u32 %v8368_v15, 16 }
 0x2c9   : > { %4445 = vmatprep.mubr.bf16.mxu0 %v4190_v50  ;;  %6227 = vmatprep.mubr.msk.bf16.mxu1 %vm6660_vm6, %v6659_v62  ;;  %v4203_v37 = vsel %vm1762_vm2, %v4196_v60, %v4202_v45  ;;  %v4105_v32 = vor.u32 %v4103_v42, %v4101_v8 }
 0x2ca   : > { %v4093_v27 = vrot.slane %v4091_v3, 1 }
 0x2cc   : > { %v4097_v9 = vor.u32 %v4095_v13, %v4093_v27 }
 0x2d0   : > { %4446 = vmatmul.mubr.bf16.vlgmr.msra.gmra.mrb[168].mxu0 %v4187_v31  ;;  %6228 = vmatmul.mubr.bf16.gmra.mrb[156].mxu1 %v4217_v58  ;;  %v4218_v31 = vrot.slane %v8352_v23, 2 }
 0x2d1   : > { %4453 = vmatprep.mubr.bf16.mxu0 %v4197_v28  ;;  %6196 = vmatpush3.bf16.msra.mxu0 %v8200_v48  ;;  %v4073_v48 = vor.u32 %v4071_v4, %v4069_v55 }
 0x2d2   : > { %6197 = vmatprep.subr.bf16.mxu0 %v6659_v62  ;;  %6231 = vmatprep.mubr.msk.bf16.mxu1 %vm6660_vm6, %v6659_v62 }
 0x2d3   : > { %v4078_v35 = vsel %vm547_vm1, %v4073_v48, %v4077_v2  ;;  %v4230_v48 = vrot.slane %v8381_v1, 2  ;;  %v6595_v2 = vld [vmem:[#allocation3 + $0x58] ss:$0 sps:$4 sm:$0x11]  }
 0x2d4   : > { %v4208_v41 = vrot.slane %v4078_v35, 2  ;;  %v4236_v52 = vrot.slane %v6595_v2, 2 }
 0x2d5   : > { %6198 = vmatpush3.bf16.msra.mxu0 %v8214_v46  ;;  %v4083_v46 = vshll.u32 %v8352_v23, 16  ;;  %v4225_v23 = vsel %vm1762_vm2, %v4218_v31, %v4224_v43 }
 0x2d6   : > { %6199 = vmatprep.subr.bf16.mxu0 %v6659_v62  ;;  %v4209_v17 = vsel %vm1762_vm2, %v4202_v45, %v4208_v41 }
 0x2d7   : > { %v4085_v59 = vrot.slane %v4083_v46, 1 }
 0x2d8   : > { %4454 = vmatmul.mubr.bf16.gmra.mrb[172].mxu0 %v4195_v20  ;;  %6232 = vmatmul.mubr.bf16.gmra.mrb[160].mxu1 %v4223_v36  ;;  %v4231_v36 = vsel %vm1762_vm2, %v4224_v43, %v4230_v48 }
 0x2d9   : > { %4461 = vmatprep.mubr.bf16.mxu0 %v4203_v37  ;;  %6235 = vmatprep.mubr.msk.bf16.mxu1 %vm6660_vm6, %v6659_v62  ;;  %v4086_v16 = vsel %vm547_vm1, %v4081_v49, %v4085_v59  ;;  %v4089_v39 = vor.u32 %v4087_v6, %v4085_v59 }
 0x2da   : > { %6200 = vmatpush3.bf16.msra.mxu0 %v8228_v63  ;;  %v4135_v63 = vsel %vm655_vm0, %v4132_v33, %v4134_v44  ;;  %v4214_v38 = vrot.slane %v4086_v16, 2  ;;  %vm4685_vm0 = vcmask 1042432  }
 0x2db   : > { %6201 = vmatprep.subr.bf16.mxu0 %v6659_v62  ;;  %v4234_v53 = vrot.slane %v4135_v63, 2 }
 0x2dd   : > { %v4235_v50 = vsel %vm1762_vm2, %v4228_v7, %v4234_v53  ;;  %v4241_v30 = vsel %vm1762_vm2, %v4234_v53, %v4240_v21 }
 0x2de   : > { %6202 = vmatpush3.bf16.msra.mxu0 %v8244_v47  ;;  %v4206_v47 = vrot.slane %v8147_v54, 2  ;;  %v4215_v54 = vsel %vm1762_vm2, %v4208_v41, %v4214_v38 }
 0x2df   : > { %6203 = vmatprep.subr.bf16.mxu0 %v6659_v62 }
 0x2e0   : > { %4462 = vmatmul.mubr.bf16.gmra.mrb[176].mxu0 %v4201_v12  ;;  %6236 = vmatmul.mubr.bf16.gmra.mrb[164].mxu1 %v4229_v40  ;;  %v4207_v56 = vsel %vm1762_vm2, %v4200_v14, %v4206_v47  ;;  %v4237_v14 = vsel %vm1762_vm2, %v4230_v48, %v4236_v52 }
 0x2e1   : > { %4469 = vmatprep.mubr.bf16.mxu0 %v4209_v17  ;;  %6239 = vmatprep.mubr.msk.bf16.mxu1 %vm6660_vm6, %v6659_v62 }
 0x2e2   : > { %6204 = vmatpush3.bf16.msra.mxu0 %v8257_v51  ;;  %v4094_v51 = vsel %vm547_vm1, %v4089_v39, %v4093_v27 }
 0x2e3   : > { %6205 = vmatprep.subr.bf16.mxu0 %v6659_v62  ;;  %v4220_v10 = vrot.slane %v4094_v51, 2 }
 0x2e5   : > { %v4221_v55 = vsel %vm1762_vm2, %v4214_v38, %v4220_v10 }
 0x2e6   : > { %6206 = vmatpush3.bf16.msra.mxu0 %v8275_v24  ;;  %v4212_v24 = vrot.slane %v8339_v18, 2  ;;  %v4107_v18 = vshll.u32 %v8398_v11, 16 }
 0x2e7   : > { %6207 = vmatprep.subr.bf16.mxu0 %v6659_v62 }
 0x2e8   : > { %4470 = vmatmul.mubr.bf16.gmra.mrb[180].mxu0 %v4207_v56  ;;  %6240 = vmatmul.mubr.bf16.gmra.mrb[168].mxu1 %v4235_v50  ;;  %v4213_v60 = vsel %vm1762_vm2, %v4206_v47, %v4212_v24  ;;  %v4219_v28 = vsel %vm1762_vm2, %v4212_v24, %v4218_v31 }
 0x2e9   : > { %4477 = vmatprep.mubr.bf16.mxu0 %v4215_v54  ;;  %6243 = vmatprep.mubr.msk.bf16.mxu1 %vm6660_vm6, %v6659_v62 }
 0x2ea   : > { %6208 = vmatpush3.bf16.msra.mxu0 %v8288_v19  ;;  %v4102_v19 = vsel %vm547_vm1, %v4097_v9, %v4101_v8 }
 0x2eb   : > { %6209 = vmatprep.subr.bf16.mxu0 %v6659_v62  ;;  %v4226_v58 = vrot.slane %v4102_v19, 2 }
 0x2ed   : > { %v4227_v57 = vsel %vm1762_vm2, %v4220_v10, %v4226_v58 }
 0x2ee   : > { %6210 = vmatpush3.bf16.msra.mxu0 %v8306_v25  ;;  %v4109_v25 = vrot.slane %v4107_v18, 1 }
 0x2f0   : > { %4478 = vmatmul.mubr.bf16.gmra.mrb[184].mxu0 %v4213_v60  ;;  %6244 = vmatmul.mubr.bf16.gmra.mrb[172].mxu1 %v4241_v30  ;;  %v4110_v34 = vsel %vm547_vm1, %v4105_v32, %v4109_v25  ;;  %v4113_v33 = vor.u32 %v4111_v22, %v4109_v25 }
 0x2f1   : > { %4485 = vmatprep.mubr.bf16.mxu0 %v4221_v55  ;;  %v4232_v4 = vrot.slane %v4110_v34, 2 }
 0x2f2   : > { %v4238_v20 = vrot.slane %v4113_v33, 2 }
 0x2f3   : > { %v4233_v45 = vsel %vm1762_vm2, %v4226_v58, %v4232_v4 }
 0x2f4   : > { %v4239_v37 = vsel %vm1762_vm2, %v4232_v4, %v4238_v20 }
 0x2f8   : > { %4486 = vmatmul.mubr.bf16.gmra.mrb[188].mxu0 %v4219_v28 }
 0x2f9   : > { %4493 = vmatprep.mubr.bf16.mxu0 %v4227_v57 }
 0x300   : > { %4494 = vmatmul.mubr.bf16.gmra.mrb[192].mxu0 %v4225_v23 }
 0x301   : > { %4501 = vmatprep.mubr.bf16.mxu0 %v4233_v45 }
 0x308   : > { %4502 = vmatmul.mubr.bf16.gmra.mrb[196].mxu0 %v4231_v36 }
 0x309   : > { %4509 = vmatprep.mubr.bf16.mxu0 %v4239_v37 }
 0x30b   : > { %v3538_v15 = vpop.f32.mrb[80].mxu1 }
 0x30c   : > { %v6109_v11 = vpop.f32.mrb[81].mxu1 }
 0x30d   : > { %v3541_v35 = vpop.f32.mrb[82].mxu1 }
 0x30e   : > { %v6110_v46 = vpop.f32.mrb[83].mxu1 }
 0x310   : > { %4510 = vmatmul.mubr.bf16.gmra.mrb[200].mxu0 %v4237_v14 }
 0x311   : > { %6211 = vmatprep.mubr.msk.bf16.mxu0 %vm6660_vm6, %v6659_v62 }
 0x313   : > { %v5726_v1 = vpop.f32.mrb[96].mxu0  ;;  %v3546_v7 = vpop.f32.mrb[84].mxu1 }
 0x314   : > { %v5727_v41 = vpop.f32.mrb[97].mxu0  ;;  %v6113_v44 = vpop.f32.mrb[85].mxu1 }
 0x315   : > { %v5728_v26 = vadd.f32 %v5727_v41, %v5726_v1  ;;  %v5729_v59 = vpop.f32.mrb[98].mxu0  ;;  %v3549_v12 = vpop.f32.mrb[86].mxu1 }
 0x316   : > { %v5730_v40 = vpop.f32.mrb[99].mxu0  ;;  %v6114_v49 = vpop.f32.mrb[87].mxu1 }
 0x317   : > { %v8457_v17 = vadd.f32 %v5728_v26, %v3538_v15  ;;  %v5731_v63 = vadd.f32 %v5730_v40, %v5729_v59 }
 0x318   : > { %6212 = vmatmul.mubr.bf16.vlgmr.msra.gmra.mrb[204].mxu0 %v8193_v61 }
 0x319   : > { %v8460_v16 = vadd.f32 %v5731_v63, %v3541_v35  ;;  %6215 = vmatprep.mubr.msk.bf16.mxu0 %vm6660_vm6, %v6659_v62 }
 0x31b   : > { %v5732_v47 = vpop.f32.mrb[100].mxu0  ;;  %v3554_v53 = vpop.f32.mrb[88].mxu1 }
 0x31c   : > { %v5733_v6 = vpop.f32.mrb[101].mxu0  ;;  %v6117_v3 = vpop.f32.mrb[89].mxu1 }
 0x31d   : > { %v5734_v38 = vadd.f32 %v5733_v6, %v5732_v47  ;;  %v5735_v39 = vpop.f32.mrb[102].mxu0  ;;  %v3557_v56 = vpop.f32.mrb[90].mxu1 }
 0x31e   : > { %v5736_v50 = vpop.f32.mrb[103].mxu0  ;;  %v6118_v27 = vpop.f32.mrb[91].mxu1 }
 0x31f   : > { %v8464_v54 = vadd.f32 %v5734_v38, %v3546_v7  ;;  %v5737_v51 = vadd.f32 %v5736_v50, %v5735_v39 }
 0x320   : > { %6216 = vmatmul.mubr.bf16.gmra.mrb[208].mxu0 %v8185_v5 }
 0x321   : > { %v8467_v61 = vadd.f32 %v5737_v51, %v3549_v12  ;;  %6219 = vmatprep.mubr.msk.bf16.mxu0 %vm6660_vm6, %v6659_v62 }
 0x323   : > { %v5738_v0 = vpop.f32.mrb[104].mxu0  ;;  %v3562_v24 = vpop.f32.mrb[92].mxu1 }
 0x324   : > { %v5739_v21 = vpop.f32.mrb[105].mxu0  ;;  %v6121_v10 = vpop.f32.mrb[93].mxu1 }
 0x325   : > { %v5740_v13 = vadd.f32 %v5739_v21, %v5738_v0  ;;  %v5741_v8 = vpop.f32.mrb[106].mxu0  ;;  %v3565_v60 = vpop.f32.mrb[94].mxu1 }
 0x326   : > { %v5742_v30 = vpop.f32.mrb[107].mxu0  ;;  %v6122_v9 = vpop.f32.mrb[95].mxu1 }
 0x327   : > { %v8471_v55 = vadd.f32 %v5740_v13, %v3554_v53  ;;  %v5743_v19 = vadd.f32 %v5742_v30, %v5741_v8 }
 0x328   : > { %6220 = vmatmul.mubr.bf16.gmra.mrb[212].mxu0 %v8190_v29 }
 0x329   : > { %v8474_v5 = vadd.f32 %v5743_v19, %v3557_v56 }
 0x32b   : > { %v5744_v18 = vpop.f32.mrb[108].mxu0  ;;  %v3570_v31 = vpop.f32.mrb[96].mxu1 }
 0x32c   : > { %v5745_v58 = vpop.f32.mrb[109].mxu0  ;;  %v6125_v62 = vpop.f32.mrb[97].mxu1 }
 0x32d   : > { %v5746_v42 = vadd.f32 %v5745_v58, %v5744_v18  ;;  %v5747_v25 = vpop.f32.mrb[110].mxu0  ;;  %v3573_v28 = vpop.f32.mrb[98].mxu1 }
 0x32e   : > { %v5748_v32 = vpop.f32.mrb[111].mxu0  ;;  %v6126_v57 = vpop.f32.mrb[99].mxu1 }
 0x32f   : > { %v8476_v34 = vadd.f32 %v5746_v42, %v3562_v24  ;;  %v5749_v43 = vadd.f32 %v5748_v32, %v5747_v25 }
 0x331   : > { %v8478_v4 = vadd.f32 %v5749_v43, %v3565_v60 }
 0x333   : > { %v5750_v22 = vpop.f32.mrb[112].mxu0  ;;  %v3578_v23 = vpop.f32.mrb[100].mxu1 }
 0x334   : > { %v5751_v45 = vpop.f32.mrb[113].mxu0  ;;  %v6129_v29 = vpop.f32.mrb[101].mxu1 }
 0x335   : > { %v5752_v33 = vadd.f32 %v5751_v45, %v5750_v22  ;;  %v5753_v48 = vpop.f32.mrb[114].mxu0  ;;  %v3581_v20 = vpop.f32.mrb[102].mxu1 }
 0x336   : > { %v5754_v36 = vpop.f32.mrb[115].mxu0  ;;  %v6130_v2 = vpop.f32.mrb[103].mxu1 }
 0x337   : > { %v8480_v37 = vadd.f32 %v5752_v33, %v3570_v31  ;;  %v5755_v15 = vadd.f32 %v5754_v36, %v5753_v48 }
 0x339   : > { %v8482_v52 = vadd.f32 %v5755_v15, %v3573_v28 }
 0x33b   : > { %v5756_v11 = vpop.f32.mrb[116].mxu0  ;;  %v3586_v35 = vpop.f32.mrb[104].mxu1 }
 0x33c   : > { %v5757_v46 = vpop.f32.mrb[117].mxu0  ;;  %v6133_v14 = vpop.f32.mrb[105].mxu1 }
 0x33d   : > { %v5758_v1 = vadd.f32 %v5757_v46, %v5756_v11  ;;  %v5759_v7 = vpop.f32.mrb[118].mxu0  ;;  %v3589_v41 = vpop.f32.mrb[106].mxu1 }
 0x33e   : > { %v5760_v44 = vpop.f32.mrb[119].mxu0  ;;  %v6134_v26 = vpop.f32.mrb[107].mxu1 }
 0x33f   : > { %v8484_v59 = vadd.f32 %v5758_v1, %v3578_v23  ;;  %v5761_v12 = vadd.f32 %v5760_v44, %v5759_v7 }
 0x341   : > { %v8486_v40 = vadd.f32 %v5761_v12, %v3581_v20 }
 0x343   : > { %v5762_v49 = vpop.f32.mrb[120].mxu0  ;;  %v3594_v63 = vpop.f32.mrb[108].mxu1 }
 0x344   : > { %v5763_v47 = vpop.f32.mrb[121].mxu0  ;;  %v6137_v53 = vpop.f32.mrb[109].mxu1 }
 0x345   : > { %v5764_v6 = vadd.f32 %v5763_v47, %v5762_v49  ;;  %v5765_v3 = vpop.f32.mrb[122].mxu0  ;;  %v3597_v38 = vpop.f32.mrb[110].mxu1 }
 0x346   : > { %v5766_v39 = vpop.f32.mrb[123].mxu0  ;;  %v6138_v56 = vpop.f32.mrb[111].mxu1 }
 0x347   : > { %v8488_v50 = vadd.f32 %v5764_v6, %v3586_v35  ;;  %v5767_v27 = vadd.f32 %v5766_v39, %v5765_v3 }
 0x349   : > { %v8490_v51 = vadd.f32 %v5767_v27, %v3589_v41 }
 0x34b   : > { %v5768_v0 = vpop.f32.mrb[124].mxu0  ;;  %v3602_v24 = vpop.f32.mrb[112].mxu1 }
 0x34c   : > { %v5769_v21 = vpop.f32.mrb[125].mxu0  ;;  %v6141_v10 = vpop.f32.mrb[113].mxu1 }
 0x34d   : > { %v5770_v13 = vadd.f32 %v5769_v21, %v5768_v0  ;;  %v5771_v8 = vpop.f32.mrb[126].mxu0  ;;  %v3605_v60 = vpop.f32.mrb[114].mxu1 }
 0x34e   : > { %v5772_v30 = vpop.f32.mrb[127].mxu0  ;;  %v6142_v9 = vpop.f32.mrb[115].mxu1 }
 0x34f   : > { %v8492_v19 = vadd.f32 %v5770_v13, %v3594_v63  ;;  %v5773_v18 = vadd.f32 %v5772_v30, %v5771_v8 }
 0x351   : > { %v8494_v31 = vadd.f32 %v5773_v18, %v3597_v38 }
 0x353   : > { %v5774_v58 = vpop.f32.mrb[128].mxu0  ;;  %v3892_v62 = vpop.f32.mrb[116].mxu1 }
 0x354   : > { %v5775_v42 = vpop.f32.mrb[129].mxu0  ;;  %v6161_v25 = vpop.f32.mrb[117].mxu1 }
 0x355   : > { %v5776_v28 = vadd.f32 %v5775_v42, %v5774_v58  ;;  %v5777_v32 = vpop.f32.mrb[130].mxu0  ;;  %v3895_v57 = vpop.f32.mrb[118].mxu1 }
 0x356   : > { %v5778_v43 = vpop.f32.mrb[131].mxu0  ;;  %v6162_v22 = vpop.f32.mrb[119].mxu1 }
 0x357   : > { %v8496_v23 = vadd.f32 %v5776_v28, %v3602_v24  ;;  %v5779_v45 = vadd.f32 %v5778_v43, %v5777_v32 }
 0x359   : > { %v8498_v29 = vadd.f32 %v5779_v45, %v3605_v60 }
 0x35b   : > { %v5813_v33 = vpop.f32.mrb[132].mxu0  ;;  %v3900_v48 = vpop.f32.mrb[120].mxu1 }
 0x35c   : > { %v5814_v20 = vpop.f32.mrb[133].mxu0  ;;  %v6165_v36 = vpop.f32.mrb[121].mxu1 }
 0x35d   : > { %v5815_v2 = vadd.f32 %v5814_v20, %v5813_v33  ;;  %v5816_v15 = vpop.f32.mrb[134].mxu0  ;;  %v3903_v11 = vpop.f32.mrb[122].mxu1 }
 0x35e   : > { %v5817_v35 = vpop.f32.mrb[135].mxu0  ;;  %v6166_v46 = vpop.f32.mrb[123].mxu1 }
 0x35f   : > { %v3788_v14 = vadd.f32 %v5815_v2, %v8457_v17  ;;  %v5818_v1 = vadd.f32 %v5817_v35, %v5816_v15 }
 0x361   : > { %v3791_v7 = vadd.f32 %v5818_v1, %v8460_v16  ;;  %v8502_v41 = vadd.f32 %v3892_v62, %v3788_v14 }
 0x363   : > { %v5819_v44 = vpop.f32.mrb[136].mxu0  ;;  %v3908_v26 = vpop.f32.mrb[124].mxu1  ;;  %v8504_v12 = vadd.f32 %v3895_v57, %v3791_v7 }
 0x364   : > { %v5820_v49 = vpop.f32.mrb[137].mxu0  ;;  %v6169_v63 = vpop.f32.mrb[125].mxu1 }
 0x365   : > { %v5821_v47 = vadd.f32 %v5820_v49, %v5819_v44  ;;  %v5822_v53 = vpop.f32.mrb[138].mxu0  ;;  %v3911_v6 = vpop.f32.mrb[126].mxu1 }
 0x366   : > { %v5823_v3 = vpop.f32.mrb[139].mxu0  ;;  %v6170_v38 = vpop.f32.mrb[127].mxu1 }
 0x367   : > { %v3796_v39 = vadd.f32 %v5821_v47, %v8464_v54  ;;  %v5824_v56 = vadd.f32 %v5823_v3, %v5822_v53 }
 0x369   : > { %v3799_v17 = vadd.f32 %v5824_v56, %v8467_v61  ;;  %v8508_v27 = vadd.f32 %v3900_v48, %v3796_v39 }
 0x36b   : > { %v5825_v16 = vpop.f32.mrb[140].mxu0  ;;  %v3916_v0 = vpop.f32.mrb[128].mxu1  ;;  %v8510_v24 = vadd.f32 %v3903_v11, %v3799_v17 }
 0x36c   : > { %v5826_v21 = vpop.f32.mrb[141].mxu0  ;;  %v6173_v10 = vpop.f32.mrb[129].mxu1 }
 0x36d   : > { %v5827_v13 = vadd.f32 %v5826_v21, %v5825_v16  ;;  %v5828_v8 = vpop.f32.mrb[142].mxu0  ;;  %v3919_v60 = vpop.f32.mrb[130].mxu1 }
 0x36e   : > { %v5829_v30 = vpop.f32.mrb[143].mxu0  ;;  %v6174_v9 = vpop.f32.mrb[131].mxu1 }
 0x36f   : > { %v3804_v18 = vadd.f32 %v5827_v13, %v8471_v55  ;;  %v5830_v58 = vadd.f32 %v5829_v30, %v5828_v8 }
 0x371   : > { %v3807_v54 = vadd.f32 %v5830_v58, %v8474_v5  ;;  %v8514_v62 = vadd.f32 %v3908_v26, %v3804_v18 }
 0x373   : > { %v5831_v61 = vpop.f32.mrb[144].mxu0  ;;  %v3924_v42 = vpop.f32.mrb[132].mxu1  ;;  %v8516_v25 = vadd.f32 %v3911_v6, %v3807_v54 }
 0x374   : > { %v5832_v28 = vpop.f32.mrb[145].mxu0  ;;  %v6177_v32 = vpop.f32.mrb[133].mxu1 }
 0x375   : > { %v5833_v57 = vadd.f32 %v5832_v28, %v5831_v61  ;;  %v5834_v43 = vpop.f32.mrb[146].mxu0  ;;  %v3927_v22 = vpop.f32.mrb[134].mxu1 }
 0x376   : > { %v5835_v45 = vpop.f32.mrb[147].mxu0  ;;  %v6178_v33 = vpop.f32.mrb[135].mxu1 }
 0x377   : > { %v3812_v48 = vadd.f32 %v5833_v57, %v8476_v34  ;;  %v5836_v20 = vadd.f32 %v5835_v45, %v5834_v43 }
 0x379   : > { %v8519_v55 = vadd.f32 %v3916_v0, %v3812_v48  ;;  %v3815_v5 = vadd.f32 %v5836_v20, %v8478_v4 }
 0x37b   : > { %v8522_v36 = vadd.f32 %v3919_v60, %v3815_v5  ;;  %v5837_v2 = vpop.f32.mrb[148].mxu0  ;;  %v3932_v15 = vpop.f32.mrb[136].mxu1 }
 0x37c   : > { %v5838_v11 = vpop.f32.mrb[149].mxu0  ;;  %v6181_v35 = vpop.f32.mrb[137].mxu1 }
 0x37d   : > { %v5839_v46 = vadd.f32 %v5838_v11, %v5837_v2  ;;  %v5840_v14 = vpop.f32.mrb[150].mxu0  ;;  %v3935_v1 = vpop.f32.mrb[138].mxu1 }
 0x37e   : > { %v5841_v7 = vpop.f32.mrb[151].mxu0  ;;  %v6182_v44 = vpop.f32.mrb[139].mxu1 }
 0x37f   : > { %v3820_v26 = vadd.f32 %v5839_v46, %v8480_v37  ;;  %v5842_v49 = vadd.f32 %v5841_v7, %v5840_v14 }
 0x381   : > { %v8525_v34 = vadd.f32 %v3924_v42, %v3820_v26  ;;  %v3823_v63 = vadd.f32 %v5842_v49, %v8482_v52 }
 0x383   : > { %v8528_v47 = vadd.f32 %v3927_v22, %v3823_v63  ;;  %v5843_v4 = vpop.f32.mrb[152].mxu0  ;;  %v3940_v53 = vpop.f32.mrb[140].mxu1 }
 0x384   : > { %v5844_v6 = vpop.f32.mrb[153].mxu0  ;;  %v6185_v3 = vpop.f32.mrb[141].mxu1 }
 0x385   : > { %v5845_v38 = vadd.f32 %v5844_v6, %v5843_v4  ;;  %v5846_v39 = vpop.f32.mrb[154].mxu0  ;;  %v3943_v56 = vpop.f32.mrb[142].mxu1 }
 0x386   : > { %v5847_v17 = vpop.f32.mrb[155].mxu0  ;;  %v6186_v16 = vpop.f32.mrb[143].mxu1 }
 0x387   : > { %v3828_v0 = vadd.f32 %v5845_v38, %v8484_v59  ;;  %v5848_v21 = vadd.f32 %v5847_v17, %v5846_v39 }
 0x389   : > { %v8531_v37 = vadd.f32 %v3932_v15, %v3828_v0  ;;  %v3831_v10 = vadd.f32 %v5848_v21, %v8486_v40 }
 0x38b   : > { %v8534_v13 = vadd.f32 %v3935_v1, %v3831_v10  ;;  %v5849_v52 = vpop.f32.mrb[156].mxu0  ;;  %v3948_v8 = vpop.f32.mrb[144].mxu1 }
 0x38c   : > { %v5850_v60 = vpop.f32.mrb[157].mxu0  ;;  %v6189_v30 = vpop.f32.mrb[145].mxu1 }
 0x38d   : > { %v5851_v9 = vadd.f32 %v5850_v60, %v5849_v52  ;;  %v5852_v18 = vpop.f32.mrb[158].mxu0  ;;  %v3951_v58 = vpop.f32.mrb[146].mxu1 }
 0x38e   : > { %v5853_v54 = vpop.f32.mrb[159].mxu0  ;;  %v6190_v61 = vpop.f32.mrb[147].mxu1 }
 0x38f   : > { %v3836_v42 = vadd.f32 %v5851_v9, %v8488_v50  ;;  %v5854_v28 = vadd.f32 %v5853_v54, %v5852_v18 }
 0x391   : > { %v8537_v59 = vadd.f32 %v3940_v53, %v3836_v42  ;;  %v3839_v32 = vadd.f32 %v5854_v28, %v8490_v51 }
 0x393   : > { %v8540_v57 = vadd.f32 %v3943_v56, %v3839_v32  ;;  %v5855_v40 = vpop.f32.mrb[160].mxu0  ;;  %v3956_v43 = vpop.f32.mrb[148].mxu1 }
 0x394   : > { %v5856_v22 = vpop.f32.mrb[161].mxu0  ;;  %v6193_v45 = vpop.f32.mrb[149].mxu1 }
 0x395   : > { %v5857_v33 = vadd.f32 %v5856_v22, %v5855_v40  ;;  %v5858_v48 = vpop.f32.mrb[162].mxu0  ;;  %v3959_v20 = vpop.f32.mrb[150].mxu1 }
 0x396   : > { %v5859_v5 = vpop.f32.mrb[163].mxu0  ;;  %v6194_v2 = vpop.f32.mrb[151].mxu1 }
 0x397   : > { %v3844_v15 = vadd.f32 %v5857_v33, %v8492_v19  ;;  %v5860_v11 = vadd.f32 %v5859_v5, %v5858_v48  ;;  %v6606_v2 = vld [vmem:[%s6756_s10 + $0x28] sm:$0xff]  }
 0x399   : > { %v8543_v50 = vadd.f32 %v3948_v8, %v3844_v15  ;;  %v3847_v35 = vadd.f32 %v5860_v11, %v8494_v31  ;;  %v2856_v15 = vunpack.c.l.bf16 %v6606_v2  ;;  %v2857_v11 = vunpack.c.h.bf16 %v6606_v2 }
 0x39b   : > { %v8546_v46 = vadd.f32 %v3951_v58, %v3847_v35  ;;  %v5861_v51 = vpop.f32.mrb[164].mxu0  ;;  %v4576_v14 = vpop.f32.mrb[152].mxu1 }
 0x39c   : > { %v5862_v1 = vpop.f32.mrb[165].mxu0  ;;  %v6225_v7 = vpop.f32.mrb[153].mxu1 }
 0x39d   : > { %v5863_v44 = vadd.f32 %v5862_v1, %v5861_v51  ;;  %v5864_v26 = vpop.f32.mrb[166].mxu0  ;;  %v4579_v49 = vpop.f32.mrb[154].mxu1  ;;  %v6607_v7 = vld [vmem:[%s6756_s10 + $0x30] sm:$0xff]  }
 0x39e   : > { %v5865_v63 = vpop.f32.mrb[167].mxu0  ;;  %v6226_v4 = vpop.f32.mrb[155].mxu1 }
 0x39f   : > { %v3852_v53 = vadd.f32 %v5863_v44, %v8496_v23  ;;  %v5866_v6 = vadd.f32 %v5865_v63, %v5864_v26  ;;  %v2858_v44 = vunpack.c.l.bf16 %v6607_v7 }
 0x3a1   : > { %v8549_v19 = vadd.f32 %v3956_v43, %v3852_v53  ;;  %v3855_v3 = vadd.f32 %v5866_v6, %v8498_v29  ;;  %v8584_v6 = vrot.slane %v2856_v15, 5 }
 0x3a3   : > { %v8552_v38 = vadd.f32 %v3959_v20, %v3855_v3  ;;  %v5900_v31 = vpop.f32.mrb[168].mxu0  ;;  %v8554_v39 = vpop.f32.mrb[156].mxu1  ;;  %v4699_v3 = vrot.slane %v2857_v11, 5 }
 0x3a4   : > { %v5901_v56 = vpop.f32.mrb[169].mxu0  ;;  %v6229_v17 = vpop.f32.mrb[157].mxu1 }
 0x3a5   : > { %v8556_v16 = vadd.f32 %v5901_v56, %v5900_v31  ;;  %v5903_v0 = vpop.f32.mrb[170].mxu0  ;;  %v8558_v21 = vpop.f32.mrb[158].mxu1 }
 0x3a6   : > { %v5904_v10 = vpop.f32.mrb[171].mxu0  ;;  %v6230_v52 = vpop.f32.mrb[159].mxu1 }
 0x3a7   : > { %v8560_v23 = vadd.f32 %v5904_v10, %v5903_v0  ;;  %v8589_v10 = vld [vmem:[%s8712_s4] ss:$0 sm:$0xff]  ;;  %v4701_v52 = vrot.slane %v2858_v44, 5 }
 0x3ab   : > { %v5906_v8 = vpop.f32.mrb[172].mxu0  ;;  %v8562_v60 = vpop.f32.mrb[160].mxu1 }
 0x3ac   : > { %v5907_v29 = vpop.f32.mrb[173].mxu0  ;;  %v6233_v30 = vpop.f32.mrb[161].mxu1 }
 0x3ad   : > { %v8564_v9 = vadd.f32 %v5907_v29, %v5906_v8  ;;  %v5909_v18 = vpop.f32.mrb[174].mxu0  ;;  %v8566_v58 = vpop.f32.mrb[162].mxu1  ;;  %v4700_v30 = vsel %vm4685_vm0, %v8584_v6, %v4699_v3 }
 0x3ae   : > { %v5910_v54 = vpop.f32.mrb[175].mxu0  ;;  %v6234_v61 = vpop.f32.mrb[163].mxu1 }
 0x3af   : > { %v8568_v42 = vadd.f32 %v5910_v54, %v5909_v18  ;;  %v2859_v18 = vunpack.c.h.bf16 %v6607_v7 }
 0x3b3   : > { %v5912_v28 = vpop.f32.mrb[176].mxu0  ;;  %v8570_v32 = vpop.f32.mrb[164].mxu1 }
 0x3b4   : > { %v5913_v40 = vpop.f32.mrb[177].mxu0  ;;  %v6237_v43 = vpop.f32.mrb[165].mxu1 }
 0x3b5   : > { %v8572_v22 = vadd.f32 %v5913_v40, %v5912_v28  ;;  %v5915_v45 = vpop.f32.mrb[178].mxu0  ;;  %v8574_v33 = vpop.f32.mrb[166].mxu1  ;;  %v4702_v40 = vsel %vm4685_vm0, %v4699_v3, %v4701_v52 }
 0x3b6   : > { %v5916_v48 = vpop.f32.mrb[179].mxu0  ;;  %v6238_v20 = vpop.f32.mrb[167].mxu1 }
 0x3b7   : > { %v8576_v5 = vadd.f32 %v5916_v48, %v5915_v45  ;;  %v6608_v45 = vld [vmem:[%s6756_s10 + $0x38] sm:$0xff]  }
 0x3b8   : > { %v2860_v48 = vunpack.c.l.bf16 %v6608_v45 }
 0x3bb   : > { %v5918_v35 = vpop.f32.mrb[180].mxu0  ;;  %v8579_v51 = vpop.f32.mrb[168].mxu1 }
 0x3bc   : > { %v5919_v1 = vpop.f32.mrb[181].mxu0  ;;  %v6241_v26 = vpop.f32.mrb[169].mxu1 }
 0x3bd   : > { %v5920_v63 = vadd.f32 %v5919_v1, %v5918_v35  ;;  %v5921_v4 = vpop.f32.mrb[182].mxu0  ;;  %v8582_v53 = vpop.f32.mrb[170].mxu1  ;;  %v4703_v35 = vrot.slane %v2859_v18, 5 }
 0x3be   : > { %v5922_v31 = vpop.f32.mrb[183].mxu0  ;;  %v6242_v56 = vpop.f32.mrb[171].mxu1 }
 0x3bf   : > { %v4577_v17 = vadd.f32 %v5920_v63, %v4576_v14  ;;  %v5923_v0 = vadd.f32 %v5922_v31, %v5921_v4  ;;  %v4705_v4 = vrot.slane %v2860_v48, 5 }
 0x3c1   : > { %v4629_v8 = vadd.f32 %v4577_v17, %v8519_v55  ;;  %v4580_v29 = vadd.f32 %v5923_v0, %v4579_v49  ;;  %v4704_v17 = vsel %vm4685_vm0, %v4701_v52, %v4703_v35  ;;  %v2861_v0 = vunpack.c.h.bf16 %v6608_v45 }
 0x3c3   : > { %v4654_v54 = vadd.f32 %v8589_v10, %v4629_v8  ;;  %v4630_v61 = vadd.f32 %v4580_v29, %v8522_v36  ;;  %v5924_v14 = vpop.f32.mrb[184].mxu0  ;;  %v8596_v28 = vpop.f32.mrb[172].mxu1  ;;  %v4707_v52 = vrot.slane %v2861_v0, 5 }
 0x3c4   : > { %v5925_v43 = vpop.f32.mrb[185].mxu0  ;;  %v6245_v20 = vpop.f32.mrb[173].mxu1 }
 0x3c5   : > { %v4747_v55 = vadd.f32 %v4700_v30, %v4654_v54  ;;  %v4655_v49 = vadd.f32 %v8589_v10, %v4630_v61  ;;  %v5926_v2 = vadd.f32 %v5925_v43, %v5924_v14  ;;  %v5927_v15 = vpop.f32.mrb[186].mxu0  ;;  %v8601_v11 = vpop.f32.mrb[174].mxu1  ;;  %v6609_v54 = vld [vmem:[%s6756_s10 + $0x40] sm:$0xff]  }
 0x3c6   : > { %v5928_v36 = vpop.f32.mrb[187].mxu0  ;;  %v6246_v1 = vpop.f32.mrb[175].mxu1  ;;  %v2862_v61 = vunpack.c.l.bf16 %v6609_v54 }
 0x3c7   : > { %v4765_v7 = vmax.f32 %v4747_v55, 0.0  ;;  %v4748_v44 = vadd.f32 %v4702_v40, %v4655_v49  ;;  %v4585_v26 = vadd.f32 %v5926_v2, %v8554_v39  ;;  %v5929_v63 = vadd.f32 %v5928_v36, %v5927_v15 }
 0x3c8   : > { %v4706_v39 = vsel %vm4685_vm0, %v4703_v35, %v4705_v4  ;;  %v4709_v55 = vrot.slane %v2862_v61, 5  ;;  %v4708_v35 = vsel %vm4685_vm0, %v4705_v4, %v4707_v52  ;;  %v2863_v36 = vunpack.c.h.bf16 %v6609_v54 }
 0x3c9   : > { %4783 = vst [vmem:[%s6746_s20 + $0x30] sm:$0xff] %v4765_v7  ;;  %v4766_v3 = vmax.f32 %v4748_v44, 0.0  ;;  %v4631_v31 = vadd.f32 %v4585_v26, %v8525_v34  ;;  %v4588_v56 = vadd.f32 %v5929_v63, %v8558_v21  ;;  %v6610_v63 = vld [vmem:[%s6756_s10 + $0x48] sm:$0xff]  }
 0x3ca   : > { %v4711_v4 = vrot.slane %v2863_v36, 5 }
 0x3cb   : > { %4784 = vst [vmem:[%s6746_s20 + $0x38] sm:$0xff] %v4766_v3  ;;  %v4656_v8 = vadd.f32 %v8589_v10, %v4631_v31  ;;  %v4632_v29 = vadd.f32 %v4588_v56, %v8528_v47  ;;  %v5930_v30 = vpop.f32.mrb[188].mxu0  ;;  %v2864_v3 = vunpack.c.l.bf16 %v6610_v63 }
 0x3cc   : > { %v5931_v18 = vpop.f32.mrb[189].mxu0  ;;  %v4712_v61 = vsel %vm4685_vm0, %v4709_v55, %v4711_v4 }
 0x3cd   : > { %v4749_v14 = vadd.f32 %v4704_v17, %v4656_v8  ;;  %v4657_v34 = vadd.f32 %v8589_v10, %v4632_v29  ;;  %v5932_v21 = vadd.f32 %v5931_v18, %v5930_v30  ;;  %v5933_v40 = vpop.f32.mrb[190].mxu0  ;;  %v4713_v30 = vrot.slane %v2864_v3, 5 }
 0x3ce   : > { %v5934_v43 = vpop.f32.mrb[191].mxu0 }
 0x3cf   : > { %v4767_v45 = vmax.f32 %v4749_v14, 0.0  ;;  %v4750_v48 = vadd.f32 %v4706_v39, %v4657_v34  ;;  %v4593_v47 = vadd.f32 %v5932_v21, %v8562_v60  ;;  %v5935_v20 = vadd.f32 %v5934_v43, %v5933_v40  ;;  %v6611_v43 = vld [vmem:[%s6756_s10 + $0x50] sm:$0xff]  }
 0x3d0   : > { %v4710_v60 = vsel %vm4685_vm0, %v4707_v52, %v4709_v55  ;;  %v2865_v14 = vunpack.c.h.bf16 %v6610_v63 }
 0x3d1   : > { %4785 = vst [vmem:[%s6746_s20 + $0x40] sm:$0xff] %v4767_v45  ;;  %v4768_v49 = vmax.f32 %v4750_v48, 0.0  ;;  %v4633_v2 = vadd.f32 %v4593_v47, %v8531_v37  ;;  %v4596_v15 = vadd.f32 %v5935_v20, %v8566_v58  ;;  %v2866_v45 = vunpack.c.l.bf16 %v6611_v43 }
 0x3d2   : > { %v4715_v20 = vrot.slane %v2865_v14, 5 }
 0x3d3   : > { %4786 = vst [vmem:[%s6746_s20 + $0x48] sm:$0xff] %v4768_v49  ;;  %v4658_v1 = vadd.f32 %v8589_v10, %v4633_v2  ;;  %v4634_v7 = vadd.f32 %v4596_v15, %v8534_v13  ;;  %v5936_v44 = vpop.f32.mrb[192].mxu0 }
 0x3d4   : > { %v5937_v26 = vpop.f32.mrb[193].mxu0 }
 0x3d5   : > { %v4751_v31 = vadd.f32 %v4708_v35, %v4658_v1  ;;  %v4659_v37 = vadd.f32 %v8589_v10, %v4634_v7  ;;  %v5938_v58 = vadd.f32 %v5937_v26, %v5936_v44  ;;  %v5939_v56 = vpop.f32.mrb[194].mxu0  ;;  %v4717_v35 = vrot.slane %v2866_v45, 5 }
 0x3d6   : > { %v5940_v17 = vpop.f32.mrb[195].mxu0  ;;  %v4716_v44 = vsel %vm4685_vm0, %v4713_v30, %v4715_v20 }
 0x3d7   : > { %v4769_v0 = vmax.f32 %v4751_v31, 0.0  ;;  %v4752_v8 = vadd.f32 %v4710_v60, %v4659_v37  ;;  %v4601_v13 = vadd.f32 %v5938_v58, %v8570_v32  ;;  %v5941_v29 = vadd.f32 %v5940_v17, %v5939_v56  ;;  %v6612_v37 = vld [vmem:[%s6756_s10 + $0x58] sm:$0xf] }
 0x3d8   : > { %v4714_v32 = vsel %vm4685_vm0, %v4711_v4, %v4713_v30  ;;  %v2867_v60 = vunpack.c.h.bf16 %v6611_v43  ;;  %v2868_v58 = vunpack.c.l.bf16 %v6612_v37 }
 0x3d9   : > { %4787 = vst [vmem:[%s6746_s20 + $0x50] sm:$0xff] %v4769_v0  ;;  %v4770_v39 = vmax.f32 %v4752_v8, 0.0  ;;  %v4635_v18 = vadd.f32 %v4601_v13, %v8537_v59  ;;  %v4604_v54 = vadd.f32 %v5941_v29, %v8574_v33  ;;  %v6613_v8 = vld [vmem:[%s6756_s10 + $0x10] sm:$0xff]  }
 0x3da   : > { %v4719_v17 = vrot.slane %v2867_v60, 5  ;;  %v2850_v13 = vunpack.c.l.bf16 %v6613_v8  ;;  %v2851_v29 = vunpack.c.h.bf16 %v6613_v8  ;;  %v6615_v60 = vld [vmem:[%s6756_s10 + $0x20] sm:$0xff]  }
 0x3db   : > { %4788 = vst [vmem:[%s6746_s20 + $0x58] sm:$0xff] %v4770_v39  ;;  %v4660_v34 = vadd.f32 %v8589_v10, %v4635_v18  ;;  %v4636_v21 = vadd.f32 %v4604_v54, %v8540_v57  ;;  %v5942_v40 = vpop.f32.mrb[196].mxu0  ;;  %v4721_v54 = vrot.slane %v2868_v58, 5  ;;  %v2855_v8 = vunpack.c.h.bf16 %v6615_v60 }
 0x3dc   : > { %v5943_v52 = vpop.f32.mrb[197].mxu0 }
 0x3dd   : > { %v4753_v48 = vadd.f32 %v4712_v61, %v4660_v34  ;;  %v4661_v59 = vadd.f32 %v8589_v10, %v4636_v21  ;;  %v5944_v33 = vadd.f32 %v5943_v52, %v5942_v40  ;;  %v5945_v47 = vpop.f32.mrb[198].mxu0  ;;  %v6614_v21 = vld [vmem:[%s6756_s10 + $0x18] sm:$0xff]  }
 0x3de   : > { %v5946_v55 = vpop.f32.mrb[199].mxu0  ;;  %v2852_v40 = vunpack.c.l.bf16 %v6614_v21 }
 0x3df   : > { %v4771_v49 = vmax.f32 %v4753_v48, 0.0  ;;  %v4754_v2 = vadd.f32 %v4714_v32, %v4661_v59  ;;  %v4609_v57 = vadd.f32 %v5944_v33, %v8579_v51  ;;  %v5947_v15 = vadd.f32 %v5946_v55, %v5945_v47 }
 0x3e0   : > { %v4718_v51 = vsel %vm4685_vm0, %v4715_v20, %v4717_v35  ;;  %v4720_v32 = vsel %vm4685_vm0, %v4717_v35, %v4719_v17  ;;  %v4686_v48 = vrot.slane %v2850_v13, 5  ;;  %v4722_v59 = vsel %vm4685_vm0, %v4719_v17, %v4721_v54 }
 0x3e1   : > { %4789 = vst [vmem:[%s6746_s20 + $0x60] sm:$0xff] %v4771_v49  ;;  %v4772_v36 = vmax.f32 %v4754_v2, 0.0  ;;  %v4637_v1 = vadd.f32 %v4609_v57, %v8543_v50  ;;  %v4612_v7 = vadd.f32 %v5947_v15, %v8582_v53  ;;  %v4689_v55 = vrot.slane %v2852_v40, 5 }
 0x3e3   : > { %4790 = vst [vmem:[%s6746_s20 + $0x68] sm:$0xff] %v4772_v36  ;;  %v4662_v26 = vadd.f32 %v8589_v10, %v4637_v1  ;;  %v4638_v63 = vadd.f32 %v4612_v7, %v8546_v46  ;;  %v5948_v3 = vpop.f32.mrb[200].mxu0  ;;  %v2853_v36 = vunpack.c.h.bf16 %v6614_v21 }
 0x3e4   : > { %v5949_v31 = vpop.f32.mrb[201].mxu0 }
 0x3e5   : > { %v4755_v56 = vadd.f32 %v4716_v44, %v4662_v26  ;;  %v4663_v50 = vadd.f32 %v8589_v10, %v4638_v63  ;;  %v5950_v53 = vadd.f32 %v5949_v31, %v5948_v3  ;;  %v5951_v4 = vpop.f32.mrb[202].mxu0  ;;  %v4691_v3 = vrot.slane %v2853_v36, 5 }
 0x3e6   : > { %v5952_v0 = vpop.f32.mrb[203].mxu0 }
 0x3e7   : > { %v4773_v46 = vmax.f32 %v4755_v56, 0.0  ;;  %v4756_v30 = vadd.f32 %v4718_v51, %v4663_v50  ;;  %v4617_v39 = vadd.f32 %v5950_v53, %v8596_v28  ;;  %v5953_v18 = vadd.f32 %v5952_v0, %v5951_v4 }
 0x3e8   : > { %v4687_v28 = vrot.slane %v2851_v29, 5  ;;  %v4692_v0 = vsel %vm4685_vm0, %v4689_v55, %v4691_v3 }
 0x3e9   : > { %4791 = vst [vmem:[%s6746_s20 + $0x70] sm:$0xff] %v4773_v46  ;;  %v4774_v61 = vmax.f32 %v4756_v30, 0.0  ;;  %v4639_v14 = vadd.f32 %v4617_v39, %v8549_v19  ;;  %v4620_v34 = vadd.f32 %v5953_v18, %v8601_v11 }
 0x3ea   : > { %v4688_v35 = vsel %vm4685_vm0, %v4686_v48, %v4687_v28  ;;  %v4690_v44 = vsel %vm4685_vm0, %v4687_v28, %v4689_v55 }
 0x3eb   : > { %4792 = vst [vmem:[%s6746_s20 + $0x78] sm:$0xff] %v4774_v61  ;;  %v4664_v52 = vadd.f32 %v8589_v10, %v4639_v14  ;;  %v4640_v43 = vadd.f32 %v4620_v34, %v8552_v38  ;;  %v4552_v45 = vpop.f32.mrb[204].mxu0 }
 0x3ec   : > { %v4553_v33 = vadd.f32 %v8556_v16, %v4552_v45  ;;  %v6213_v19 = vpop.f32.mrb[205].mxu0 }
 0x3ed   : > { %v4757_v47 = vadd.f32 %v4720_v32, %v4664_v52  ;;  %v4665_v11 = vadd.f32 %v8589_v10, %v4640_v43  ;;  %v4555_v20 = vpop.f32.mrb[206].mxu0 }
 0x3ee   : > { %v4623_v49 = vadd.f32 %v4553_v33, %v8502_v41  ;;  %v4556_v38 = vadd.f32 %v8560_v23, %v4555_v20  ;;  %v6214_v2 = vpop.f32.mrb[207].mxu0  ;;  %v2854_v41 = vunpack.c.l.bf16 %v6615_v60 }
 0x3ef   : > { %v4775_v57 = vmax.f32 %v4757_v47, 0.0  ;;  %v4758_v15 = vadd.f32 %v4722_v59, %v4665_v11 }
 0x3f0   : > { %v4648_v16 = vadd.f32 %v8589_v10, %v4623_v49  ;;  %v4624_v1 = vadd.f32 %v4556_v38, %v8504_v12  ;;  %v4693_v56 = vrot.slane %v2854_v41, 5 }
 0x3f1   : > { %4793 = vst [vmem:[%s6746_s20 + $0x80] sm:$0xff] %v4775_v57  ;;  %v4776_v7 = vmax.f32 %v4758_v15, 0.0 }
 0x3f2   : > { %v4741_v26 = vadd.f32 %v4688_v35, %v4648_v16  ;;  %v4649_v23 = vadd.f32 %v8589_v10, %v4624_v1 }
 0x3f3   : > { %4794 = vst [vmem:[%s6746_s20 + $0x88] sm:$0x3f] %v4776_v7  ;;  %v4560_v63 = vpop.f32.mrb[208].mxu0 }
 0x3f4   : > { %v4759_v51 = vmax.f32 %v4741_v26, 0.0  ;;  %v4742_v31 = vadd.f32 %v4690_v44, %v4649_v23  ;;  %v4561_v37 = vadd.f32 %v8564_v9, %v4560_v63  ;;  %v6217_v58 = vpop.f32.mrb[209].mxu0  ;;  %v4694_v9 = vsel %vm4685_vm0, %v4691_v3, %v4693_v56 }
 0x3f5   : > { %v4563_v12 = vpop.f32.mrb[210].mxu0 }
 0x3f6   : > { %4777 = vst [vmem:[%s6746_s20] sm:$0xff] %v4759_v51  ;;  %v4760_v50 = vmax.f32 %v4742_v31, 0.0  ;;  %v4625_v53 = vadd.f32 %v4561_v37, %v8508_v27  ;;  %v4564_v4 = vadd.f32 %v8568_v42, %v4563_v12  ;;  %v6218_v17 = vpop.f32.mrb[211].mxu0  ;;  %v4695_v27 = vrot.slane %v2855_v8, 5 }
 0x3f8   : > { %4778 = vst [vmem:[%s6746_s20 + $0x8] sm:$0xff] %v4760_v50  ;;  %v4650_v13 = vadd.f32 %v8589_v10, %v4625_v53  ;;  %v4626_v29 = vadd.f32 %v4564_v4, %v8510_v24  ;;  %v4696_v32 = vsel %vm4685_vm0, %v4693_v56, %v4695_v27 }
 0x3fa   : > { %v4743_v46 = vadd.f32 %v4692_v0, %v4650_v13  ;;  %v4651_v30 = vadd.f32 %v8589_v10, %v4626_v29 }
 0x3fb   : > { %v4568_v39 = vpop.f32.mrb[212].mxu0 }
 0x3fc   : > { %v4761_v18 = vmax.f32 %v4743_v46, 0.0  ;;  %v4744_v42 = vadd.f32 %v4694_v9, %v4651_v30  ;;  %v4569_v54 = vadd.f32 %v8572_v22, %v4568_v39  ;;  %v6221_v61 = vpop.f32.mrb[213].mxu0  ;;  %v4698_v22 = vsel %vm4685_vm0, %v4695_v27, %v8584_v6 }
 0x3fd   : > { %v4571_v14 = vpop.f32.mrb[214].mxu0 }
 0x3fe   : > { %4779 = vst [vmem:[%s6746_s20 + $0x10] sm:$0xff] %v4761_v18  ;;  %v4762_v34 = vmax.f32 %v4744_v42, 0.0  ;;  %v4627_v24 = vadd.f32 %v4569_v54, %v8514_v62  ;;  %v4572_v21 = vadd.f32 %v8576_v5, %v4571_v14  ;;  %v6222_v40 = vpop.f32.mrb[215].mxu0 }
 0x400   : > { %4780 = vst [vmem:[%s6746_s20 + $0x18] sm:$0xff] %v4762_v34  ;;  %v4652_v52 = vadd.f32 %v8589_v10, %v4627_v24  ;;  %v4628_v43 = vadd.f32 %v4572_v21, %v8516_v25 }
 0x402   : > { %v4745_v45 = vadd.f32 %v4696_v32, %v4652_v52  ;;  %v4653_v48 = vadd.f32 %v8589_v10, %v4628_v43 }
 0x404   : > { %v4763_v28 = vmax.f32 %v4745_v45, 0.0  ;;  %v4746_v59 = vadd.f32 %v4698_v22, %v4653_v48 }
 0x406   : > { %4781 = vst [vmem:[%s6746_s20 + $0x20] sm:$0xff] %v4763_v28  ;;  %v4764_v62 = vmax.f32 %v4746_v59, 0.0 }
 0x408   : > { %4782 = vst [vmem:[%s6746_s20 + $0x28] sm:$0xff] %v4764_v62 }
 0x409 PF: > { %s16_s25 = sadd.s32 1, %s6656_s25   ;;  %s8721_s21 = smov %s6648_s23 }
 0x40a   : > { %p13_p12 = scmp.ge.s32.totalorder %s16_s25, 6   ;;  %s8722_s22 = smov %s6652_s24 }
 0x40b   : > { %s8723_s23 = smov %s8726_s26  ;;  %s8724_s24 = smov %s8730_s27 }
 0x40c   :  { %15 = sbr.rel (!%p13_p12) target bundleno = 3 (0x3), region = 191 }
 0x413   :  { %4826 = vsyncmov [#allocation4] }
 0x416   :  { %s4827_s20 = vpop.sfrf %4826 }
 0x417   :  { %p5358_p13 = scmp.ne.s32.totalorder %s4827_s20, 0 }
 0x419   :  { %4831 = shalt.err (%p5358_p13)  }
 0x41a   :  { %4833 = vsyncmov [#allocation4 + $0x1] }
 0x41d   :  { %s4834_s10 = vpop.sfrf %4833 }
 0x41e   :  { %p5359_p0 = scmp.ne.s32.totalorder %s4834_s10, 0 }
 0x420   :  { %4838 = shalt.err (%p5359_p0)  }

</bundles_post_ra>
